<compile_context>
chip_gen: v5e
topology: v5e:2x2
jax: 0.10.0
libtpu: 0.0.40
codegen_flags: <defaults>
</compile_context>

<pallas_src>
import math

import numpy as np
import jax
import jax.numpy as jnp
from jax.experimental import pallas as pl
from jax.experimental.pallas import tpu as pltpu  # noqa: F401  (TPU backend)

# ----- small config consistent with VisionEncoder(__init__) ------------------
IMAGE_SIZE = 16
CHANNELS_IN = 4
PATCH_SIZE = 4
HIDDEN = 32
NUM_LAYERS = 2
NUM_HEADS = 4
HEAD_DIM = HIDDEN // NUM_HEADS
MLP_HIDDEN = 4 * HIDDEN
NUM_PATCHES = (IMAGE_SIZE // PATCH_SIZE) ** 2          # 16
PATCH_DIM = CHANNELS_IN * PATCH_SIZE * PATCH_SIZE      # 64
EPS = 1e-5


# ----- in-kernel helpers ------------------------------------------------------
def _layernorm(x, g, b):
    mu = jnp.mean(x, axis=-1, keepdims=True)
    var = jnp.mean((x - mu) ** 2, axis=-1, keepdims=True)
    return (x - mu) * jax.lax.rsqrt(var + EPS) * g + b


def _softmax(x):
    m = jnp.max(x, axis=-1, keepdims=True)
    e = jnp.exp(x - m)
    denom = jnp.sum(e, axis=-1, keepdims=True)
    return e * pl.reciprocal(denom, approx=True)


# ----- the Pallas kernel (whole batch in one invocation) ----------------------
def vision_encoder_kernel(patches_ref, wp_ref, pos_ref, vecs_ref,
                          wqkv_ref, bqkv_ref, wo_ref,
                          w1_ref, b1_ref, w2_ref, out_ref):
    M = patches_ref.shape[0]          # B * NUM_PATCHES (batch folded into rows)
    B = M // NUM_PATCHES
    N, H, D = NUM_PATCHES, HIDDEN, HEAD_DIM

    vecs = vecs_ref[...]              # (15, H) packed small params
    bp = vecs[0:1, :]
    lnf_g = vecs[1:2, :]
    lnf_b = vecs[2:3, :]

    # patch projection + positional embedding (dropout == identity, eval mode)
    x = jnp.dot(patches_ref[...], wp_ref[...],
                preferred_element_type=jnp.float32) + bp
    x = (x.reshape(B, N, H) + pos_ref[...]).reshape(M, H)

    for l in range(NUM_LAYERS):
        base = 3 + 6 * l
        ln1_g, ln1_b = vecs[base + 0:base + 1, :], vecs[base + 1:base + 2, :]
        ln2_g, ln2_b = vecs[base + 2:base + 3, :], vecs[base + 3:base + 4, :]
        bo, b2 = vecs[base + 4:base + 5, :], vecs[base + 5:base + 6, :]

        # --- pre-norm multi-head self-attention ------------------------------
        xn = _layernorm(x, ln1_g, ln1_b)
        attn = jnp.zeros((M, H), jnp.float32)
        for h in range(NUM_HEADS):
            # per-head projections (weights pre-split; 1/sqrt(D) folded into q)
            qh = (jnp.dot(xn, wqkv_ref[l, 0, h],
                          preferred_element_type=jnp.float32)
                  + bqkv_ref[l, 0, h]).reshape(B, N, D)
            kh = (jnp.dot(xn, wqkv_ref[l, 1, h],
                          preferred_element_type=jnp.float32)
                  + bqkv_ref[l, 1, h]).reshape(B, N, D)
            vh = (jnp.dot(xn, wqkv_ref[l, 2, h],
                          preferred_element_type=jnp.float32)
                  + bqkv_ref[l, 2, h]).reshape(B, N, D)
            s = jnp.einsum('bqd,bkd->bqk', qh, kh,
                           preferred_element_type=jnp.float32)
            p = _softmax(s)
            oh = jnp.einsum('bqk,bkd->bqd', p, vh,
                            preferred_element_type=jnp.float32)
            # accumulate head output straight through its out-projection slice
            attn = attn + jnp.dot(oh.reshape(M, D), wo_ref[l, h],
                                  preferred_element_type=jnp.float32)
        x = x + attn + bo

        # --- pre-norm MLP (4x expansion, GELU) --------------------------------
        xn = _layernorm(x, ln2_g, ln2_b)
        hmid = jax.nn.gelu(
            jnp.dot(xn, w1_ref[l], preferred_element_type=jnp.float32)
            + b1_ref[l])
        x = x + jnp.dot(hmid, w2_ref[l],
                        preferred_element_type=jnp.float32) + b2

    # final LayerNorm, written once as a single whole-array block
    out_ref[...] = _layernorm(x, lnf_g, lnf_b).reshape(B, N, H)


# ----- parameter re-packing (plain XLA, outside the kernel) -------------------
def _pack_params(params):
    (wp, bp, pos, ln1_g, ln1_b, wqkv, bqkv, wo, bo,
     ln2_g, ln2_b, w1, b1, w2, b2, lnf_g, lnf_b) = params
    L, H, K, D = NUM_LAYERS, HIDDEN, NUM_HEADS, HEAD_DIM
    scale = 1.0 / math.sqrt(D)

    # all H-wide vectors packed into one (3 + 6L, H) array
    vecs = jnp.concatenate(
        [bp.reshape(1, H), lnf_g.reshape(1, H), lnf_b.reshape(1, H)]
        + [jnp.stack([ln1_g[l], ln1_b[l], ln2_g[l], ln2_b[l], bo[l], b2[l]])
           for l in range(L)], axis=0)

    qkv_scale = jnp.array([scale, 1.0, 1.0], jnp.float32)
    # fused (L, H, 3H) -> per-part, per-head (L, 3, K, H, D); fold scale into q
    wqkv_h = wqkv.reshape(L, H, 3, K, D).transpose(0, 2, 3, 1, 4)
    wqkv_h = wqkv_h * qkv_scale[None, :, None, None, None]
    bqkv_h = bqkv.reshape(L, 3, K, 1, D) * qkv_scale[None, :, None, None, None]
    wo_h = wo.reshape(L, K, D, H)
    b1r = b1.reshape(L, 1, MLP_HIDDEN)

    return vecs, wqkv_h, bqkv_h, wo_h, wp, pos, w1, b1r, w2


# ----- wrapper ----------------------------------------------------------------
@jax.jit
def vision_encoder_forward(image, params):
    B, C, Hi, Wi = image.shape
    P = PATCH_SIZE
    gh, gw = Hi // P, Wi // P
    # extract_patches: (B, C, H, W) -> (B*num_patches, C*P*P), Unfold ordering
    patches = image.reshape(B, C, gh, P, gw, P)
    patches = patches.transpose(0, 2, 4, 1, 3, 5).reshape(B * gh * gw, C * P * P)
    patches = patches.astype(jnp.float32)

    vecs, wqkv_h, bqkv_h, wo_h, wp, pos, w1, b1r, w2 = _pack_params(params)

    # single invocation, no grid: everything (<100 KiB) is VMEM-resident
    return pl.pallas_call(
        vision_encoder_kernel,
        out_shape=jax.ShapeDtypeStruct((B, NUM_PATCHES, HIDDEN), jnp.float32),
    )(patches, wp, pos, vecs, wqkv_h, bqkv_h, wo_h, w1, b1r, w2)


# ----- deterministic parameter init (weights stored as (in, out)) -------------
def init_params(key):
    ks = jax.random.split(key, 8)

    def normal(k, shape, scale=0.02):
        return (scale * jax.random.normal(k, shape)).astype(jnp.float32)

    wp = normal(ks[0], (PATCH_DIM, HIDDEN))
    bp = jnp.zeros((1, HIDDEN), jnp.float32)
    pos = normal(ks[1], (NUM_PATCHES, HIDDEN), scale=1.0)   # torch.randn
    ln1_g = jnp.ones((NUM_LAYERS, HIDDEN), jnp.float32)
    ln1_b = jnp.zeros((NUM_LAYERS, HIDDEN), jnp.float32)
    wqkv = normal(ks[2], (NUM_LAYERS, HIDDEN, 3 * HIDDEN))
    bqkv = jnp.zeros((NUM_LAYERS, 3 * HIDDEN), jnp.float32)
    wo = normal(ks[3], (NUM_LAYERS, HIDDEN, HIDDEN))
    bo = jnp.zeros((NUM_LAYERS, HIDDEN), jnp.float32)
    ln2_g = jnp.ones((NUM_LAYERS, HIDDEN), jnp.float32)
    ln2_b = jnp.zeros((NUM_LAYERS, HIDDEN), jnp.float32)
    w1 = normal(ks[4], (NUM_LAYERS, HIDDEN, MLP_HIDDEN))
    b1 = jnp.zeros((NUM_LAYERS, MLP_HIDDEN), jnp.float32)
    w2 = normal(ks[5], (NUM_LAYERS, MLP_HIDDEN, HIDDEN))
    b2 = jnp.zeros((NUM_LAYERS, HIDDEN), jnp.float32)
    lnf_g = jnp.ones((1, HIDDEN), jnp.float32)
    lnf_b = jnp.zeros((1, HIDDEN), jnp.float32)
    return (wp, bp, pos, ln1_g, ln1_b, wqkv, bqkv, wo, bo,
            ln2_g, ln2_b, w1, b1, w2, b2, lnf_g, lnf_b)


# ----- pure-JAX reference (correctness check only) -----------------------------
def reference_forward(image, params):
    (wp, bp, pos, ln1_g, ln1_b, wqkv, bqkv, wo, bo,
     ln2_g, ln2_b, w1, b1, w2, b2, lnf_g, lnf_b) = params
    B, C, Hi, Wi = image.shape
    P = PATCH_SIZE
    gh, gw = Hi // P, Wi // P
    patches = image.reshape(B, C, gh, P, gw, P)
    patches = patches.transpose(0, 2, 4, 1, 3, 5).reshape(B, gh * gw, C * P * P)

    def ln(x, g, b):
        mu = x.mean(-1, keepdims=True)
        var = ((x - mu) ** 2).mean(-1, keepdims=True)
        return (x - mu) / jnp.sqrt(var + EPS) * g + b

    x = patches @ wp + bp
    x = x + pos[None]
    for l in range(NUM_LAYERS):
        xn = ln(x, ln1_g[l], ln1_b[l])
        qkv = xn @ wqkv[l] + bqkv[l]
        q, k, v = jnp.split(qkv, 3, axis=-1)
        q = q.reshape(B, NUM_PATCHES, NUM_HEADS, HEAD_DIM)
        k = k.reshape(B, NUM_PATCHES, NUM_HEADS, HEAD_DIM)
        v = v.reshape(B, NUM_PATCHES, NUM_HEADS, HEAD_DIM)
        s = jnp.einsum('bqhd,bkhd->bhqk', q, k) / math.sqrt(HEAD_DIM)
        p = jax.nn.softmax(s, axis=-1)
        o = jnp.einsum('bhqk,bkhd->bqhd', p, v).reshape(B, NUM_PATCHES, HIDDEN)
        x = x + o @ wo[l] + bo[l]
        xn = ln(x, ln2_g[l], ln2_b[l])
        x = x + jax.nn.gelu(xn @ w1[l] + b1[l]) @ w2[l] + b2[l]
    return ln(x, lnf_g, lnf_b)


if __name__ == "__main__":
    key = jax.random.PRNGKey(0)
    kp, kx = jax.random.split(key)
    params = init_params(kp)
    image = jax.random.normal(
        kx, (2, CHANNELS_IN, IMAGE_SIZE, IMAGE_SIZE), dtype=jnp.float32)

    out = vision_encoder_forward(image, params)
    out = jax.block_until_ready(out)

    ref = reference_forward(image, params)
    if not np.allclose(np.asarray(out), np.asarray(ref), atol=2e-2, rtol=2e-2):
        raise AssertionError("Pallas kernel output does not match JAX reference")

    print("KERNEL_OK")
</pallas_src>

<mosaic_0001>
module attributes {stable_mosaic.version = 11 : i64} {
  func.func @vision_encoder_kernel(%arg0: memref<32x64xf32, #tpu.memory_space<vmem>>, %arg1: memref<64x32xf32, #tpu.memory_space<vmem>>, %arg2: memref<16x32xf32, #tpu.memory_space<vmem>>, %arg3: memref<15x32xf32, #tpu.memory_space<vmem>>, %arg4: memref<2x3x4x32x8xf32, #tpu.memory_space<vmem>>, %arg5: memref<2x3x4x1x8xf32, #tpu.memory_space<vmem>>, %arg6: memref<2x4x8x32xf32, #tpu.memory_space<vmem>>, %arg7: memref<2x32x128xf32, #tpu.memory_space<vmem>>, %arg8: memref<2x1x128xf32, #tpu.memory_space<vmem>>, %arg9: memref<2x128x32xf32, #tpu.memory_space<vmem>>, %arg10: memref<2x16x32xf32, #tpu.memory_space<vmem>>) attributes {dimension_semantics = [], scalar_prefetch = 0 : i64, scratch_operands = 0 : i64, tpu.core_type = #tpu.core_type<tc>} {
    %c0 = arith.constant 0 : index
    %c0_0 = arith.constant 0 : index
    %0 = vector.load %arg3[%c0, %c0_0] : memref<15x32xf32, #tpu.memory_space<vmem>>, vector<15x32xf32>
    %1 = vector.extract_strided_slice %0 {offsets = [0, 0], sizes = [1, 32], strides = [1, 1]} : vector<15x32xf32> to vector<1x32xf32>
    %2 = vector.extract_strided_slice %0 {offsets = [1, 0], sizes = [1, 32], strides = [1, 1]} : vector<15x32xf32> to vector<1x32xf32>
    %3 = vector.extract_strided_slice %0 {offsets = [2, 0], sizes = [1, 32], strides = [1, 1]} : vector<15x32xf32> to vector<1x32xf32>
    %c0_1 = arith.constant 0 : index
    %c0_2 = arith.constant 0 : index
    %4 = vector.load %arg0[%c0_1, %c0_2] : memref<32x64xf32, #tpu.memory_space<vmem>>, vector<32x64xf32>
    %c0_3 = arith.constant 0 : index
    %c0_4 = arith.constant 0 : index
    %5 = vector.load %arg1[%c0_3, %c0_4] : memref<64x32xf32, #tpu.memory_space<vmem>>, vector<64x32xf32>
    %cst = arith.constant dense<0.000000e+00> : vector<32x32xf32>
    %6 = tpu.matmul %4, %5, %cst {dimension_numbers = #tpu.dot_dimension_numbers<[1], [0], [0], [1], [0, 0, 1, 1], [], []>} : vector<32x64xf32>, vector<64x32xf32>, vector<32x32xf32> -> vector<32x32xf32>
    %7 = vector.broadcast %1 : vector<1x32xf32> to vector<32x32xf32>
    %8 = arith.addf %6, %7 : vector<32x32xf32>
    %9 = vector.shape_cast %8 : vector<32x32xf32> to vector<2x16x32xf32>
    %c0_5 = arith.constant 0 : index
    %c0_6 = arith.constant 0 : index
    %10 = vector.load %arg2[%c0_5, %c0_6] : memref<16x32xf32, #tpu.memory_space<vmem>>, vector<16x32xf32>
    %11 = vector.shape_cast %10 : vector<16x32xf32> to vector<1x16x32xf32>
    %12 = vector.broadcast %11 : vector<1x16x32xf32> to vector<2x16x32xf32>
    %13 = arith.addf %9, %12 : vector<2x16x32xf32>
    %14 = vector.shape_cast %13 : vector<2x16x32xf32> to vector<32x32xf32>
    %15 = vector.extract_strided_slice %0 {offsets = [3, 0], sizes = [1, 32], strides = [1, 1]} : vector<15x32xf32> to vector<1x32xf32>
    %16 = vector.extract_strided_slice %0 {offsets = [4, 0], sizes = [1, 32], strides = [1, 1]} : vector<15x32xf32> to vector<1x32xf32>
    %17 = vector.extract_strided_slice %0 {offsets = [5, 0], sizes = [1, 32], strides = [1, 1]} : vector<15x32xf32> to vector<1x32xf32>
    %18 = vector.extract_strided_slice %0 {offsets = [6, 0], sizes = [1, 32], strides = [1, 1]} : vector<15x32xf32> to vector<1x32xf32>
    %19 = vector.extract_strided_slice %0 {offsets = [7, 0], sizes = [1, 32], strides = [1, 1]} : vector<15x32xf32> to vector<1x32xf32>
    %20 = vector.extract_strided_slice %0 {offsets = [8, 0], sizes = [1, 32], strides = [1, 1]} : vector<15x32xf32> to vector<1x32xf32>
    %cst_7 = arith.constant dense<0.000000e+00> : vector<32xf32>
    %21 = vector.multi_reduction <add>, %14, %cst_7 [1] : vector<32x32xf32> to vector<32xf32>
    %22 = vector.shape_cast %21 : vector<32xf32> to vector<32x1xf32>
    %cst_8 = arith.constant 3.200000e+01 : f32
    %23 = vector.broadcast %cst_8 : f32 to vector<32x1xf32>
    %24 = arith.divf %22, %23 : vector<32x1xf32>
    %25 = vector.broadcast %24 : vector<32x1xf32> to vector<32x32xf32>
    %26 = arith.subf %14, %25 : vector<32x32xf32>
    %27 = arith.mulf %26, %26 : vector<32x32xf32>
    %cst_9 = arith.constant dense<0.000000e+00> : vector<32xf32>
    %28 = vector.multi_reduction <add>, %27, %cst_9 [1] : vector<32x32xf32> to vector<32xf32>
    %29 = vector.shape_cast %28 : vector<32xf32> to vector<32x1xf32>
    %cst_10 = arith.constant 3.200000e+01 : f32
    %30 = vector.broadcast %cst_10 : f32 to vector<32x1xf32>
    %31 = arith.divf %29, %30 : vector<32x1xf32>
    %32 = vector.broadcast %24 : vector<32x1xf32> to vector<32x32xf32>
    %33 = arith.subf %14, %32 : vector<32x32xf32>
    %cst_11 = arith.constant 9.99999974E-6 : f32
    %34 = vector.broadcast %cst_11 : f32 to vector<32x1xf32>
    %35 = arith.addf %31, %34 : vector<32x1xf32>
    %36 = math.rsqrt %35 : vector<32x1xf32>
    %37 = vector.broadcast %36 : vector<32x1xf32> to vector<32x32xf32>
    %38 = arith.mulf %33, %37 : vector<32x32xf32>
    %39 = vector.broadcast %15 : vector<1x32xf32> to vector<32x32xf32>
    %40 = arith.mulf %38, %39 : vector<32x32xf32>
    %41 = vector.broadcast %16 : vector<1x32xf32> to vector<32x32xf32>
    %42 = arith.addf %40, %41 : vector<32x32xf32>
    %cst_12 = arith.constant 0.000000e+00 : f32
    %43 = vector.broadcast %cst_12 : f32 to vector<32x32xf32>
    %c0_13 = arith.constant 0 : index
    %c0_14 = arith.constant 0 : index
    %c0_15 = arith.constant 0 : index
    %c0_16 = arith.constant 0 : index
    %c0_17 = arith.constant 0 : index
    %44 = vector.load %arg4[%c0_13, %c0_14, %c0_15, %c0_16, %c0_17] : memref<2x3x4x32x8xf32, #tpu.memory_space<vmem>>, vector<1x1x1x32x8xf32>
    %45 = vector.shape_cast %44 : vector<1x1x1x32x8xf32> to vector<32x8xf32>
    %cst_18 = arith.constant dense<0.000000e+00> : vector<32x8xf32>
    %46 = tpu.matmul %42, %45, %cst_18 {dimension_numbers = #tpu.dot_dimension_numbers<[1], [0], [0], [1], [0, 0, 1, 1], [], []>} : vector<32x32xf32>, vector<32x8xf32>, vector<32x8xf32> -> vector<32x8xf32>
    %c0_19 = arith.constant 0 : index
    %c0_20 = arith.constant 0 : index
    %c0_21 = arith.constant 0 : index
    %c0_22 = arith.constant 0 : index
    %c0_23 = arith.constant 0 : index
    %47 = vector.load %arg5[%c0_19, %c0_20, %c0_21, %c0_22, %c0_23] : memref<2x3x4x1x8xf32, #tpu.memory_space<vmem>>, vector<1x1x1x1x8xf32>
    %48 = vector.shape_cast %47 : vector<1x1x1x1x8xf32> to vector<1x8xf32>
    %49 = vector.broadcast %48 : vector<1x8xf32> to vector<32x8xf32>
    %50 = arith.addf %46, %49 : vector<32x8xf32>
    %51 = vector.shape_cast %50 : vector<32x8xf32> to vector<2x16x8xf32>
    %c0_24 = arith.constant 0 : index
    %c1 = arith.constant 1 : index
    %c0_25 = arith.constant 0 : index
    %c0_26 = arith.constant 0 : index
    %c0_27 = arith.constant 0 : index
    %52 = vector.load %arg4[%c0_24, %c1, %c0_25, %c0_26, %c0_27] : memref<2x3x4x32x8xf32, #tpu.memory_space<vmem>>, vector<1x1x1x32x8xf32>
    %53 = vector.shape_cast %52 : vector<1x1x1x32x8xf32> to vector<32x8xf32>
    %cst_28 = arith.constant dense<0.000000e+00> : vector<32x8xf32>
    %54 = tpu.matmul %42, %53, %cst_28 {dimension_numbers = #tpu.dot_dimension_numbers<[1], [0], [0], [1], [0, 0, 1, 1], [], []>} : vector<32x32xf32>, vector<32x8xf32>, vector<32x8xf32> -> vector<32x8xf32>
    %c0_29 = arith.constant 0 : index
    %c1_30 = arith.constant 1 : index
    %c0_31 = arith.constant 0 : index
    %c0_32 = arith.constant 0 : index
    %c0_33 = arith.constant 0 : index
    %55 = vector.load %arg5[%c0_29, %c1_30, %c0_31, %c0_32, %c0_33] : memref<2x3x4x1x8xf32, #tpu.memory_space<vmem>>, vector<1x1x1x1x8xf32>
    %56 = vector.shape_cast %55 : vector<1x1x1x1x8xf32> to vector<1x8xf32>
    %57 = vector.broadcast %56 : vector<1x8xf32> to vector<32x8xf32>
    %58 = arith.addf %54, %57 : vector<32x8xf32>
    %59 = vector.shape_cast %58 : vector<32x8xf32> to vector<2x16x8xf32>
    %c0_34 = arith.constant 0 : index
    %c2 = arith.constant 2 : index
    %c0_35 = arith.constant 0 : index
    %c0_36 = arith.constant 0 : index
    %c0_37 = arith.constant 0 : index
    %60 = vector.load %arg4[%c0_34, %c2, %c0_35, %c0_36, %c0_37] : memref<2x3x4x32x8xf32, #tpu.memory_space<vmem>>, vector<1x1x1x32x8xf32>
    %61 = vector.shape_cast %60 : vector<1x1x1x32x8xf32> to vector<32x8xf32>
    %cst_38 = arith.constant dense<0.000000e+00> : vector<32x8xf32>
    %62 = tpu.matmul %42, %61, %cst_38 {dimension_numbers = #tpu.dot_dimension_numbers<[1], [0], [0], [1], [0, 0, 1, 1], [], []>} : vector<32x32xf32>, vector<32x8xf32>, vector<32x8xf32> -> vector<32x8xf32>
    %c0_39 = arith.constant 0 : index
    %c2_40 = arith.constant 2 : index
    %c0_41 = arith.constant 0 : index
    %c0_42 = arith.constant 0 : index
    %c0_43 = arith.constant 0 : index
    %63 = vector.load %arg5[%c0_39, %c2_40, %c0_41, %c0_42, %c0_43] : memref<2x3x4x1x8xf32, #tpu.memory_space<vmem>>, vector<1x1x1x1x8xf32>
    %64 = vector.shape_cast %63 : vector<1x1x1x1x8xf32> to vector<1x8xf32>
    %65 = vector.broadcast %64 : vector<1x8xf32> to vector<32x8xf32>
    %66 = arith.addf %62, %65 : vector<32x8xf32>
    %67 = vector.shape_cast %66 : vector<32x8xf32> to vector<2x16x8xf32>
    "tpu.trace_start"() <{level = 10 : i32, message = "bqd,bkd->bqk"}> : () -> ()
    %cst_44 = arith.constant dense<0.000000e+00> : vector<2x16x16xf32>
    %68 = tpu.matmul %51, %59, %cst_44 {dimension_numbers = #tpu.dot_dimension_numbers<[2], [2], [1], [1], [0, 0, 0, 1, 1, 1], [0], [0]>} : vector<2x16x8xf32>, vector<2x16x8xf32>, vector<2x16x16xf32> -> vector<2x16x16xf32>
    "tpu.trace_stop"() : () -> ()
    %cst_45 = arith.constant dense<0xFF800000> : vector<2x16xf32>
    %69 = vector.multi_reduction <maximumf>, %68, %cst_45 [2] : vector<2x16x16xf32> to vector<2x16xf32>
    %70 = vector.shape_cast %69 : vector<2x16xf32> to vector<2x16x1xf32>
    %71 = vector.broadcast %70 : vector<2x16x1xf32> to vector<2x16x16xf32>
    %72 = arith.subf %68, %71 : vector<2x16x16xf32>
    %73 = math.exp %72 : vector<2x16x16xf32>
    %cst_46 = arith.constant dense<0.000000e+00> : vector<2x16xf32>
    %74 = vector.multi_reduction <add>, %73, %cst_46 [2] : vector<2x16x16xf32> to vector<2x16xf32>
    %75 = vector.shape_cast %74 : vector<2x16xf32> to vector<2x16x1xf32>
    %76 = tpu.reciprocal %75 {approx = true} : vector<2x16x1xf32> -> vector<2x16x1xf32>
    %77 = vector.broadcast %76 : vector<2x16x1xf32> to vector<2x16x16xf32>
    %78 = arith.mulf %73, %77 : vector<2x16x16xf32>
    "tpu.trace_start"() <{level = 10 : i32, message = "bqk,bkd->bqd"}> : () -> ()
    %cst_47 = arith.constant dense<0.000000e+00> : vector<2x16x8xf32>
    %79 = tpu.matmul %78, %67, %cst_47 {dimension_numbers = #tpu.dot_dimension_numbers<[2], [1], [1], [2], [0, 0, 0, 1, 1, 2], [0], [0]>} : vector<2x16x16xf32>, vector<2x16x8xf32>, vector<2x16x8xf32> -> vector<2x16x8xf32>
    "tpu.trace_stop"() : () -> ()
    %80 = vector.shape_cast %79 : vector<2x16x8xf32> to vector<32x8xf32>
    %c0_48 = arith.constant 0 : index
    %c0_49 = arith.constant 0 : index
    %c0_50 = arith.constant 0 : index
    %c0_51 = arith.constant 0 : index
    %81 = vector.load %arg6[%c0_48, %c0_49, %c0_50, %c0_51] : memref<2x4x8x32xf32, #tpu.memory_space<vmem>>, vector<1x1x8x32xf32>
    %82 = vector.shape_cast %81 : vector<1x1x8x32xf32> to vector<8x32xf32>
    %cst_52 = arith.constant dense<0.000000e+00> : vector<32x32xf32>
    %83 = tpu.matmul %80, %82, %cst_52 {dimension_numbers = #tpu.dot_dimension_numbers<[1], [0], [0], [1], [0, 0, 1, 1], [], []>} : vector<32x8xf32>, vector<8x32xf32>, vector<32x32xf32> -> vector<32x32xf32>
    %84 = arith.addf %43, %83 : vector<32x32xf32>
    %c0_53 = arith.constant 0 : index
    %c0_54 = arith.constant 0 : index
    %c1_55 = arith.constant 1 : index
    %c0_56 = arith.constant 0 : index
    %c0_57 = arith.constant 0 : index
    %85 = vector.load %arg4[%c0_53, %c0_54, %c1_55, %c0_56, %c0_57] : memref<2x3x4x32x8xf32, #tpu.memory_space<vmem>>, vector<1x1x1x32x8xf32>
    %86 = vector.shape_cast %85 : vector<1x1x1x32x8xf32> to vector<32x8xf32>
    %cst_58 = arith.constant dense<0.000000e+00> : vector<32x8xf32>
    %87 = tpu.matmul %42, %86, %cst_58 {dimension_numbers = #tpu.dot_dimension_numbers<[1], [0], [0], [1], [0, 0, 1, 1], [], []>} : vector<32x32xf32>, vector<32x8xf32>, vector<32x8xf32> -> vector<32x8xf32>
    %c0_59 = arith.constant 0 : index
    %c0_60 = arith.constant 0 : index
    %c1_61 = arith.constant 1 : index
    %c0_62 = arith.constant 0 : index
    %c0_63 = arith.constant 0 : index
    %88 = vector.load %arg5[%c0_59, %c0_60, %c1_61, %c0_62, %c0_63] : memref<2x3x4x1x8xf32, #tpu.memory_space<vmem>>, vector<1x1x1x1x8xf32>
    %89 = vector.shape_cast %88 : vector<1x1x1x1x8xf32> to vector<1x8xf32>
    %90 = vector.broadcast %89 : vector<1x8xf32> to vector<32x8xf32>
    %91 = arith.addf %87, %90 : vector<32x8xf32>
    %92 = vector.shape_cast %91 : vector<32x8xf32> to vector<2x16x8xf32>
    %c0_64 = arith.constant 0 : index
    %c1_65 = arith.constant 1 : index
    %c1_66 = arith.constant 1 : index
    %c0_67 = arith.constant 0 : index
    %c0_68 = arith.constant 0 : index
    %93 = vector.load %arg4[%c0_64, %c1_65, %c1_66, %c0_67, %c0_68] : memref<2x3x4x32x8xf32, #tpu.memory_space<vmem>>, vector<1x1x1x32x8xf32>
    %94 = vector.shape_cast %93 : vector<1x1x1x32x8xf32> to vector<32x8xf32>
    %cst_69 = arith.constant dense<0.000000e+00> : vector<32x8xf32>
    %95 = tpu.matmul %42, %94, %cst_69 {dimension_numbers = #tpu.dot_dimension_numbers<[1], [0], [0], [1], [0, 0, 1, 1], [], []>} : vector<32x32xf32>, vector<32x8xf32>, vector<32x8xf32> -> vector<32x8xf32>
    %c0_70 = arith.constant 0 : index
    %c1_71 = arith.constant 1 : index
    %c1_72 = arith.constant 1 : index
    %c0_73 = arith.constant 0 : index
    %c0_74 = arith.constant 0 : index
    %96 = vector.load %arg5[%c0_70, %c1_71, %c1_72, %c0_73, %c0_74] : memref<2x3x4x1x8xf32, #tpu.memory_space<vmem>>, vector<1x1x1x1x8xf32>
    %97 = vector.shape_cast %96 : vector<1x1x1x1x8xf32> to vector<1x8xf32>
    %98 = vector.broadcast %97 : vector<1x8xf32> to vector<32x8xf32>
    %99 = arith.addf %95, %98 : vector<32x8xf32>
    %100 = vector.shape_cast %99 : vector<32x8xf32> to vector<2x16x8xf32>
    %c0_75 = arith.constant 0 : index
    %c2_76 = arith.constant 2 : index
    %c1_77 = arith.constant 1 : index
    %c0_78 = arith.constant 0 : index
    %c0_79 = arith.constant 0 : index
    %101 = vector.load %arg4[%c0_75, %c2_76, %c1_77, %c0_78, %c0_79] : memref<2x3x4x32x8xf32, #tpu.memory_space<vmem>>, vector<1x1x1x32x8xf32>
    %102 = vector.shape_cast %101 : vector<1x1x1x32x8xf32> to vector<32x8xf32>
    %cst_80 = arith.constant dense<0.000000e+00> : vector<32x8xf32>
    %103 = tpu.matmul %42, %102, %cst_80 {dimension_numbers = #tpu.dot_dimension_numbers<[1], [0], [0], [1], [0, 0, 1, 1], [], []>} : vector<32x32xf32>, vector<32x8xf32>, vector<32x8xf32> -> vector<32x8xf32>
    %c0_81 = arith.constant 0 : index
    %c2_82 = arith.constant 2 : index
    %c1_83 = arith.constant 1 : index
    %c0_84 = arith.constant 0 : index
    %c0_85 = arith.constant 0 : index
    %104 = vector.load %arg5[%c0_81, %c2_82, %c1_83, %c0_84, %c0_85] : memref<2x3x4x1x8xf32, #tpu.memory_space<vmem>>, vector<1x1x1x1x8xf32>
    %105 = vector.shape_cast %104 : vector<1x1x1x1x8xf32> to vector<1x8xf32>
    %106 = vector.broadcast %105 : vector<1x8xf32> to vector<32x8xf32>
    %107 = arith.addf %103, %106 : vector<32x8xf32>
    %108 = vector.shape_cast %107 : vector<32x8xf32> to vector<2x16x8xf32>
    "tpu.trace_start"() <{level = 10 : i32, message = "bqd,bkd->bqk"}> : () -> ()
    %cst_86 = arith.constant dense<0.000000e+00> : vector<2x16x16xf32>
    %109 = tpu.matmul %92, %100, %cst_86 {dimension_numbers = #tpu.dot_dimension_numbers<[2], [2], [1], [1], [0, 0, 0, 1, 1, 1], [0], [0]>} : vector<2x16x8xf32>, vector<2x16x8xf32>, vector<2x16x16xf32> -> vector<2x16x16xf32>
    "tpu.trace_stop"() : () -> ()
    %cst_87 = arith.constant dense<0xFF800000> : vector<2x16xf32>
    %110 = vector.multi_reduction <maximumf>, %109, %cst_87 [2] : vector<2x16x16xf32> to vector<2x16xf32>
    %111 = vector.shape_cast %110 : vector<2x16xf32> to vector<2x16x1xf32>
    %112 = vector.broadcast %111 : vector<2x16x1xf32> to vector<2x16x16xf32>
    %113 = arith.subf %109, %112 : vector<2x16x16xf32>
    %114 = math.exp %113 : vector<2x16x16xf32>
    %cst_88 = arith.constant dense<0.000000e+00> : vector<2x16xf32>
    %115 = vector.multi_reduction <add>, %114, %cst_88 [2] : vector<2x16x16xf32> to vector<2x16xf32>
    %116 = vector.shape_cast %115 : vector<2x16xf32> to vector<2x16x1xf32>
    %117 = tpu.reciprocal %116 {approx = true} : vector<2x16x1xf32> -> vector<2x16x1xf32>
    %118 = vector.broadcast %117 : vector<2x16x1xf32> to vector<2x16x16xf32>
    %119 = arith.mulf %114, %118 : vector<2x16x16xf32>
    "tpu.trace_start"() <{level = 10 : i32, message = "bqk,bkd->bqd"}> : () -> ()
    %cst_89 = arith.constant dense<0.000000e+00> : vector<2x16x8xf32>
    %120 = tpu.matmul %119, %108, %cst_89 {dimension_numbers = #tpu.dot_dimension_numbers<[2], [1], [1], [2], [0, 0, 0, 1, 1, 2], [0], [0]>} : vector<2x16x16xf32>, vector<2x16x8xf32>, vector<2x16x8xf32> -> vector<2x16x8xf32>
    "tpu.trace_stop"() : () -> ()
    %121 = vector.shape_cast %120 : vector<2x16x8xf32> to vector<32x8xf32>
    %c0_90 = arith.constant 0 : index
    %c1_91 = arith.constant 1 : index
    %c0_92 = arith.constant 0 : index
    %c0_93 = arith.constant 0 : index
    %122 = vector.load %arg6[%c0_90, %c1_91, %c0_92, %c0_93] : memref<2x4x8x32xf32, #tpu.memory_space<vmem>>, vector<1x1x8x32xf32>
    %123 = vector.shape_cast %122 : vector<1x1x8x32xf32> to vector<8x32xf32>
    %cst_94 = arith.constant dense<0.000000e+00> : vector<32x32xf32>
    %124 = tpu.matmul %121, %123, %cst_94 {dimension_numbers = #tpu.dot_dimension_numbers<[1], [0], [0], [1], [0, 0, 1, 1], [], []>} : vector<32x8xf32>, vector<8x32xf32>, vector<32x32xf32> -> vector<32x32xf32>
    %125 = arith.addf %84, %124 : vector<32x32xf32>
    %c0_95 = arith.constant 0 : index
    %c0_96 = arith.constant 0 : index
    %c2_97 = arith.constant 2 : index
    %c0_98 = arith.constant 0 : index
    %c0_99 = arith.constant 0 : index
    %126 = vector.load %arg4[%c0_95, %c0_96, %c2_97, %c0_98, %c0_99] : memref<2x3x4x32x8xf32, #tpu.memory_space<vmem>>, vector<1x1x1x32x8xf32>
    %127 = vector.shape_cast %126 : vector<1x1x1x32x8xf32> to vector<32x8xf32>
    %cst_100 = arith.constant dense<0.000000e+00> : vector<32x8xf32>
    %128 = tpu.matmul %42, %127, %cst_100 {dimension_numbers = #tpu.dot_dimension_numbers<[1], [0], [0], [1], [0, 0, 1, 1], [], []>} : vector<32x32xf32>, vector<32x8xf32>, vector<32x8xf32> -> vector<32x8xf32>
    %c0_101 = arith.constant 0 : index
    %c0_102 = arith.constant 0 : index
    %c2_103 = arith.constant 2 : index
    %c0_104 = arith.constant 0 : index
    %c0_105 = arith.constant 0 : index
    %129 = vector.load %arg5[%c0_101, %c0_102, %c2_103, %c0_104, %c0_105] : memref<2x3x4x1x8xf32, #tpu.memory_space<vmem>>, vector<1x1x1x1x8xf32>
    %130 = vector.shape_cast %129 : vector<1x1x1x1x8xf32> to vector<1x8xf32>
    %131 = vector.broadcast %130 : vector<1x8xf32> to vector<32x8xf32>
    %132 = arith.addf %128, %131 : vector<32x8xf32>
    %133 = vector.shape_cast %132 : vector<32x8xf32> to vector<2x16x8xf32>
    %c0_106 = arith.constant 0 : index
    %c1_107 = arith.constant 1 : index
    %c2_108 = arith.constant 2 : index
    %c0_109 = arith.constant 0 : index
    %c0_110 = arith.constant 0 : index
    %134 = vector.load %arg4[%c0_106, %c1_107, %c2_108, %c0_109, %c0_110] : memref<2x3x4x32x8xf32, #tpu.memory_space<vmem>>, vector<1x1x1x32x8xf32>
    %135 = vector.shape_cast %134 : vector<1x1x1x32x8xf32> to vector<32x8xf32>
    %cst_111 = arith.constant dense<0.000000e+00> : vector<32x8xf32>
    %136 = tpu.matmul %42, %135, %cst_111 {dimension_numbers = #tpu.dot_dimension_numbers<[1], [0], [0], [1], [0, 0, 1, 1], [], []>} : vector<32x32xf32>, vector<32x8xf32>, vector<32x8xf32> -> vector<32x8xf32>
    %c0_112 = arith.constant 0 : index
    %c1_113 = arith.constant 1 : index
    %c2_114 = arith.constant 2 : index
    %c0_115 = arith.constant 0 : index
    %c0_116 = arith.constant 0 : index
    %137 = vector.load %arg5[%c0_112, %c1_113, %c2_114, %c0_115, %c0_116] : memref<2x3x4x1x8xf32, #tpu.memory_space<vmem>>, vector<1x1x1x1x8xf32>
    %138 = vector.shape_cast %137 : vector<1x1x1x1x8xf32> to vector<1x8xf32>
    %139 = vector.broadcast %138 : vector<1x8xf32> to vector<32x8xf32>
    %140 = arith.addf %136, %139 : vector<32x8xf32>
    %141 = vector.shape_cast %140 : vector<32x8xf32> to vector<2x16x8xf32>
    %c0_117 = arith.constant 0 : index
    %c2_118 = arith.constant 2 : index
    %c2_119 = arith.constant 2 : index
    %c0_120 = arith.constant 0 : index
    %c0_121 = arith.constant 0 : index
    %142 = vector.load %arg4[%c0_117, %c2_118, %c2_119, %c0_120, %c0_121] : memref<2x3x4x32x8xf32, #tpu.memory_space<vmem>>, vector<1x1x1x32x8xf32>
    %143 = vector.shape_cast %142 : vector<1x1x1x32x8xf32> to vector<32x8xf32>
    %cst_122 = arith.constant dense<0.000000e+00> : vector<32x8xf32>
    %144 = tpu.matmul %42, %143, %cst_122 {dimension_numbers = #tpu.dot_dimension_numbers<[1], [0], [0], [1], [0, 0, 1, 1], [], []>} : vector<32x32xf32>, vector<32x8xf32>, vector<32x8xf32> -> vector<32x8xf32>
    %c0_123 = arith.constant 0 : index
    %c2_124 = arith.constant 2 : index
    %c2_125 = arith.constant 2 : index
    %c0_126 = arith.constant 0 : index
    %c0_127 = arith.constant 0 : index
    %145 = vector.load %arg5[%c0_123, %c2_124, %c2_125, %c0_126, %c0_127] : memref<2x3x4x1x8xf32, #tpu.memory_space<vmem>>, vector<1x1x1x1x8xf32>
    %146 = vector.shape_cast %145 : vector<1x1x1x1x8xf32> to vector<1x8xf32>
    %147 = vector.broadcast %146 : vector<1x8xf32> to vector<32x8xf32>
    %148 = arith.addf %144, %147 : vector<32x8xf32>
    %149 = vector.shape_cast %148 : vector<32x8xf32> to vector<2x16x8xf32>
    "tpu.trace_start"() <{level = 10 : i32, message = "bqd,bkd->bqk"}> : () -> ()
    %cst_128 = arith.constant dense<0.000000e+00> : vector<2x16x16xf32>
    %150 = tpu.matmul %133, %141, %cst_128 {dimension_numbers = #tpu.dot_dimension_numbers<[2], [2], [1], [1], [0, 0, 0, 1, 1, 1], [0], [0]>} : vector<2x16x8xf32>, vector<2x16x8xf32>, vector<2x16x16xf32> -> vector<2x16x16xf32>
    "tpu.trace_stop"() : () -> ()
    %cst_129 = arith.constant dense<0xFF800000> : vector<2x16xf32>
    %151 = vector.multi_reduction <maximumf>, %150, %cst_129 [2] : vector<2x16x16xf32> to vector<2x16xf32>
    %152 = vector.shape_cast %151 : vector<2x16xf32> to vector<2x16x1xf32>
    %153 = vector.broadcast %152 : vector<2x16x1xf32> to vector<2x16x16xf32>
    %154 = arith.subf %150, %153 : vector<2x16x16xf32>
    %155 = math.exp %154 : vector<2x16x16xf32>
    %cst_130 = arith.constant dense<0.000000e+00> : vector<2x16xf32>
    %156 = vector.multi_reduction <add>, %155, %cst_130 [2] : vector<2x16x16xf32> to vector<2x16xf32>
    %157 = vector.shape_cast %156 : vector<2x16xf32> to vector<2x16x1xf32>
    %158 = tpu.reciprocal %157 {approx = true} : vector<2x16x1xf32> -> vector<2x16x1xf32>
    %159 = vector.broadcast %158 : vector<2x16x1xf32> to vector<2x16x16xf32>
    %160 = arith.mulf %155, %159 : vector<2x16x16xf32>
    "tpu.trace_start"() <{level = 10 : i32, message = "bqk,bkd->bqd"}> : () -> ()
    %cst_131 = arith.constant dense<0.000000e+00> : vector<2x16x8xf32>
    %161 = tpu.matmul %160, %149, %cst_131 {dimension_numbers = #tpu.dot_dimension_numbers<[2], [1], [1], [2], [0, 0, 0, 1, 1, 2], [0], [0]>} : vector<2x16x16xf32>, vector<2x16x8xf32>, vector<2x16x8xf32> -> vector<2x16x8xf32>
    "tpu.trace_stop"() : () -> ()
    %162 = vector.shape_cast %161 : vector<2x16x8xf32> to vector<32x8xf32>
    %c0_132 = arith.constant 0 : index
    %c2_133 = arith.constant 2 : index
    %c0_134 = arith.constant 0 : index
    %c0_135 = arith.constant 0 : index
    %163 = vector.load %arg6[%c0_132, %c2_133, %c0_134, %c0_135] : memref<2x4x8x32xf32, #tpu.memory_space<vmem>>, vector<1x1x8x32xf32>
    %164 = vector.shape_cast %163 : vector<1x1x8x32xf32> to vector<8x32xf32>
    %cst_136 = arith.constant dense<0.000000e+00> : vector<32x32xf32>
    %165 = tpu.matmul %162, %164, %cst_136 {dimension_numbers = #tpu.dot_dimension_numbers<[1], [0], [0], [1], [0, 0, 1, 1], [], []>} : vector<32x8xf32>, vector<8x32xf32>, vector<32x32xf32> -> vector<32x32xf32>
    %166 = arith.addf %125, %165 : vector<32x32xf32>
    %c0_137 = arith.constant 0 : index
    %c0_138 = arith.constant 0 : index
    %c3 = arith.constant 3 : index
    %c0_139 = arith.constant 0 : index
    %c0_140 = arith.constant 0 : index
    %167 = vector.load %arg4[%c0_137, %c0_138, %c3, %c0_139, %c0_140] : memref<2x3x4x32x8xf32, #tpu.memory_space<vmem>>, vector<1x1x1x32x8xf32>
    %168 = vector.shape_cast %167 : vector<1x1x1x32x8xf32> to vector<32x8xf32>
    %cst_141 = arith.constant dense<0.000000e+00> : vector<32x8xf32>
    %169 = tpu.matmul %42, %168, %cst_141 {dimension_numbers = #tpu.dot_dimension_numbers<[1], [0], [0], [1], [0, 0, 1, 1], [], []>} : vector<32x32xf32>, vector<32x8xf32>, vector<32x8xf32> -> vector<32x8xf32>
    %c0_142 = arith.constant 0 : index
    %c0_143 = arith.constant 0 : index
    %c3_144 = arith.constant 3 : index
    %c0_145 = arith.constant 0 : index
    %c0_146 = arith.constant 0 : index
    %170 = vector.load %arg5[%c0_142, %c0_143, %c3_144, %c0_145, %c0_146] : memref<2x3x4x1x8xf32, #tpu.memory_space<vmem>>, vector<1x1x1x1x8xf32>
    %171 = vector.shape_cast %170 : vector<1x1x1x1x8xf32> to vector<1x8xf32>
    %172 = vector.broadcast %171 : vector<1x8xf32> to vector<32x8xf32>
    %173 = arith.addf %169, %172 : vector<32x8xf32>
    %174 = vector.shape_cast %173 : vector<32x8xf32> to vector<2x16x8xf32>
    %c0_147 = arith.constant 0 : index
    %c1_148 = arith.constant 1 : index
    %c3_149 = arith.constant 3 : index
    %c0_150 = arith.constant 0 : index
    %c0_151 = arith.constant 0 : index
    %175 = vector.load %arg4[%c0_147, %c1_148, %c3_149, %c0_150, %c0_151] : memref<2x3x4x32x8xf32, #tpu.memory_space<vmem>>, vector<1x1x1x32x8xf32>
    %176 = vector.shape_cast %175 : vector<1x1x1x32x8xf32> to vector<32x8xf32>
    %cst_152 = arith.constant dense<0.000000e+00> : vector<32x8xf32>
    %177 = tpu.matmul %42, %176, %cst_152 {dimension_numbers = #tpu.dot_dimension_numbers<[1], [0], [0], [1], [0, 0, 1, 1], [], []>} : vector<32x32xf32>, vector<32x8xf32>, vector<32x8xf32> -> vector<32x8xf32>
    %c0_153 = arith.constant 0 : index
    %c1_154 = arith.constant 1 : index
    %c3_155 = arith.constant 3 : index
    %c0_156 = arith.constant 0 : index
    %c0_157 = arith.constant 0 : index
    %178 = vector.load %arg5[%c0_153, %c1_154, %c3_155, %c0_156, %c0_157] : memref<2x3x4x1x8xf32, #tpu.memory_space<vmem>>, vector<1x1x1x1x8xf32>
    %179 = vector.shape_cast %178 : vector<1x1x1x1x8xf32> to vector<1x8xf32>
    %180 = vector.broadcast %179 : vector<1x8xf32> to vector<32x8xf32>
    %181 = arith.addf %177, %180 : vector<32x8xf32>
    %182 = vector.shape_cast %181 : vector<32x8xf32> to vector<2x16x8xf32>
    %c0_158 = arith.constant 0 : index
    %c2_159 = arith.constant 2 : index
    %c3_160 = arith.constant 3 : index
    %c0_161 = arith.constant 0 : index
    %c0_162 = arith.constant 0 : index
    %183 = vector.load %arg4[%c0_158, %c2_159, %c3_160, %c0_161, %c0_162] : memref<2x3x4x32x8xf32, #tpu.memory_space<vmem>>, vector<1x1x1x32x8xf32>
    %184 = vector.shape_cast %183 : vector<1x1x1x32x8xf32> to vector<32x8xf32>
    %cst_163 = arith.constant dense<0.000000e+00> : vector<32x8xf32>
    %185 = tpu.matmul %42, %184, %cst_163 {dimension_numbers = #tpu.dot_dimension_numbers<[1], [0], [0], [1], [0, 0, 1, 1], [], []>} : vector<32x32xf32>, vector<32x8xf32>, vector<32x8xf32> -> vector<32x8xf32>
    %c0_164 = arith.constant 0 : index
    %c2_165 = arith.constant 2 : index
    %c3_166 = arith.constant 3 : index
    %c0_167 = arith.constant 0 : index
    %c0_168 = arith.constant 0 : index
    %186 = vector.load %arg5[%c0_164, %c2_165, %c3_166, %c0_167, %c0_168] : memref<2x3x4x1x8xf32, #tpu.memory_space<vmem>>, vector<1x1x1x1x8xf32>
    %187 = vector.shape_cast %186 : vector<1x1x1x1x8xf32> to vector<1x8xf32>
    %188 = vector.broadcast %187 : vector<1x8xf32> to vector<32x8xf32>
    %189 = arith.addf %185, %188 : vector<32x8xf32>
    %190 = vector.shape_cast %189 : vector<32x8xf32> to vector<2x16x8xf32>
    "tpu.trace_start"() <{level = 10 : i32, message = "bqd,bkd->bqk"}> : () -> ()
    %cst_169 = arith.constant dense<0.000000e+00> : vector<2x16x16xf32>
    %191 = tpu.matmul %174, %182, %cst_169 {dimension_numbers = #tpu.dot_dimension_numbers<[2], [2], [1], [1], [0, 0, 0, 1, 1, 1], [0], [0]>} : vector<2x16x8xf32>, vector<2x16x8xf32>, vector<2x16x16xf32> -> vector<2x16x16xf32>
    "tpu.trace_stop"() : () -> ()
    %cst_170 = arith.constant dense<0xFF800000> : vector<2x16xf32>
    %192 = vector.multi_reduction <maximumf>, %191, %cst_170 [2] : vector<2x16x16xf32> to vector<2x16xf32>
    %193 = vector.shape_cast %192 : vector<2x16xf32> to vector<2x16x1xf32>
    %194 = vector.broadcast %193 : vector<2x16x1xf32> to vector<2x16x16xf32>
    %195 = arith.subf %191, %194 : vector<2x16x16xf32>
    %196 = math.exp %195 : vector<2x16x16xf32>
    %cst_171 = arith.constant dense<0.000000e+00> : vector<2x16xf32>
    %197 = vector.multi_reduction <add>, %196, %cst_171 [2] : vector<2x16x16xf32> to vector<2x16xf32>
    %198 = vector.shape_cast %197 : vector<2x16xf32> to vector<2x16x1xf32>
    %199 = tpu.reciprocal %198 {approx = true} : vector<2x16x1xf32> -> vector<2x16x1xf32>
    %200 = vector.broadcast %199 : vector<2x16x1xf32> to vector<2x16x16xf32>
    %201 = arith.mulf %196, %200 : vector<2x16x16xf32>
    "tpu.trace_start"() <{level = 10 : i32, message = "bqk,bkd->bqd"}> : () -> ()
    %cst_172 = arith.constant dense<0.000000e+00> : vector<2x16x8xf32>
    %202 = tpu.matmul %201, %190, %cst_172 {dimension_numbers = #tpu.dot_dimension_numbers<[2], [1], [1], [2], [0, 0, 0, 1, 1, 2], [0], [0]>} : vector<2x16x16xf32>, vector<2x16x8xf32>, vector<2x16x8xf32> -> vector<2x16x8xf32>
    "tpu.trace_stop"() : () -> ()
    %203 = vector.shape_cast %202 : vector<2x16x8xf32> to vector<32x8xf32>
    %c0_173 = arith.constant 0 : index
    %c3_174 = arith.constant 3 : index
    %c0_175 = arith.constant 0 : index
    %c0_176 = arith.constant 0 : index
    %204 = vector.load %arg6[%c0_173, %c3_174, %c0_175, %c0_176] : memref<2x4x8x32xf32, #tpu.memory_space<vmem>>, vector<1x1x8x32xf32>
    %205 = vector.shape_cast %204 : vector<1x1x8x32xf32> to vector<8x32xf32>
    %cst_177 = arith.constant dense<0.000000e+00> : vector<32x32xf32>
    %206 = tpu.matmul %203, %205, %cst_177 {dimension_numbers = #tpu.dot_dimension_numbers<[1], [0], [0], [1], [0, 0, 1, 1], [], []>} : vector<32x8xf32>, vector<8x32xf32>, vector<32x32xf32> -> vector<32x32xf32>
    %207 = arith.addf %166, %206 : vector<32x32xf32>
    %208 = arith.addf %14, %207 : vector<32x32xf32>
    %209 = vector.broadcast %19 : vector<1x32xf32> to vector<32x32xf32>
    %210 = arith.addf %208, %209 : vector<32x32xf32>
    %cst_178 = arith.constant dense<0.000000e+00> : vector<32xf32>
    %211 = vector.multi_reduction <add>, %210, %cst_178 [1] : vector<32x32xf32> to vector<32xf32>
    %212 = vector.shape_cast %211 : vector<32xf32> to vector<32x1xf32>
    %cst_179 = arith.constant 3.200000e+01 : f32
    %213 = vector.broadcast %cst_179 : f32 to vector<32x1xf32>
    %214 = arith.divf %212, %213 : vector<32x1xf32>
    %215 = vector.broadcast %214 : vector<32x1xf32> to vector<32x32xf32>
    %216 = arith.subf %210, %215 : vector<32x32xf32>
    %217 = arith.mulf %216, %216 : vector<32x32xf32>
    %cst_180 = arith.constant dense<0.000000e+00> : vector<32xf32>
    %218 = vector.multi_reduction <add>, %217, %cst_180 [1] : vector<32x32xf32> to vector<32xf32>
    %219 = vector.shape_cast %218 : vector<32xf32> to vector<32x1xf32>
    %cst_181 = arith.constant 3.200000e+01 : f32
    %220 = vector.broadcast %cst_181 : f32 to vector<32x1xf32>
    %221 = arith.divf %219, %220 : vector<32x1xf32>
    %222 = vector.broadcast %214 : vector<32x1xf32> to vector<32x32xf32>
    %223 = arith.subf %210, %222 : vector<32x32xf32>
    %cst_182 = arith.constant 9.99999974E-6 : f32
    %224 = vector.broadcast %cst_182 : f32 to vector<32x1xf32>
    %225 = arith.addf %221, %224 : vector<32x1xf32>
    %226 = math.rsqrt %225 : vector<32x1xf32>
    %227 = vector.broadcast %226 : vector<32x1xf32> to vector<32x32xf32>
    %228 = arith.mulf %223, %227 : vector<32x32xf32>
    %229 = vector.broadcast %17 : vector<1x32xf32> to vector<32x32xf32>
    %230 = arith.mulf %228, %229 : vector<32x32xf32>
    %231 = vector.broadcast %18 : vector<1x32xf32> to vector<32x32xf32>
    %232 = arith.addf %230, %231 : vector<32x32xf32>
    %c0_183 = arith.constant 0 : index
    %c0_184 = arith.constant 0 : index
    %c0_185 = arith.constant 0 : index
    %233 = vector.load %arg7[%c0_183, %c0_184, %c0_185] : memref<2x32x128xf32, #tpu.memory_space<vmem>>, vector<1x32x128xf32>
    %234 = vector.shape_cast %233 : vector<1x32x128xf32> to vector<32x128xf32>
    %cst_186 = arith.constant dense<0.000000e+00> : vector<32x128xf32>
    %235 = tpu.matmul %232, %234, %cst_186 {dimension_numbers = #tpu.dot_dimension_numbers<[1], [0], [0], [1], [0, 0, 1, 1], [], []>} : vector<32x32xf32>, vector<32x128xf32>, vector<32x128xf32> -> vector<32x128xf32>
    %c0_187 = arith.constant 0 : index
    %c0_188 = arith.constant 0 : index
    %c0_189 = arith.constant 0 : index
    %236 = vector.load %arg8[%c0_187, %c0_188, %c0_189] : memref<2x1x128xf32, #tpu.memory_space<vmem>>, vector<1x1x128xf32>
    %237 = vector.shape_cast %236 : vector<1x1x128xf32> to vector<1x128xf32>
    %238 = vector.broadcast %237 : vector<1x128xf32> to vector<32x128xf32>
    %239 = arith.addf %235, %238 : vector<32x128xf32>
    %240 = arith.mulf %239, %239 : vector<32x128xf32>
    %241 = arith.mulf %239, %240 : vector<32x128xf32>
    %cst_190 = arith.constant 4.471500e-02 : f32
    %242 = vector.broadcast %cst_190 : f32 to vector<32x128xf32>
    %243 = arith.mulf %242, %241 : vector<32x128xf32>
    %244 = arith.addf %239, %243 : vector<32x128xf32>
    %cst_191 = arith.constant 0.797884583 : f32
    %245 = vector.broadcast %cst_191 : f32 to vector<32x128xf32>
    %246 = arith.mulf %245, %244 : vector<32x128xf32>
    %247 = math.tanh %246 : vector<32x128xf32>
    %cst_192 = arith.constant 1.000000e+00 : f32
    %248 = vector.broadcast %cst_192 : f32 to vector<32x128xf32>
    %249 = arith.addf %248, %247 : vector<32x128xf32>
    %cst_193 = arith.constant 5.000000e-01 : f32
    %250 = vector.broadcast %cst_193 : f32 to vector<32x128xf32>
    %251 = arith.mulf %250, %249 : vector<32x128xf32>
    %252 = arith.mulf %239, %251 : vector<32x128xf32>
    %c0_194 = arith.constant 0 : index
    %c0_195 = arith.constant 0 : index
    %c0_196 = arith.constant 0 : index
    %253 = vector.load %arg9[%c0_194, %c0_195, %c0_196] : memref<2x128x32xf32, #tpu.memory_space<vmem>>, vector<1x128x32xf32>
    %254 = vector.shape_cast %253 : vector<1x128x32xf32> to vector<128x32xf32>
    %cst_197 = arith.constant dense<0.000000e+00> : vector<32x32xf32>
    %255 = tpu.matmul %252, %254, %cst_197 {dimension_numbers = #tpu.dot_dimension_numbers<[1], [0], [0], [1], [0, 0, 1, 1], [], []>} : vector<32x128xf32>, vector<128x32xf32>, vector<32x32xf32> -> vector<32x32xf32>
    %256 = arith.addf %210, %255 : vector<32x32xf32>
    %257 = vector.broadcast %20 : vector<1x32xf32> to vector<32x32xf32>
    %258 = arith.addf %256, %257 : vector<32x32xf32>
    %259 = vector.extract_strided_slice %0 {offsets = [9, 0], sizes = [1, 32], strides = [1, 1]} : vector<15x32xf32> to vector<1x32xf32>
    %260 = vector.extract_strided_slice %0 {offsets = [10, 0], sizes = [1, 32], strides = [1, 1]} : vector<15x32xf32> to vector<1x32xf32>
    %261 = vector.extract_strided_slice %0 {offsets = [11, 0], sizes = [1, 32], strides = [1, 1]} : vector<15x32xf32> to vector<1x32xf32>
    %262 = vector.extract_strided_slice %0 {offsets = [12, 0], sizes = [1, 32], strides = [1, 1]} : vector<15x32xf32> to vector<1x32xf32>
    %263 = vector.extract_strided_slice %0 {offsets = [13, 0], sizes = [1, 32], strides = [1, 1]} : vector<15x32xf32> to vector<1x32xf32>
    %264 = vector.extract_strided_slice %0 {offsets = [14, 0], sizes = [1, 32], strides = [1, 1]} : vector<15x32xf32> to vector<1x32xf32>
    %cst_198 = arith.constant dense<0.000000e+00> : vector<32xf32>
    %265 = vector.multi_reduction <add>, %258, %cst_198 [1] : vector<32x32xf32> to vector<32xf32>
    %266 = vector.shape_cast %265 : vector<32xf32> to vector<32x1xf32>
    %cst_199 = arith.constant 3.200000e+01 : f32
    %267 = vector.broadcast %cst_199 : f32 to vector<32x1xf32>
    %268 = arith.divf %266, %267 : vector<32x1xf32>
    %269 = vector.broadcast %268 : vector<32x1xf32> to vector<32x32xf32>
    %270 = arith.subf %258, %269 : vector<32x32xf32>
    %271 = arith.mulf %270, %270 : vector<32x32xf32>
    %cst_200 = arith.constant dense<0.000000e+00> : vector<32xf32>
    %272 = vector.multi_reduction <add>, %271, %cst_200 [1] : vector<32x32xf32> to vector<32xf32>
    %273 = vector.shape_cast %272 : vector<32xf32> to vector<32x1xf32>
    %cst_201 = arith.constant 3.200000e+01 : f32
    %274 = vector.broadcast %cst_201 : f32 to vector<32x1xf32>
    %275 = arith.divf %273, %274 : vector<32x1xf32>
    %276 = vector.broadcast %268 : vector<32x1xf32> to vector<32x32xf32>
    %277 = arith.subf %258, %276 : vector<32x32xf32>
    %cst_202 = arith.constant 9.99999974E-6 : f32
    %278 = vector.broadcast %cst_202 : f32 to vector<32x1xf32>
    %279 = arith.addf %275, %278 : vector<32x1xf32>
    %280 = math.rsqrt %279 : vector<32x1xf32>
    %281 = vector.broadcast %280 : vector<32x1xf32> to vector<32x32xf32>
    %282 = arith.mulf %277, %281 : vector<32x32xf32>
    %283 = vector.broadcast %259 : vector<1x32xf32> to vector<32x32xf32>
    %284 = arith.mulf %282, %283 : vector<32x32xf32>
    %285 = vector.broadcast %260 : vector<1x32xf32> to vector<32x32xf32>
    %286 = arith.addf %284, %285 : vector<32x32xf32>
    %cst_203 = arith.constant 0.000000e+00 : f32
    %287 = vector.broadcast %cst_203 : f32 to vector<32x32xf32>
    %c1_204 = arith.constant 1 : index
    %c0_205 = arith.constant 0 : index
    %c0_206 = arith.constant 0 : index
    %c0_207 = arith.constant 0 : index
    %c0_208 = arith.constant 0 : index
    %288 = vector.load %arg4[%c1_204, %c0_205, %c0_206, %c0_207, %c0_208] : memref<2x3x4x32x8xf32, #tpu.memory_space<vmem>>, vector<1x1x1x32x8xf32>
    %289 = vector.shape_cast %288 : vector<1x1x1x32x8xf32> to vector<32x8xf32>
    %cst_209 = arith.constant dense<0.000000e+00> : vector<32x8xf32>
    %290 = tpu.matmul %286, %289, %cst_209 {dimension_numbers = #tpu.dot_dimension_numbers<[1], [0], [0], [1], [0, 0, 1, 1], [], []>} : vector<32x32xf32>, vector<32x8xf32>, vector<32x8xf32> -> vector<32x8xf32>
    %c1_210 = arith.constant 1 : index
    %c0_211 = arith.constant 0 : index
    %c0_212 = arith.constant 0 : index
    %c0_213 = arith.constant 0 : index
    %c0_214 = arith.constant 0 : index
    %291 = vector.load %arg5[%c1_210, %c0_211, %c0_212, %c0_213, %c0_214] : memref<2x3x4x1x8xf32, #tpu.memory_space<vmem>>, vector<1x1x1x1x8xf32>
    %292 = vector.shape_cast %291 : vector<1x1x1x1x8xf32> to vector<1x8xf32>
    %293 = vector.broadcast %292 : vector<1x8xf32> to vector<32x8xf32>
    %294 = arith.addf %290, %293 : vector<32x8xf32>
    %295 = vector.shape_cast %294 : vector<32x8xf32> to vector<2x16x8xf32>
    %c1_215 = arith.constant 1 : index
    %c1_216 = arith.constant 1 : index
    %c0_217 = arith.constant 0 : index
    %c0_218 = arith.constant 0 : index
    %c0_219 = arith.constant 0 : index
    %296 = vector.load %arg4[%c1_215, %c1_216, %c0_217, %c0_218, %c0_219] : memref<2x3x4x32x8xf32, #tpu.memory_space<vmem>>, vector<1x1x1x32x8xf32>
    %297 = vector.shape_cast %296 : vector<1x1x1x32x8xf32> to vector<32x8xf32>
    %cst_220 = arith.constant dense<0.000000e+00> : vector<32x8xf32>
    %298 = tpu.matmul %286, %297, %cst_220 {dimension_numbers = #tpu.dot_dimension_numbers<[1], [0], [0], [1], [0, 0, 1, 1], [], []>} : vector<32x32xf32>, vector<32x8xf32>, vector<32x8xf32> -> vector<32x8xf32>
    %c1_221 = arith.constant 1 : index
    %c1_222 = arith.constant 1 : index
    %c0_223 = arith.constant 0 : index
    %c0_224 = arith.constant 0 : index
    %c0_225 = arith.constant 0 : index
    %299 = vector.load %arg5[%c1_221, %c1_222, %c0_223, %c0_224, %c0_225] : memref<2x3x4x1x8xf32, #tpu.memory_space<vmem>>, vector<1x1x1x1x8xf32>
    %300 = vector.shape_cast %299 : vector<1x1x1x1x8xf32> to vector<1x8xf32>
    %301 = vector.broadcast %300 : vector<1x8xf32> to vector<32x8xf32>
    %302 = arith.addf %298, %301 : vector<32x8xf32>
    %303 = vector.shape_cast %302 : vector<32x8xf32> to vector<2x16x8xf32>
    %c1_226 = arith.constant 1 : index
    %c2_227 = arith.constant 2 : index
    %c0_228 = arith.constant 0 : index
    %c0_229 = arith.constant 0 : index
    %c0_230 = arith.constant 0 : index
    %304 = vector.load %arg4[%c1_226, %c2_227, %c0_228, %c0_229, %c0_230] : memref<2x3x4x32x8xf32, #tpu.memory_space<vmem>>, vector<1x1x1x32x8xf32>
    %305 = vector.shape_cast %304 : vector<1x1x1x32x8xf32> to vector<32x8xf32>
    %cst_231 = arith.constant dense<0.000000e+00> : vector<32x8xf32>
    %306 = tpu.matmul %286, %305, %cst_231 {dimension_numbers = #tpu.dot_dimension_numbers<[1], [0], [0], [1], [0, 0, 1, 1], [], []>} : vector<32x32xf32>, vector<32x8xf32>, vector<32x8xf32> -> vector<32x8xf32>
    %c1_232 = arith.constant 1 : index
    %c2_233 = arith.constant 2 : index
    %c0_234 = arith.constant 0 : index
    %c0_235 = arith.constant 0 : index
    %c0_236 = arith.constant 0 : index
    %307 = vector.load %arg5[%c1_232, %c2_233, %c0_234, %c0_235, %c0_236] : memref<2x3x4x1x8xf32, #tpu.memory_space<vmem>>, vector<1x1x1x1x8xf32>
    %308 = vector.shape_cast %307 : vector<1x1x1x1x8xf32> to vector<1x8xf32>
    %309 = vector.broadcast %308 : vector<1x8xf32> to vector<32x8xf32>
    %310 = arith.addf %306, %309 : vector<32x8xf32>
    %311 = vector.shape_cast %310 : vector<32x8xf32> to vector<2x16x8xf32>
    "tpu.trace_start"() <{level = 10 : i32, message = "bqd,bkd->bqk"}> : () -> ()
    %cst_237 = arith.constant dense<0.000000e+00> : vector<2x16x16xf32>
    %312 = tpu.matmul %295, %303, %cst_237 {dimension_numbers = #tpu.dot_dimension_numbers<[2], [2], [1], [1], [0, 0, 0, 1, 1, 1], [0], [0]>} : vector<2x16x8xf32>, vector<2x16x8xf32>, vector<2x16x16xf32> -> vector<2x16x16xf32>
    "tpu.trace_stop"() : () -> ()
    %cst_238 = arith.constant dense<0xFF800000> : vector<2x16xf32>
    %313 = vector.multi_reduction <maximumf>, %312, %cst_238 [2] : vector<2x16x16xf32> to vector<2x16xf32>
    %314 = vector.shape_cast %313 : vector<2x16xf32> to vector<2x16x1xf32>
    %315 = vector.broadcast %314 : vector<2x16x1xf32> to vector<2x16x16xf32>
    %316 = arith.subf %312, %315 : vector<2x16x16xf32>
    %317 = math.exp %316 : vector<2x16x16xf32>
    %cst_239 = arith.constant dense<0.000000e+00> : vector<2x16xf32>
    %318 = vector.multi_reduction <add>, %317, %cst_239 [2] : vector<2x16x16xf32> to vector<2x16xf32>
    %319 = vector.shape_cast %318 : vector<2x16xf32> to vector<2x16x1xf32>
    %320 = tpu.reciprocal %319 {approx = true} : vector<2x16x1xf32> -> vector<2x16x1xf32>
    %321 = vector.broadcast %320 : vector<2x16x1xf32> to vector<2x16x16xf32>
    %322 = arith.mulf %317, %321 : vector<2x16x16xf32>
    "tpu.trace_start"() <{level = 10 : i32, message = "bqk,bkd->bqd"}> : () -> ()
    %cst_240 = arith.constant dense<0.000000e+00> : vector<2x16x8xf32>
    %323 = tpu.matmul %322, %311, %cst_240 {dimension_numbers = #tpu.dot_dimension_numbers<[2], [1], [1], [2], [0, 0, 0, 1, 1, 2], [0], [0]>} : vector<2x16x16xf32>, vector<2x16x8xf32>, vector<2x16x8xf32> -> vector<2x16x8xf32>
    "tpu.trace_stop"() : () -> ()
    %324 = vector.shape_cast %323 : vector<2x16x8xf32> to vector<32x8xf32>
    %c1_241 = arith.constant 1 : index
    %c0_242 = arith.constant 0 : index
    %c0_243 = arith.constant 0 : index
    %c0_244 = arith.constant 0 : index
    %325 = vector.load %arg6[%c1_241, %c0_242, %c0_243, %c0_244] : memref<2x4x8x32xf32, #tpu.memory_space<vmem>>, vector<1x1x8x32xf32>
    %326 = vector.shape_cast %325 : vector<1x1x8x32xf32> to vector<8x32xf32>
    %cst_245 = arith.constant dense<0.000000e+00> : vector<32x32xf32>
    %327 = tpu.matmul %324, %326, %cst_245 {dimension_numbers = #tpu.dot_dimension_numbers<[1], [0], [0], [1], [0, 0, 1, 1], [], []>} : vector<32x8xf32>, vector<8x32xf32>, vector<32x32xf32> -> vector<32x32xf32>
    %328 = arith.addf %287, %327 : vector<32x32xf32>
    %c1_246 = arith.constant 1 : index
    %c0_247 = arith.constant 0 : index
    %c1_248 = arith.constant 1 : index
    %c0_249 = arith.constant 0 : index
    %c0_250 = arith.constant 0 : index
    %329 = vector.load %arg4[%c1_246, %c0_247, %c1_248, %c0_249, %c0_250] : memref<2x3x4x32x8xf32, #tpu.memory_space<vmem>>, vector<1x1x1x32x8xf32>
    %330 = vector.shape_cast %329 : vector<1x1x1x32x8xf32> to vector<32x8xf32>
    %cst_251 = arith.constant dense<0.000000e+00> : vector<32x8xf32>
    %331 = tpu.matmul %286, %330, %cst_251 {dimension_numbers = #tpu.dot_dimension_numbers<[1], [0], [0], [1], [0, 0, 1, 1], [], []>} : vector<32x32xf32>, vector<32x8xf32>, vector<32x8xf32> -> vector<32x8xf32>
    %c1_252 = arith.constant 1 : index
    %c0_253 = arith.constant 0 : index
    %c1_254 = arith.constant 1 : index
    %c0_255 = arith.constant 0 : index
    %c0_256 = arith.constant 0 : index
    %332 = vector.load %arg5[%c1_252, %c0_253, %c1_254, %c0_255, %c0_256] : memref<2x3x4x1x8xf32, #tpu.memory_space<vmem>>, vector<1x1x1x1x8xf32>
    %333 = vector.shape_cast %332 : vector<1x1x1x1x8xf32> to vector<1x8xf32>
    %334 = vector.broadcast %333 : vector<1x8xf32> to vector<32x8xf32>
    %335 = arith.addf %331, %334 : vector<32x8xf32>
    %336 = vector.shape_cast %335 : vector<32x8xf32> to vector<2x16x8xf32>
    %c1_257 = arith.constant 1 : index
    %c1_258 = arith.constant 1 : index
    %c1_259 = arith.constant 1 : index
    %c0_260 = arith.constant 0 : index
    %c0_261 = arith.constant 0 : index
    %337 = vector.load %arg4[%c1_257, %c1_258, %c1_259, %c0_260, %c0_261] : memref<2x3x4x32x8xf32, #tpu.memory_space<vmem>>, vector<1x1x1x32x8xf32>
    %338 = vector.shape_cast %337 : vector<1x1x1x32x8xf32> to vector<32x8xf32>
    %cst_262 = arith.constant dense<0.000000e+00> : vector<32x8xf32>
    %339 = tpu.matmul %286, %338, %cst_262 {dimension_numbers = #tpu.dot_dimension_numbers<[1], [0], [0], [1], [0, 0, 1, 1], [], []>} : vector<32x32xf32>, vector<32x8xf32>, vector<32x8xf32> -> vector<32x8xf32>
    %c1_263 = arith.constant 1 : index
    %c1_264 = arith.constant 1 : index
    %c1_265 = arith.constant 1 : index
    %c0_266 = arith.constant 0 : index
    %c0_267 = arith.constant 0 : index
    %340 = vector.load %arg5[%c1_263, %c1_264, %c1_265, %c0_266, %c0_267] : memref<2x3x4x1x8xf32, #tpu.memory_space<vmem>>, vector<1x1x1x1x8xf32>
    %341 = vector.shape_cast %340 : vector<1x1x1x1x8xf32> to vector<1x8xf32>
    %342 = vector.broadcast %341 : vector<1x8xf32> to vector<32x8xf32>
    %343 = arith.addf %339, %342 : vector<32x8xf32>
    %344 = vector.shape_cast %343 : vector<32x8xf32> to vector<2x16x8xf32>
    %c1_268 = arith.constant 1 : index
    %c2_269 = arith.constant 2 : index
    %c1_270 = arith.constant 1 : index
    %c0_271 = arith.constant 0 : index
    %c0_272 = arith.constant 0 : index
    %345 = vector.load %arg4[%c1_268, %c2_269, %c1_270, %c0_271, %c0_272] : memref<2x3x4x32x8xf32, #tpu.memory_space<vmem>>, vector<1x1x1x32x8xf32>
    %346 = vector.shape_cast %345 : vector<1x1x1x32x8xf32> to vector<32x8xf32>
    %cst_273 = arith.constant dense<0.000000e+00> : vector<32x8xf32>
    %347 = tpu.matmul %286, %346, %cst_273 {dimension_numbers = #tpu.dot_dimension_numbers<[1], [0], [0], [1], [0, 0, 1, 1], [], []>} : vector<32x32xf32>, vector<32x8xf32>, vector<32x8xf32> -> vector<32x8xf32>
    %c1_274 = arith.constant 1 : index
    %c2_275 = arith.constant 2 : index
    %c1_276 = arith.constant 1 : index
    %c0_277 = arith.constant 0 : index
    %c0_278 = arith.constant 0 : index
    %348 = vector.load %arg5[%c1_274, %c2_275, %c1_276, %c0_277, %c0_278] : memref<2x3x4x1x8xf32, #tpu.memory_space<vmem>>, vector<1x1x1x1x8xf32>
    %349 = vector.shape_cast %348 : vector<1x1x1x1x8xf32> to vector<1x8xf32>
    %350 = vector.broadcast %349 : vector<1x8xf32> to vector<32x8xf32>
    %351 = arith.addf %347, %350 : vector<32x8xf32>
    %352 = vector.shape_cast %351 : vector<32x8xf32> to vector<2x16x8xf32>
    "tpu.trace_start"() <{level = 10 : i32, message = "bqd,bkd->bqk"}> : () -> ()
    %cst_279 = arith.constant dense<0.000000e+00> : vector<2x16x16xf32>
    %353 = tpu.matmul %336, %344, %cst_279 {dimension_numbers = #tpu.dot_dimension_numbers<[2], [2], [1], [1], [0, 0, 0, 1, 1, 1], [0], [0]>} : vector<2x16x8xf32>, vector<2x16x8xf32>, vector<2x16x16xf32> -> vector<2x16x16xf32>
    "tpu.trace_stop"() : () -> ()
    %cst_280 = arith.constant dense<0xFF800000> : vector<2x16xf32>
    %354 = vector.multi_reduction <maximumf>, %353, %cst_280 [2] : vector<2x16x16xf32> to vector<2x16xf32>
    %355 = vector.shape_cast %354 : vector<2x16xf32> to vector<2x16x1xf32>
    %356 = vector.broadcast %355 : vector<2x16x1xf32> to vector<2x16x16xf32>
    %357 = arith.subf %353, %356 : vector<2x16x16xf32>
    %358 = math.exp %357 : vector<2x16x16xf32>
    %cst_281 = arith.constant dense<0.000000e+00> : vector<2x16xf32>
    %359 = vector.multi_reduction <add>, %358, %cst_281 [2] : vector<2x16x16xf32> to vector<2x16xf32>
    %360 = vector.shape_cast %359 : vector<2x16xf32> to vector<2x16x1xf32>
    %361 = tpu.reciprocal %360 {approx = true} : vector<2x16x1xf32> -> vector<2x16x1xf32>
    %362 = vector.broadcast %361 : vector<2x16x1xf32> to vector<2x16x16xf32>
    %363 = arith.mulf %358, %362 : vector<2x16x16xf32>
    "tpu.trace_start"() <{level = 10 : i32, message = "bqk,bkd->bqd"}> : () -> ()
    %cst_282 = arith.constant dense<0.000000e+00> : vector<2x16x8xf32>
    %364 = tpu.matmul %363, %352, %cst_282 {dimension_numbers = #tpu.dot_dimension_numbers<[2], [1], [1], [2], [0, 0, 0, 1, 1, 2], [0], [0]>} : vector<2x16x16xf32>, vector<2x16x8xf32>, vector<2x16x8xf32> -> vector<2x16x8xf32>
    "tpu.trace_stop"() : () -> ()
    %365 = vector.shape_cast %364 : vector<2x16x8xf32> to vector<32x8xf32>
    %c1_283 = arith.constant 1 : index
    %c1_284 = arith.constant 1 : index
    %c0_285 = arith.constant 0 : index
    %c0_286 = arith.constant 0 : index
    %366 = vector.load %arg6[%c1_283, %c1_284, %c0_285, %c0_286] : memref<2x4x8x32xf32, #tpu.memory_space<vmem>>, vector<1x1x8x32xf32>
    %367 = vector.shape_cast %366 : vector<1x1x8x32xf32> to vector<8x32xf32>
    %cst_287 = arith.constant dense<0.000000e+00> : vector<32x32xf32>
    %368 = tpu.matmul %365, %367, %cst_287 {dimension_numbers = #tpu.dot_dimension_numbers<[1], [0], [0], [1], [0, 0, 1, 1], [], []>} : vector<32x8xf32>, vector<8x32xf32>, vector<32x32xf32> -> vector<32x32xf32>
    %369 = arith.addf %328, %368 : vector<32x32xf32>
    %c1_288 = arith.constant 1 : index
    %c0_289 = arith.constant 0 : index
    %c2_290 = arith.constant 2 : index
    %c0_291 = arith.constant 0 : index
    %c0_292 = arith.constant 0 : index
    %370 = vector.load %arg4[%c1_288, %c0_289, %c2_290, %c0_291, %c0_292] : memref<2x3x4x32x8xf32, #tpu.memory_space<vmem>>, vector<1x1x1x32x8xf32>
    %371 = vector.shape_cast %370 : vector<1x1x1x32x8xf32> to vector<32x8xf32>
    %cst_293 = arith.constant dense<0.000000e+00> : vector<32x8xf32>
    %372 = tpu.matmul %286, %371, %cst_293 {dimension_numbers = #tpu.dot_dimension_numbers<[1], [0], [0], [1], [0, 0, 1, 1], [], []>} : vector<32x32xf32>, vector<32x8xf32>, vector<32x8xf32> -> vector<32x8xf32>
    %c1_294 = arith.constant 1 : index
    %c0_295 = arith.constant 0 : index
    %c2_296 = arith.constant 2 : index
    %c0_297 = arith.constant 0 : index
    %c0_298 = arith.constant 0 : index
    %373 = vector.load %arg5[%c1_294, %c0_295, %c2_296, %c0_297, %c0_298] : memref<2x3x4x1x8xf32, #tpu.memory_space<vmem>>, vector<1x1x1x1x8xf32>
    %374 = vector.shape_cast %373 : vector<1x1x1x1x8xf32> to vector<1x8xf32>
    %375 = vector.broadcast %374 : vector<1x8xf32> to vector<32x8xf32>
    %376 = arith.addf %372, %375 : vector<32x8xf32>
    %377 = vector.shape_cast %376 : vector<32x8xf32> to vector<2x16x8xf32>
    %c1_299 = arith.constant 1 : index
    %c1_300 = arith.constant 1 : index
    %c2_301 = arith.constant 2 : index
    %c0_302 = arith.constant 0 : index
    %c0_303 = arith.constant 0 : index
    %378 = vector.load %arg4[%c1_299, %c1_300, %c2_301, %c0_302, %c0_303] : memref<2x3x4x32x8xf32, #tpu.memory_space<vmem>>, vector<1x1x1x32x8xf32>
    %379 = vector.shape_cast %378 : vector<1x1x1x32x8xf32> to vector<32x8xf32>
    %cst_304 = arith.constant dense<0.000000e+00> : vector<32x8xf32>
    %380 = tpu.matmul %286, %379, %cst_304 {dimension_numbers = #tpu.dot_dimension_numbers<[1], [0], [0], [1], [0, 0, 1, 1], [], []>} : vector<32x32xf32>, vector<32x8xf32>, vector<32x8xf32> -> vector<32x8xf32>
    %c1_305 = arith.constant 1 : index
    %c1_306 = arith.constant 1 : index
    %c2_307 = arith.constant 2 : index
    %c0_308 = arith.constant 0 : index
    %c0_309 = arith.constant 0 : index
    %381 = vector.load %arg5[%c1_305, %c1_306, %c2_307, %c0_308, %c0_309] : memref<2x3x4x1x8xf32, #tpu.memory_space<vmem>>, vector<1x1x1x1x8xf32>
    %382 = vector.shape_cast %381 : vector<1x1x1x1x8xf32> to vector<1x8xf32>
    %383 = vector.broadcast %382 : vector<1x8xf32> to vector<32x8xf32>
    %384 = arith.addf %380, %383 : vector<32x8xf32>
    %385 = vector.shape_cast %384 : vector<32x8xf32> to vector<2x16x8xf32>
    %c1_310 = arith.constant 1 : index
    %c2_311 = arith.constant 2 : index
    %c2_312 = arith.constant 2 : index
    %c0_313 = arith.constant 0 : index
    %c0_314 = arith.constant 0 : index
    %386 = vector.load %arg4[%c1_310, %c2_311, %c2_312, %c0_313, %c0_314] : memref<2x3x4x32x8xf32, #tpu.memory_space<vmem>>, vector<1x1x1x32x8xf32>
    %387 = vector.shape_cast %386 : vector<1x1x1x32x8xf32> to vector<32x8xf32>
    %cst_315 = arith.constant dense<0.000000e+00> : vector<32x8xf32>
    %388 = tpu.matmul %286, %387, %cst_315 {dimension_numbers = #tpu.dot_dimension_numbers<[1], [0], [0], [1], [0, 0, 1, 1], [], []>} : vector<32x32xf32>, vector<32x8xf32>, vector<32x8xf32> -> vector<32x8xf32>
    %c1_316 = arith.constant 1 : index
    %c2_317 = arith.constant 2 : index
    %c2_318 = arith.constant 2 : index
    %c0_319 = arith.constant 0 : index
    %c0_320 = arith.constant 0 : index
    %389 = vector.load %arg5[%c1_316, %c2_317, %c2_318, %c0_319, %c0_320] : memref<2x3x4x1x8xf32, #tpu.memory_space<vmem>>, vector<1x1x1x1x8xf32>
    %390 = vector.shape_cast %389 : vector<1x1x1x1x8xf32> to vector<1x8xf32>
    %391 = vector.broadcast %390 : vector<1x8xf32> to vector<32x8xf32>
    %392 = arith.addf %388, %391 : vector<32x8xf32>
    %393 = vector.shape_cast %392 : vector<32x8xf32> to vector<2x16x8xf32>
    "tpu.trace_start"() <{level = 10 : i32, message = "bqd,bkd->bqk"}> : () -> ()
    %cst_321 = arith.constant dense<0.000000e+00> : vector<2x16x16xf32>
    %394 = tpu.matmul %377, %385, %cst_321 {dimension_numbers = #tpu.dot_dimension_numbers<[2], [2], [1], [1], [0, 0, 0, 1, 1, 1], [0], [0]>} : vector<2x16x8xf32>, vector<2x16x8xf32>, vector<2x16x16xf32> -> vector<2x16x16xf32>
    "tpu.trace_stop"() : () -> ()
    %cst_322 = arith.constant dense<0xFF800000> : vector<2x16xf32>
    %395 = vector.multi_reduction <maximumf>, %394, %cst_322 [2] : vector<2x16x16xf32> to vector<2x16xf32>
    %396 = vector.shape_cast %395 : vector<2x16xf32> to vector<2x16x1xf32>
    %397 = vector.broadcast %396 : vector<2x16x1xf32> to vector<2x16x16xf32>
    %398 = arith.subf %394, %397 : vector<2x16x16xf32>
    %399 = math.exp %398 : vector<2x16x16xf32>
    %cst_323 = arith.constant dense<0.000000e+00> : vector<2x16xf32>
    %400 = vector.multi_reduction <add>, %399, %cst_323 [2] : vector<2x16x16xf32> to vector<2x16xf32>
    %401 = vector.shape_cast %400 : vector<2x16xf32> to vector<2x16x1xf32>
    %402 = tpu.reciprocal %401 {approx = true} : vector<2x16x1xf32> -> vector<2x16x1xf32>
    %403 = vector.broadcast %402 : vector<2x16x1xf32> to vector<2x16x16xf32>
    %404 = arith.mulf %399, %403 : vector<2x16x16xf32>
    "tpu.trace_start"() <{level = 10 : i32, message = "bqk,bkd->bqd"}> : () -> ()
    %cst_324 = arith.constant dense<0.000000e+00> : vector<2x16x8xf32>
    %405 = tpu.matmul %404, %393, %cst_324 {dimension_numbers = #tpu.dot_dimension_numbers<[2], [1], [1], [2], [0, 0, 0, 1, 1, 2], [0], [0]>} : vector<2x16x16xf32>, vector<2x16x8xf32>, vector<2x16x8xf32> -> vector<2x16x8xf32>
    "tpu.trace_stop"() : () -> ()
    %406 = vector.shape_cast %405 : vector<2x16x8xf32> to vector<32x8xf32>
    %c1_325 = arith.constant 1 : index
    %c2_326 = arith.constant 2 : index
    %c0_327 = arith.constant 0 : index
    %c0_328 = arith.constant 0 : index
    %407 = vector.load %arg6[%c1_325, %c2_326, %c0_327, %c0_328] : memref<2x4x8x32xf32, #tpu.memory_space<vmem>>, vector<1x1x8x32xf32>
    %408 = vector.shape_cast %407 : vector<1x1x8x32xf32> to vector<8x32xf32>
    %cst_329 = arith.constant dense<0.000000e+00> : vector<32x32xf32>
    %409 = tpu.matmul %406, %408, %cst_329 {dimension_numbers = #tpu.dot_dimension_numbers<[1], [0], [0], [1], [0, 0, 1, 1], [], []>} : vector<32x8xf32>, vector<8x32xf32>, vector<32x32xf32> -> vector<32x32xf32>
    %410 = arith.addf %369, %409 : vector<32x32xf32>
    %c1_330 = arith.constant 1 : index
    %c0_331 = arith.constant 0 : index
    %c3_332 = arith.constant 3 : index
    %c0_333 = arith.constant 0 : index
    %c0_334 = arith.constant 0 : index
    %411 = vector.load %arg4[%c1_330, %c0_331, %c3_332, %c0_333, %c0_334] : memref<2x3x4x32x8xf32, #tpu.memory_space<vmem>>, vector<1x1x1x32x8xf32>
    %412 = vector.shape_cast %411 : vector<1x1x1x32x8xf32> to vector<32x8xf32>
    %cst_335 = arith.constant dense<0.000000e+00> : vector<32x8xf32>
    %413 = tpu.matmul %286, %412, %cst_335 {dimension_numbers = #tpu.dot_dimension_numbers<[1], [0], [0], [1], [0, 0, 1, 1], [], []>} : vector<32x32xf32>, vector<32x8xf32>, vector<32x8xf32> -> vector<32x8xf32>
    %c1_336 = arith.constant 1 : index
    %c0_337 = arith.constant 0 : index
    %c3_338 = arith.constant 3 : index
    %c0_339 = arith.constant 0 : index
    %c0_340 = arith.constant 0 : index
    %414 = vector.load %arg5[%c1_336, %c0_337, %c3_338, %c0_339, %c0_340] : memref<2x3x4x1x8xf32, #tpu.memory_space<vmem>>, vector<1x1x1x1x8xf32>
    %415 = vector.shape_cast %414 : vector<1x1x1x1x8xf32> to vector<1x8xf32>
    %416 = vector.broadcast %415 : vector<1x8xf32> to vector<32x8xf32>
    %417 = arith.addf %413, %416 : vector<32x8xf32>
    %418 = vector.shape_cast %417 : vector<32x8xf32> to vector<2x16x8xf32>
    %c1_341 = arith.constant 1 : index
    %c1_342 = arith.constant 1 : index
    %c3_343 = arith.constant 3 : index
    %c0_344 = arith.constant 0 : index
    %c0_345 = arith.constant 0 : index
    %419 = vector.load %arg4[%c1_341, %c1_342, %c3_343, %c0_344, %c0_345] : memref<2x3x4x32x8xf32, #tpu.memory_space<vmem>>, vector<1x1x1x32x8xf32>
    %420 = vector.shape_cast %419 : vector<1x1x1x32x8xf32> to vector<32x8xf32>
    %cst_346 = arith.constant dense<0.000000e+00> : vector<32x8xf32>
    %421 = tpu.matmul %286, %420, %cst_346 {dimension_numbers = #tpu.dot_dimension_numbers<[1], [0], [0], [1], [0, 0, 1, 1], [], []>} : vector<32x32xf32>, vector<32x8xf32>, vector<32x8xf32> -> vector<32x8xf32>
    %c1_347 = arith.constant 1 : index
    %c1_348 = arith.constant 1 : index
    %c3_349 = arith.constant 3 : index
    %c0_350 = arith.constant 0 : index
    %c0_351 = arith.constant 0 : index
    %422 = vector.load %arg5[%c1_347, %c1_348, %c3_349, %c0_350, %c0_351] : memref<2x3x4x1x8xf32, #tpu.memory_space<vmem>>, vector<1x1x1x1x8xf32>
    %423 = vector.shape_cast %422 : vector<1x1x1x1x8xf32> to vector<1x8xf32>
    %424 = vector.broadcast %423 : vector<1x8xf32> to vector<32x8xf32>
    %425 = arith.addf %421, %424 : vector<32x8xf32>
    %426 = vector.shape_cast %425 : vector<32x8xf32> to vector<2x16x8xf32>
    %c1_352 = arith.constant 1 : index
    %c2_353 = arith.constant 2 : index
    %c3_354 = arith.constant 3 : index
    %c0_355 = arith.constant 0 : index
    %c0_356 = arith.constant 0 : index
    %427 = vector.load %arg4[%c1_352, %c2_353, %c3_354, %c0_355, %c0_356] : memref<2x3x4x32x8xf32, #tpu.memory_space<vmem>>, vector<1x1x1x32x8xf32>
    %428 = vector.shape_cast %427 : vector<1x1x1x32x8xf32> to vector<32x8xf32>
    %cst_357 = arith.constant dense<0.000000e+00> : vector<32x8xf32>
    %429 = tpu.matmul %286, %428, %cst_357 {dimension_numbers = #tpu.dot_dimension_numbers<[1], [0], [0], [1], [0, 0, 1, 1], [], []>} : vector<32x32xf32>, vector<32x8xf32>, vector<32x8xf32> -> vector<32x8xf32>
    %c1_358 = arith.constant 1 : index
    %c2_359 = arith.constant 2 : index
    %c3_360 = arith.constant 3 : index
    %c0_361 = arith.constant 0 : index
    %c0_362 = arith.constant 0 : index
    %430 = vector.load %arg5[%c1_358, %c2_359, %c3_360, %c0_361, %c0_362] : memref<2x3x4x1x8xf32, #tpu.memory_space<vmem>>, vector<1x1x1x1x8xf32>
    %431 = vector.shape_cast %430 : vector<1x1x1x1x8xf32> to vector<1x8xf32>
    %432 = vector.broadcast %431 : vector<1x8xf32> to vector<32x8xf32>
    %433 = arith.addf %429, %432 : vector<32x8xf32>
    %434 = vector.shape_cast %433 : vector<32x8xf32> to vector<2x16x8xf32>
    "tpu.trace_start"() <{level = 10 : i32, message = "bqd,bkd->bqk"}> : () -> ()
    %cst_363 = arith.constant dense<0.000000e+00> : vector<2x16x16xf32>
    %435 = tpu.matmul %418, %426, %cst_363 {dimension_numbers = #tpu.dot_dimension_numbers<[2], [2], [1], [1], [0, 0, 0, 1, 1, 1], [0], [0]>} : vector<2x16x8xf32>, vector<2x16x8xf32>, vector<2x16x16xf32> -> vector<2x16x16xf32>
    "tpu.trace_stop"() : () -> ()
    %cst_364 = arith.constant dense<0xFF800000> : vector<2x16xf32>
    %436 = vector.multi_reduction <maximumf>, %435, %cst_364 [2] : vector<2x16x16xf32> to vector<2x16xf32>
    %437 = vector.shape_cast %436 : vector<2x16xf32> to vector<2x16x1xf32>
    %438 = vector.broadcast %437 : vector<2x16x1xf32> to vector<2x16x16xf32>
    %439 = arith.subf %435, %438 : vector<2x16x16xf32>
    %440 = math.exp %439 : vector<2x16x16xf32>
    %cst_365 = arith.constant dense<0.000000e+00> : vector<2x16xf32>
    %441 = vector.multi_reduction <add>, %440, %cst_365 [2] : vector<2x16x16xf32> to vector<2x16xf32>
    %442 = vector.shape_cast %441 : vector<2x16xf32> to vector<2x16x1xf32>
    %443 = tpu.reciprocal %442 {approx = true} : vector<2x16x1xf32> -> vector<2x16x1xf32>
    %444 = vector.broadcast %443 : vector<2x16x1xf32> to vector<2x16x16xf32>
    %445 = arith.mulf %440, %444 : vector<2x16x16xf32>
    "tpu.trace_start"() <{level = 10 : i32, message = "bqk,bkd->bqd"}> : () -> ()
    %cst_366 = arith.constant dense<0.000000e+00> : vector<2x16x8xf32>
    %446 = tpu.matmul %445, %434, %cst_366 {dimension_numbers = #tpu.dot_dimension_numbers<[2], [1], [1], [2], [0, 0, 0, 1, 1, 2], [0], [0]>} : vector<2x16x16xf32>, vector<2x16x8xf32>, vector<2x16x8xf32> -> vector<2x16x8xf32>
    "tpu.trace_stop"() : () -> ()
    %447 = vector.shape_cast %446 : vector<2x16x8xf32> to vector<32x8xf32>
    %c1_367 = arith.constant 1 : index
    %c3_368 = arith.constant 3 : index
    %c0_369 = arith.constant 0 : index
    %c0_370 = arith.constant 0 : index
    %448 = vector.load %arg6[%c1_367, %c3_368, %c0_369, %c0_370] : memref<2x4x8x32xf32, #tpu.memory_space<vmem>>, vector<1x1x8x32xf32>
    %449 = vector.shape_cast %448 : vector<1x1x8x32xf32> to vector<8x32xf32>
    %cst_371 = arith.constant dense<0.000000e+00> : vector<32x32xf32>
    %450 = tpu.matmul %447, %449, %cst_371 {dimension_numbers = #tpu.dot_dimension_numbers<[1], [0], [0], [1], [0, 0, 1, 1], [], []>} : vector<32x8xf32>, vector<8x32xf32>, vector<32x32xf32> -> vector<32x32xf32>
    %451 = arith.addf %410, %450 : vector<32x32xf32>
    %452 = arith.addf %258, %451 : vector<32x32xf32>
    %453 = vector.broadcast %263 : vector<1x32xf32> to vector<32x32xf32>
    %454 = arith.addf %452, %453 : vector<32x32xf32>
    %cst_372 = arith.constant dense<0.000000e+00> : vector<32xf32>
    %455 = vector.multi_reduction <add>, %454, %cst_372 [1] : vector<32x32xf32> to vector<32xf32>
    %456 = vector.shape_cast %455 : vector<32xf32> to vector<32x1xf32>
    %cst_373 = arith.constant 3.200000e+01 : f32
    %457 = vector.broadcast %cst_373 : f32 to vector<32x1xf32>
    %458 = arith.divf %456, %457 : vector<32x1xf32>
    %459 = vector.broadcast %458 : vector<32x1xf32> to vector<32x32xf32>
    %460 = arith.subf %454, %459 : vector<32x32xf32>
    %461 = arith.mulf %460, %460 : vector<32x32xf32>
    %cst_374 = arith.constant dense<0.000000e+00> : vector<32xf32>
    %462 = vector.multi_reduction <add>, %461, %cst_374 [1] : vector<32x32xf32> to vector<32xf32>
    %463 = vector.shape_cast %462 : vector<32xf32> to vector<32x1xf32>
    %cst_375 = arith.constant 3.200000e+01 : f32
    %464 = vector.broadcast %cst_375 : f32 to vector<32x1xf32>
    %465 = arith.divf %463, %464 : vector<32x1xf32>
    %466 = vector.broadcast %458 : vector<32x1xf32> to vector<32x32xf32>
    %467 = arith.subf %454, %466 : vector<32x32xf32>
    %cst_376 = arith.constant 9.99999974E-6 : f32
    %468 = vector.broadcast %cst_376 : f32 to vector<32x1xf32>
    %469 = arith.addf %465, %468 : vector<32x1xf32>
    %470 = math.rsqrt %469 : vector<32x1xf32>
    %471 = vector.broadcast %470 : vector<32x1xf32> to vector<32x32xf32>
    %472 = arith.mulf %467, %471 : vector<32x32xf32>
    %473 = vector.broadcast %261 : vector<1x32xf32> to vector<32x32xf32>
    %474 = arith.mulf %472, %473 : vector<32x32xf32>
    %475 = vector.broadcast %262 : vector<1x32xf32> to vector<32x32xf32>
    %476 = arith.addf %474, %475 : vector<32x32xf32>
    %c1_377 = arith.constant 1 : index
    %c0_378 = arith.constant 0 : index
    %c0_379 = arith.constant 0 : index
    %477 = vector.load %arg7[%c1_377, %c0_378, %c0_379] : memref<2x32x128xf32, #tpu.memory_space<vmem>>, vector<1x32x128xf32>
    %478 = vector.shape_cast %477 : vector<1x32x128xf32> to vector<32x128xf32>
    %cst_380 = arith.constant dense<0.000000e+00> : vector<32x128xf32>
    %479 = tpu.matmul %476, %478, %cst_380 {dimension_numbers = #tpu.dot_dimension_numbers<[1], [0], [0], [1], [0, 0, 1, 1], [], []>} : vector<32x32xf32>, vector<32x128xf32>, vector<32x128xf32> -> vector<32x128xf32>
    %c1_381 = arith.constant 1 : index
    %c0_382 = arith.constant 0 : index
    %c0_383 = arith.constant 0 : index
    %480 = vector.load %arg8[%c1_381, %c0_382, %c0_383] : memref<2x1x128xf32, #tpu.memory_space<vmem>>, vector<1x1x128xf32>
    %481 = vector.shape_cast %480 : vector<1x1x128xf32> to vector<1x128xf32>
    %482 = vector.broadcast %481 : vector<1x128xf32> to vector<32x128xf32>
    %483 = arith.addf %479, %482 : vector<32x128xf32>
    %484 = arith.mulf %483, %483 : vector<32x128xf32>
    %485 = arith.mulf %483, %484 : vector<32x128xf32>
    %cst_384 = arith.constant 4.471500e-02 : f32
    %486 = vector.broadcast %cst_384 : f32 to vector<32x128xf32>
    %487 = arith.mulf %486, %485 : vector<32x128xf32>
    %488 = arith.addf %483, %487 : vector<32x128xf32>
    %cst_385 = arith.constant 0.797884583 : f32
    %489 = vector.broadcast %cst_385 : f32 to vector<32x128xf32>
    %490 = arith.mulf %489, %488 : vector<32x128xf32>
    %491 = math.tanh %490 : vector<32x128xf32>
    %cst_386 = arith.constant 1.000000e+00 : f32
    %492 = vector.broadcast %cst_386 : f32 to vector<32x128xf32>
    %493 = arith.addf %492, %491 : vector<32x128xf32>
    %cst_387 = arith.constant 5.000000e-01 : f32
    %494 = vector.broadcast %cst_387 : f32 to vector<32x128xf32>
    %495 = arith.mulf %494, %493 : vector<32x128xf32>
    %496 = arith.mulf %483, %495 : vector<32x128xf32>
    %c1_388 = arith.constant 1 : index
    %c0_389 = arith.constant 0 : index
    %c0_390 = arith.constant 0 : index
    %497 = vector.load %arg9[%c1_388, %c0_389, %c0_390] : memref<2x128x32xf32, #tpu.memory_space<vmem>>, vector<1x128x32xf32>
    %498 = vector.shape_cast %497 : vector<1x128x32xf32> to vector<128x32xf32>
    %cst_391 = arith.constant dense<0.000000e+00> : vector<32x32xf32>
    %499 = tpu.matmul %496, %498, %cst_391 {dimension_numbers = #tpu.dot_dimension_numbers<[1], [0], [0], [1], [0, 0, 1, 1], [], []>} : vector<32x128xf32>, vector<128x32xf32>, vector<32x32xf32> -> vector<32x32xf32>
    %500 = arith.addf %454, %499 : vector<32x32xf32>
    %501 = vector.broadcast %264 : vector<1x32xf32> to vector<32x32xf32>
    %502 = arith.addf %500, %501 : vector<32x32xf32>
    %cst_392 = arith.constant dense<0.000000e+00> : vector<32xf32>
    %503 = vector.multi_reduction <add>, %502, %cst_392 [1] : vector<32x32xf32> to vector<32xf32>
    %504 = vector.shape_cast %503 : vector<32xf32> to vector<32x1xf32>
    %cst_393 = arith.constant 3.200000e+01 : f32
    %505 = vector.broadcast %cst_393 : f32 to vector<32x1xf32>
    %506 = arith.divf %504, %505 : vector<32x1xf32>
    %507 = vector.broadcast %506 : vector<32x1xf32> to vector<32x32xf32>
    %508 = arith.subf %502, %507 : vector<32x32xf32>
    %509 = arith.mulf %508, %508 : vector<32x32xf32>
    %cst_394 = arith.constant dense<0.000000e+00> : vector<32xf32>
    %510 = vector.multi_reduction <add>, %509, %cst_394 [1] : vector<32x32xf32> to vector<32xf32>
    %511 = vector.shape_cast %510 : vector<32xf32> to vector<32x1xf32>
    %cst_395 = arith.constant 3.200000e+01 : f32
    %512 = vector.broadcast %cst_395 : f32 to vector<32x1xf32>
    %513 = arith.divf %511, %512 : vector<32x1xf32>
    %514 = vector.broadcast %506 : vector<32x1xf32> to vector<32x32xf32>
    %515 = arith.subf %502, %514 : vector<32x32xf32>
    %cst_396 = arith.constant 9.99999974E-6 : f32
    %516 = vector.broadcast %cst_396 : f32 to vector<32x1xf32>
    %517 = arith.addf %513, %516 : vector<32x1xf32>
    %518 = math.rsqrt %517 : vector<32x1xf32>
    %519 = vector.broadcast %518 : vector<32x1xf32> to vector<32x32xf32>
    %520 = arith.mulf %515, %519 : vector<32x32xf32>
    %521 = vector.broadcast %2 : vector<1x32xf32> to vector<32x32xf32>
    %522 = arith.mulf %520, %521 : vector<32x32xf32>
    %523 = vector.broadcast %3 : vector<1x32xf32> to vector<32x32xf32>
    %524 = arith.addf %522, %523 : vector<32x32xf32>
    %525 = vector.shape_cast %524 : vector<32x32xf32> to vector<2x16x32xf32>
    %c0_397 = arith.constant 0 : index
    %c0_398 = arith.constant 0 : index
    %c0_399 = arith.constant 0 : index
    %526 = vector.load %arg10[%c0_397, %c0_398, %c0_399] : memref<2x16x32xf32, #tpu.memory_space<vmem>>, vector<2x16x32xf32>
    tpu.vector_store %arg10[%c0_397, %c0_398, %c0_399], %525 {strides = array<i32>} : memref<2x16x32xf32, #tpu.memory_space<vmem>>, vector<2x16x32xf32>,
    return
  }
}

</mosaic_0001>

<bundles_post_ra>
// kernel: vision_encoder_forward.1
= control target key start
LH: loop header
LB: loop body
LE: loop exit
PB: predicated region body
PF: predicated region fallthrough
CT: control target
= control target key end

     0   :  { %vm51_vm0 = vcmask 523264   ;;  %s5616_s0 = inlined_call_operand.vmem [shape: f32[32,64], index: 0, kind: input, shape index: {}]   ;;  %s5617_s1 = inlined_call_operand.vmem [shape: f32[64,32], index: 1, kind: input, shape index: {}]   ;;  %s5618_s2 = inlined_call_operand.vmem [shape: f32[16,32], index: 2, kind: input, shape index: {}]   ;;  %s5619_s3 = inlined_call_operand.vmem [shape: f32[15,32], index: 3, kind: input, shape index: {}]   ;;  %s5620_s4 = inlined_call_operand.vmem [shape: f32[2,3,4,32,8], index: 4, kind: input, shape index: {}]   ;;  %s5621_s5 = inlined_call_operand.vmem [shape: f32[2,3,4,1,8], index: 5, kind: input, shape index: {}]   ;;  %s5622_s6 = inlined_call_operand.vmem [shape: f32[2,4,8,32], index: 6, kind: input, shape index: {}]   ;;  %s5623_s7 = inlined_call_operand.vmem [shape: f32[2,32,128], index: 7, kind: input, shape index: {}]   ;;  %s5624_s8 = inlined_call_operand.vmem [shape: f32[2,1,128], index: 8, kind: input, shape index: {}]   ;;  %s5625_s9 = inlined_call_operand.vmem [shape: f32[2,128,32], index: 9, kind: input, shape index: {}]   ;;  %s5626_s10 = inlined_call_operand.hbm [shape: f32[2,16,32], index: 10, kind: output, shape index: {}]  }
   0x1   :  { %v49_v0 = vld [vmem:[%s5617_s1 + $0x38] sm:$0xff]  ;;  %v48_v1 = vld [vmem:[%s5617_s1 + $0x30] sm:$0xff]  ;;  %v47_v2 = vld [vmem:[%s5617_s1 + $0x28] sm:$0xff] }
   0x2   :  { %72 = vmatpush.msra.mxu0 %v49_v0  ;;  %v46_v3 = vld [vmem:[%s5617_s1 + $0x20] sm:$0xff]  ;;  %v45_v4 = vld [vmem:[%s5617_s1 + $0x18] sm:$0xff]  ;;  %v44_v5 = vld [vmem:[%s5617_s1 + $0x10] sm:$0xff] }
   0x3   :  { %v43_v6 = vld [vmem:[%s5617_s1 + $0x8] sm:$0xff]  ;;  %v42_v7 = vld [vmem:[%s5617_s1] sm:$0xff] }
   0x4   :  { %73 = vmatpush.msra.mxu0 %v48_v1  ;;  %v38_v8 = vld [vmem:[%s5616_s0] sm:$0xff] }
   0x6   :  { %74 = vmatpush.msra.mxu0 %v47_v2 }
   0x8   :  { %75 = vmatpush.msra.mxu0 %v46_v3 }
   0xa   :  { %76 = vmatpush.msra.mxu0 %v45_v4 }
   0xc   :  { %77 = vmatpush.msra.mxu0 %v44_v5 }
   0xe   :  { %78 = vmatpush.msra.mxu0 %v43_v6 }
   0xf   :  { %15 = vsyncpa [#allocation3], 0  ;;  %v39_v9 = vld [vmem:[%s5616_s0 + $0x8] sm:$0xff]  ;;  %v40_v10 = vld [vmem:[%s5616_s0 + $0x10] sm:$0xff]  ;;  %vm99_vm1 = vcmask 261120   ;;  %v4237_v32 = vmov 32.0  }
  0x10   :  { %79 = vmatpush.msra.mxu0 %v42_v7  ;;  %v41_v11 = vld [vmem:[%s5616_s0 + $0x18] sm:$0xff]  ;;  %v4335_v12 = vld [vmem:[%s5619_s3] sm:$0xff]  ;;  %v94_v20 = vld [vmem:[%s5618_s2 + $0x8] sm:$0xff]  ;;  %4022 = vrcp.f32 %v4237_v32  ;;  %vm332_vm15 = vcmask 64512   ;;  %s3601_s18 = sshll.u32 %s5626_s10, 4  ;;  %s4240_s19 = smov 8   ;;  %s3602_s18 = int_to_ptr.hbm [resolvable:$true] %s3601_s18 }
  0x11   :  { %3613 = vmatmul.msk.f32.vlgmr.msra.gmra.mxu0 %vm51_vm0, %v38_v8  ;;  %v50_v13 = vperm.slane %v4335_v12, 0  ;;  %v93_v15 = vld [vmem:[%s5618_s2] sm:$0xff]  ;;  %v208_v59 = vld [vmem:[%s5620_s4 + $0x18] sm:$0xff]  ;;  %v207_v62 = vld [vmem:[%s5620_s4 + $0x10] sm:$0xff]  ;;  %v200_v32 = vperm.slane %v4335_v12, 4 }
  0x12   :  { %v3624_v60 = vld [vmem:[%s5620_s4 + $0x98] sm:$0xff]  ;;  %237 = vmatpush.msra.mxu1 %v208_v59  ;;  %v3623_v63 = vld [vmem:[%s5620_s4 + $0x90] sm:$0xff]  ;;  %v206_v1 = vld [vmem:[%s5620_s4 + $0x8] sm:$0xff] }
  0x13   :  { %v3633_v61 = vld [vmem:[%s5620_s4 + $0x118] sm:$0xff]  ;;  %276 = vmatpush.msra.mxu2 %v3624_v60  ;;  %v3632_v0 = vld [vmem:[%s5620_s4 + $0x110] sm:$0xff]  ;;  %v3622_v2 = vld [vmem:[%s5620_s4 + $0x88] sm:$0xff] }
  0x14   :  { %315 = vmatpush.msra.mxu3 %v3633_v61  ;;  %238 = vmatpush.msra.mxu1 %v207_v62  ;;  %v3631_v3 = vld [vmem:[%s5620_s4 + $0x108] sm:$0xff]  ;;  %v205_v4 = vld [vmem:[%s5620_s4] sm:$0xff] }
  0x15   :  { %277 = vmatpush.msra.mxu2 %v3623_v63  ;;  %v3621_v5 = vld [vmem:[%s5620_s4 + $0x80] sm:$0xff] }
  0x16   :  { %v4023_v33 = vpop.eup %4022  ;;  %316 = vmatpush.msra.mxu3 %v3632_v0  ;;  %239 = vmatpush.msra.mxu1 %v206_v1  ;;  %v3630_v6 = vld [vmem:[%s5620_s4 + $0x100] sm:$0xff] }
  0x17   :  { %v113_v34 = vmul.f32 32.0, %v4023_v33  ;;  %vm117_vm2 = vweird.f32 %v4023_v33  ;;  %278 = vmatpush.msra.mxu2 %v3622_v2 }
  0x18   :  { %317 = vmatpush.msra.mxu3 %v3631_v3  ;;  %240 = vmatpush.msra.mxu1 %v205_v4 }
  0x19   :  { %3614 = vmatmul.msk.f32.gmra.mxu0 %vm51_vm0, %v39_v9  ;;  %v114_v35 = vsub.f32 1.0, %v113_v34  ;;  %279 = vmatpush.msra.mxu2 %v3621_v5 }
  0x1a   :  { %318 = vmatpush.msra.mxu3 %v3630_v6  ;;  %v3997_v6 = vld [vmem:[%s5621_s5 + $0x4] ss:$0 sm:$0xff] }
  0x1b   :  { %v115_v36 = vmul.f32 %v4023_v33, %v114_v35 }
  0x1d   :  { %v116_v37 = vadd.f32 %v4023_v33, %v115_v36 }
  0x1f   :  { %v4360_v38 = vsel %vm117_vm2, %v4023_v33, %v116_v37 }
  0x21   :  { %3615 = vmatmul.msk.f32.gmra.mxu0 %vm51_vm0, %v40_v10 }
  0x29   :  { %3616 = vmatmul.msk.f32.gmra.mxu0 %vm51_vm0, %v41_v11  ;;  %vm403_vm0 = vcmask 130048  }
  0x8e   :  { %v81_v14 = vpop.f32.mrf.mxu0 }
  0x8f   :  { %v82_v16 = vadd.f32 %v81_v14, %v50_v13 }
  0x91   :  { %v4341_v17 = vadd.f32 %v93_v15, %v82_v16 }
  0x93   :  { %v100_v18 = vsel %vm99_vm1, %v4341_v17, 0.0 }
  0x94   :  { %101 = vadd.xlane.f32.xlu0 %v100_v18 }
  0x96   :  { %v84_v19 = vpop.f32.mrf.mxu0 }
  0x97   :  { %v85_v21 = vadd.f32 %v84_v19, %v50_v13 }
  0x99   :  { %v4348_v22 = vadd.f32 %v94_v20, %v85_v21 }
  0x9b   :  { %v103_v23 = vsel %vm99_vm1, %v4348_v22, 0.0 }
  0x9c   :  { %104 = vadd.xlane.f32.xlu0 %v103_v23 }
  0x9e   :  { %v87_v24 = vpop.f32.mrf.mxu0 }
  0x9f   :  { %v88_v25 = vadd.f32 %v87_v24, %v50_v13 }
  0xa1   :  { %v4352_v26 = vadd.f32 %v93_v15, %v88_v25 }
  0xa3   :  { %v106_v27 = vsel %vm99_vm1, %v4352_v26, 0.0 }
  0xa4   :  { %107 = vadd.xlane.f32.xlu1 %v106_v27 }
  0xa6   :  { %v90_v28 = vpop.f32.mrf.mxu0 }
  0xa7   :  { %v91_v29 = vadd.f32 %v90_v28, %v50_v13  ;;  %v195_v28 = vperm.slane %v4335_v12, 3 }
  0xa9   :  { %v4356_v30 = vadd.f32 %v94_v20, %v91_v29 }
  0xab   :  { %v109_v31 = vsel %vm99_vm1, %v4356_v30, 0.0 }
  0xac   :  { %110 = vadd.xlane.f32.xlu1 %v109_v31 }
 0x107   :  { %v102_v39 = vpop.xlane.xlu0 %101 }
 0x108   :  { %v119_v40 = vmul.f32 %v4360_v38, %v102_v39 }
 0x10a   :  { %v4364_v41 = vsub.f32 %v4341_v17, %v119_v40 }
 0x10c   :  { %v127_v42 = vmul.f32 %v4364_v41, %v4364_v41 }
 0x10e   :  { %v131_v43 = vsel %vm99_vm1, %v127_v42, 0.0 }
 0x10f   :  { %132 = vadd.xlane.f32.xlu2 %v131_v43  ;;  %v105_v44 = vpop.xlane.xlu0 %104 }
 0x110   :  { %v120_v45 = vmul.f32 %v4360_v38, %v105_v44 }
 0x112   :  { %v4371_v46 = vsub.f32 %v4348_v22, %v120_v45 }
 0x114   :  { %v128_v47 = vmul.f32 %v4371_v46, %v4371_v46 }
 0x116   :  { %v134_v48 = vsel %vm99_vm1, %v128_v47, 0.0 }
 0x117   :  { %v108_v49 = vpop.xlane.xlu1 %107  ;;  %135 = vadd.xlane.f32.xlu2 %v134_v48 }
 0x118   :  { %v121_v50 = vmul.f32 %v4360_v38, %v108_v49 }
 0x11a   :  { %v4378_v51 = vsub.f32 %v4352_v26, %v121_v50 }
 0x11c   :  { %v129_v52 = vmul.f32 %v4378_v51, %v4378_v51 }
 0x11e   :  { %v137_v53 = vsel %vm99_vm1, %v129_v52, 0.0 }
 0x11f   :  { %v111_v54 = vpop.xlane.xlu1 %110  ;;  %138 = vadd.xlane.f32.xlu0 %v137_v53 }
 0x120   :  { %v122_v55 = vmul.f32 %v4360_v38, %v111_v54 }
 0x122   :  { %v4385_v56 = vsub.f32 %v4356_v30, %v122_v55 }
 0x124   :  { %v130_v57 = vmul.f32 %v4385_v56, %v4385_v56 }
 0x126   :  { %v140_v58 = vsel %vm99_vm1, %v130_v57, 0.0 }
 0x127   :  { %141 = vadd.xlane.f32.xlu1 %v140_v58 }
 0x182   :  { %v133_v7 = vpop.xlane.xlu2 %132 }
 0x183   :  { %v143_v8 = vmul.f32 %v133_v7, %v4360_v38  ;;  %v3998_v7 = vld [vmem:[%s5621_s5 + $0x8] ss:$0 sm:$0xff] }
 0x185   :  { %v147_v9 = vadd.f32 1e-05, %v143_v8 }
 0x187   :  { %4024 = vrsqrt.f32 %v147_v9  ;;  %vm157_vm4 = vweird.f32 %v147_v9 }
 0x18a   :  { %v136_v10 = vpop.xlane.xlu2 %135 }
 0x18b   :  { %v144_v11 = vmul.f32 %v136_v10, %v4360_v38 }
 0x18d   :  { %v4025_v13 = vpop.eup %4024  ;;  %v148_v14 = vadd.f32 1e-05, %v144_v11  ;;  %v3996_v11 = vld [vmem:[%s5621_s5] ss:$0 sm:$0xff] }
 0x18e   :  { %v152_v15 = vmul.f32 %v4025_v13, %v147_v9  ;;  %vm158_vm3 = vweird.f32 %v4025_v13 }
 0x18f   :  { %4026 = vrsqrt.f32 %v148_v14  ;;  %vm159_vm5 = vmor %vm157_vm4, %vm158_vm3  ;;  %vm167_vm7 = vweird.f32 %v148_v14 }
 0x190   :  { %v153_v16 = vmul.f32 %v4025_v13, %v152_v15  ;;  %v3654_v15 = vld [vmem:[%s5620_s4 + $0x38] sm:$0xff] }
 0x192   :  { %v154_v18 = vmul.f32 0.5, %v153_v16  ;;  %v139_v19 = vpop.xlane.xlu0 %138 }
 0x193   :  { %v145_v20 = vmul.f32 %v139_v19, %v4360_v38  ;;  %v3653_v19 = vld [vmem:[%s5620_s4 + $0x30] sm:$0xff] }
 0x194   :  { %v155_v21 = vsub.f32 1.5, %v154_v18 }
 0x195   :  { %v4027_v23 = vpop.eup %4026  ;;  %v149_v24 = vadd.f32 1e-05, %v145_v20 }
 0x196   :  { %v156_v25 = vmul.f32 %v4025_v13, %v155_v21  ;;  %v162_v27 = vmul.f32 %v4027_v23, %v148_v14  ;;  %vm168_vm6 = vweird.f32 %v4027_v23 }
 0x197   :  { %4028 = vrsqrt.f32 %v149_v24  ;;  %vm169_vm8 = vmor %vm167_vm7, %vm168_vm6  ;;  %vm177_vm10 = vweird.f32 %v149_v24 }
 0x198   :  { %v160_v29 = vsel %vm159_vm5, %v4025_v13, %v156_v25  ;;  %v163_v31 = vmul.f32 %v4027_v23, %v162_v27 }
 0x199   :  { %v191_v33 = vmul.f32 %v160_v29, %v4364_v41 }
 0x19a   :  { %v164_v34 = vmul.f32 0.5, %v163_v31  ;;  %v142_v35 = vpop.xlane.xlu1 %141 }
 0x19b   :  { %v196_v36 = vmul.f32 %v195_v28, %v191_v33  ;;  %v146_v37 = vmul.f32 %v142_v35, %v4360_v38  ;;  %v3663_v35 = vld [vmem:[%s5620_s4 + $0xb8] sm:$0xff] }
 0x19c   :  { %v165_v39 = vsub.f32 1.5, %v164_v34 }
 0x19d   :  { %v4029_v40 = vpop.eup %4028  ;;  %v4433_v42 = vadd.f32 %v200_v32, %v196_v36  ;;  %v150_v43 = vadd.f32 1e-05, %v146_v37  ;;  %v3662_v37 = vld [vmem:[%s5620_s4 + $0xb0] sm:$0xff] }
 0x19e   :  { %v166_v44 = vmul.f32 %v4027_v23, %v165_v39  ;;  %v172_v45 = vmul.f32 %v4029_v40, %v149_v24  ;;  %vm178_vm9 = vweird.f32 %v4029_v40  ;;  %v3651_v24 = vld [vmem:[%s5620_s4 + $0x20] sm:$0xff]  ;;  %v3661_v39 = vld [vmem:[%s5620_s4 + $0xa8] sm:$0xff] }
 0x19f   :  { %4030 = vrsqrt.f32 %v150_v43  ;;  %3617 = vmatmul.msk.f32.vlgmr.msra.gmra.mxu1 %vm99_vm1, %v4433_v42  ;;  %3626 = vmatmul.msk.f32.vlgmr.msra.gmra.mxu2 %vm99_vm1, %v4433_v42  ;;  %vm179_vm11 = vmor %vm177_vm10, %vm178_vm9  ;;  %vm187_vm13 = vweird.f32 %v150_v43 }
 0x1a0   :  { %v170_v12 = vsel %vm169_vm8, %v4027_v23, %v166_v44  ;;  %v173_v41 = vmul.f32 %v4029_v40, %v172_v45  ;;  %3635 = vmatmul.msk.f32.vlgmr.msra.gmra.mxu3 %vm99_vm1, %v4433_v42  ;;  %v3652_v23 = vld [vmem:[%s5620_s4 + $0x28] sm:$0xff] }
 0x1a1   :  { %v192_v47 = vmul.f32 %v170_v12, %v4371_v46 }
 0x1a2   :  { %v174_v48 = vmul.f32 0.5, %v173_v41 }
 0x1a3   :  { %v197_v49 = vmul.f32 %v195_v28, %v192_v47 }
 0x1a4   :  { %v175_v50 = vsub.f32 1.5, %v174_v48 }
 0x1a5   :  { %v4031_v52 = vpop.eup %4030  ;;  %v4442_v53 = vadd.f32 %v200_v32, %v197_v49 }
 0x1a6   :  { %v176_v54 = vmul.f32 %v4029_v40, %v175_v50  ;;  %v182_v55 = vmul.f32 %v4031_v52, %v150_v43  ;;  %vm188_vm12 = vweird.f32 %v4031_v52 }
 0x1a7   :  { %3618 = vmatmul.msk.f32.gmra.mxu1 %vm99_vm1, %v4442_v53  ;;  %3627 = vmatmul.msk.f32.gmra.mxu2 %vm99_vm1, %v4442_v53  ;;  %vm189_vm14 = vmor %vm187_vm13, %vm188_vm12 }
 0x1a8   :  { %v180_v57 = vsel %vm179_vm11, %v4029_v40, %v176_v54  ;;  %v183_v58 = vmul.f32 %v4031_v52, %v182_v55  ;;  %3636 = vmatmul.msk.f32.gmra.mxu3 %vm99_vm1, %v4442_v53  ;;  %v3660_v40 = vld [vmem:[%s5620_s4 + $0xa0] sm:$0xff] }
 0x1a9   :  { %v193_v46 = vmul.f32 %v180_v57, %v4378_v51 }
 0x1aa   :  { %v184_v59 = vmul.f32 0.5, %v183_v58 }
 0x1ab   :  { %v198_v60 = vmul.f32 %v195_v28, %v193_v46 }
 0x1ac   :  { %v185_v61 = vsub.f32 1.5, %v184_v59 }
 0x1ad   :  { %v4451_v62 = vadd.f32 %v200_v32, %v198_v60 }
 0x1ae   :  { %v186_v63 = vmul.f32 %v4031_v52, %v185_v61 }
 0x1af   :  { %3619 = vmatmul.msk.f32.gmra.mxu1 %vm99_vm1, %v4451_v62  ;;  %3628 = vmatmul.msk.f32.gmra.mxu2 %vm99_vm1, %v4451_v62 }
 0x1b0   :  { %v190_v0 = vsel %vm189_vm14, %v4031_v52, %v186_v63  ;;  %3637 = vmatmul.msk.f32.gmra.mxu3 %vm99_vm1, %v4451_v62  ;;  %v4000_v52 = vld [vmem:[%s5621_s5 + $0x5] ss:$0 sm:$0xff] }
 0x1b1   :  { %v194_v51 = vmul.f32 %v190_v0, %v4385_v56 }
 0x1b3   :  { %v199_v1 = vmul.f32 %v195_v28, %v194_v51 }
 0x1b5   :  { %v4460_v2 = vadd.f32 %v200_v32, %v199_v1 }
 0x1b7   :  { %3620 = vmatmul.msk.f32.gmra.mxu1 %vm99_vm1, %v4460_v2  ;;  %3629 = vmatmul.msk.f32.gmra.mxu2 %vm99_vm1, %v4460_v2 }
 0x1b8   :  { %3638 = vmatmul.msk.f32.gmra.mxu3 %vm99_vm1, %v4460_v2 }
 0x21c   :  { %v242_v5 = vpop.f32.mrf.mxu1 }
 0x21d   :  { %v243_v16 = vadd.f32 %v3996_v11, %v242_v5 }
 0x222   :  { %v281_v3 = vpop.f32.mrf.mxu2 }
 0x223   :  { %v320_v4 = vpop.f32.mrf.mxu3  ;;  %v282_v14 = vadd.f32 %v3997_v6, %v281_v3 }
 0x224   :  { %v321_v13 = vadd.f32 %v3998_v7, %v320_v4  ;;  %v245_v20 = vpop.f32.mrf.mxu1 }
 0x225   :  { %v246_v25 = vadd.f32 %v3996_v11, %v245_v20 }
 0x22a   :  { %v284_v56 = vpop.f32.mrf.mxu2 }
 0x22b   :  { %v285_v8 = vadd.f32 %v3997_v6, %v284_v56  ;;  %v323_v9 = vpop.f32.mrf.mxu3 }
 0x22c   :  { %v324_v10 = vadd.f32 %v3998_v7, %v323_v9  ;;  %v248_v32 = vpop.f32.mrf.mxu1 }
 0x22d   :  { %3639 = vmatpush.xpose.msk.msrb.mxu1 %vm332_vm15, %v285_v8  ;;  %v249_v36 = vadd.f32 %v3996_v11, %v248_v32 }
 0x22e   :  { %468 = vmatpush.msrb.mxu3 %v324_v10 }
 0x230   :  { %469 = vmatpush.msrb.mxu3 %v321_v13 }
 0x231   :  { %3640 = vmatpush.xpose.msk.msrb.mxu1 %vm332_vm15, %v282_v14 }
 0x232   :  { %v287_v18 = vpop.f32.mrf.mxu2 }
 0x233   :  { %v326_v21 = vpop.f32.mrf.mxu3  ;;  %v288_v34 = vadd.f32 %v3997_v6, %v287_v18 }
 0x234   :  { %3641 = vmatmul.msk.f32.vlgmr.msrb.gmra.mxu1 %vm332_vm15, %v243_v16  ;;  %v327_v33 = vadd.f32 %v3998_v7, %v326_v21  ;;  %v251_v43 = vpop.f32.mrf.mxu1 }
 0x235   :  { %529 = vmatpush.msra.mxu1 %v3654_v15  ;;  %v252_v44 = vadd.f32 %v3996_v11, %v251_v43 }
 0x237   :  { %530 = vmatpush.msra.mxu1 %v3653_v19 }
 0x239   :  { %531 = vmatpush.msra.mxu1 %v3652_v23 }
 0x23a   :  { %v290_v27 = vpop.f32.mrf.mxu2 }
 0x23b   :  { %532 = vmatpush.msra.mxu1 %v3651_v24  ;;  %v291_v28 = vadd.f32 %v3997_v6, %v290_v27  ;;  %v329_v29 = vpop.f32.mrf.mxu3 }
 0x23c   :  { %3642 = vmatmul.msk.f32.gmra.mxu1 %vm332_vm15, %v246_v25  ;;  %v330_v31 = vadd.f32 %v3998_v7, %v329_v29 }
 0x23d   :  { %3643 = vmatpush.xpose.msk.msrb.mxu2 %vm332_vm15, %v291_v28 }
 0x23e   :  { %497 = vmatpush.msrb.mxu0 %v330_v31  ;;  %v3999_v31 = vld [vmem:[%s5621_s5 + $0x1] ss:$0 sm:$0xff] }
 0x240   :  { %498 = vmatpush.msrb.mxu0 %v327_v33 }
 0x241   :  { %3644 = vmatpush.xpose.msk.msrb.mxu2 %vm332_vm15, %v288_v34 }
 0x244   :  { %3645 = vmatmul.msk.f32.vlgmr.msrb.gmra.mxu2 %vm332_vm15, %v249_v36  ;;  %3656 = vmatmul.msk.f32.vlgmr.msra.gmra.mxu1 %vm99_vm1, %v4433_v42 }
 0x245   :  { %568 = vmatpush.msra.mxu2 %v3663_v35 }
 0x247   :  { %569 = vmatpush.msra.mxu2 %v3662_v37 }
 0x249   :  { %570 = vmatpush.msra.mxu2 %v3661_v39 }
 0x24b   :  { %571 = vmatpush.msra.mxu2 %v3660_v40 }
 0x24c   :  { %3646 = vmatmul.msk.f32.gmra.mxu2 %vm332_vm15, %v252_v44  ;;  %3657 = vmatmul.msk.f32.gmra.mxu1 %vm99_vm1, %v4442_v53 }
 0x254   :  { %3658 = vmatmul.msk.f32.gmra.mxu1 %vm99_vm1, %v4451_v62  ;;  %3665 = vmatmul.msk.f32.vlgmr.msra.gmra.mxu2 %vm99_vm1, %v4433_v42 }
 0x25c   :  { %3659 = vmatmul.msk.f32.gmra.mxu1 %vm99_vm1, %v4460_v2  ;;  %3666 = vmatmul.msk.f32.gmra.mxu2 %vm99_vm1, %v4442_v53 }
 0x264   :  { %3667 = vmatmul.msk.f32.gmra.mxu2 %vm99_vm1, %v4451_v62 }
 0x26c   :  { %3668 = vmatmul.msk.f32.gmra.mxu2 %vm99_vm1, %v4460_v2 }
 0x2b1   :  { %v362_v48 = vpop.f32.mrf.mxu1 }
 0x2b2   :  { %v404_v50 = vsel %vm403_vm0, %v362_v48, -inf }
 0x2b9   :  { %v365_v3 = vpop.f32.mrf.mxu1 }
 0x2ba   :  { %v407_v56 = vsel %vm403_vm0, %v365_v3, -inf }
 0x2c1   :  { %v534_v25 = vpop.f32.mrf.mxu1 }
 0x2c2   :  { %v535_v34 = vadd.f32 %v3999_v31, %v534_v25 }
 0x2c7   :  { %v397_v45 = vpop.f32.mrf.mxu2 }
 0x2c8   :  { %v410_v12 = vsel %vm403_vm0, %v397_v45, -inf }
 0x2c9   :  { %411 = vmax.xlane.f32.xlu2 %v410_v12  ;;  %v537_v36 = vpop.f32.mrf.mxu1  ;;  %v3671_v12 = vld [vmem:[%s5620_s4 + $0x130] sm:$0xff] }
 0x2ca   :  { %v538_v37 = vadd.f32 %v3999_v31, %v537_v36 }
 0x2cf   :  { %v400_v41 = vpop.f32.mrf.mxu2 }
 0x2d0   :  { %v413_v47 = vsel %vm403_vm0, %v400_v41, -inf }
 0x2d1   :  { %414 = vmax.xlane.f32.xlu0 %v413_v47  ;;  %v540_v39 = vpop.f32.mrf.mxu1  ;;  %v3669_v47 = vld [vmem:[%s5620_s4 + $0x120] sm:$0xff] }
 0x2d2   :  { %v541_v40 = vadd.f32 %v3999_v31, %v540_v39  ;;  %v3711_v39 = vld [vmem:[%s5620_s4 + $0xd8] sm:$0xff] }
 0x2d7   :  { %v573_v49 = vpop.f32.mrf.mxu2 }
 0x2d8   :  { %v574_v57 = vadd.f32 %v4000_v52, %v573_v49 }
 0x2d9   :  { %405 = vmax.xlane.f32.xlu0 %v404_v50  ;;  %v543_v43 = vpop.f32.mrf.mxu1 }
 0x2da   :  { %v544_v44 = vadd.f32 %v3999_v31, %v543_v43  ;;  %v3710_v43 = vld [vmem:[%s5620_s4 + $0xd0] sm:$0xff] }
 0x2df   :  { %v576_v54 = vpop.f32.mrf.mxu2 }
 0x2e0   :  { %v577_v55 = vadd.f32 %v4000_v52, %v576_v54 }
 0x2e2   :  { %3678 = vmatpush.xpose.msk.msra.mxu0 %vm332_vm15, %v577_v55 }
 0x2e6   :  { %3679 = vmatpush.xpose.msk.msra.mxu0 %vm332_vm15, %v574_v57 }
 0x2e7   :  { %v579_v10 = vpop.f32.mrf.mxu2 }
 0x2e8   :  { %v580_v23 = vadd.f32 %v4000_v52, %v579_v10 }
 0x2ef   :  { %v582_v13 = vpop.f32.mrf.mxu2 }
 0x2f0   :  { %v583_v19 = vadd.f32 %v4000_v52, %v582_v13 }
 0x33c   :  { %v412_v58 = vpop.xlane.xlu2 %411 }
 0x33d   :  { %v418_v46 = vsub.f32 %v397_v45, %v412_v58  ;;  %v3672_v45 = vld [vmem:[%s5620_s4 + $0x138] sm:$0xff] }
 0x33e   :  { %607 = vmatpush.msra.mxu3 %v3672_v45  ;;  %v3709_v45 = vld [vmem:[%s5620_s4 + $0xc8] sm:$0xff] }
 0x33f   :  { %v424_v59 = vmul.f32 1.442695, %v418_v46 }
 0x340   :  { %608 = vmatpush.msra.mxu3 %v3671_v12 }
 0x341   :  { %4032 = vpow2.f32 %v424_v59 }
 0x344   :  { %v415_v60 = vpop.xlane.xlu0 %414 }
 0x345   :  { %v419_v61 = vsub.f32 %v400_v41, %v415_v60  ;;  %v3670_v41 = vld [vmem:[%s5620_s4 + $0x128] sm:$0xff] }
 0x346   :  { %609 = vmatpush.msra.mxu3 %v3670_v41  ;;  %v3708_v41 = vld [vmem:[%s5620_s4 + $0xc0] sm:$0xff] }
 0x347   :  { %v4033_v63 = vpop.eup %4032  ;;  %v426_v0 = vmul.f32 1.442695, %v419_v61 }
 0x348   :  { %v434_v51 = vsel %vm403_vm0, %v4033_v63, 0.0  ;;  %610 = vmatpush.msra.mxu3 %v3669_v47 }
 0x349   :  { %4034 = vpow2.f32 %v426_v0  ;;  %435 = vadd.xlane.f32.xlu1 %v434_v51 }
 0x34c   :  { %v406_v1 = vpop.xlane.xlu0 %405 }
 0x34d   :  { %v416_v4 = vsub.f32 %v362_v48, %v406_v1  ;;  %v506_v48 = vld [vmem:[%s5622_s6] sm:$0xff] }
 0x34f   :  { %v4035_v5 = vpop.eup %4034  ;;  %v420_v6 = vmul.f32 1.442695, %v416_v4 }
 0x350   :  { %v437_v7 = vsel %vm403_vm0, %v4035_v5, 0.0 }
 0x351   :  { %4036 = vpow2.f32 %v420_v6  ;;  %408 = vmax.xlane.f32.xlu1 %v407_v56  ;;  %438 = vadd.xlane.f32.xlu2 %v437_v7 }
 0x357   :  { %v4037_v8 = vpop.eup %4036 }
 0x358   :  { %v428_v9 = vsel %vm403_vm0, %v4037_v8, 0.0 }
 0x359   :  { %429 = vadd.xlane.f32.xlu2 %v428_v9 }
 0x3bc   :  { %v436_v11 = vpop.xlane.xlu1 %435 }
 0x3bd   :  { %4038 = vrcp.f32 %v436_v11  ;;  %v4001_v11 = vld [vmem:[%s5621_s5 + $0x9] ss:$0 sm:$0xff] }
 0x3c3   :  { %v4039_v14 = vpop.eup %4038 }
 0x3c4   :  { %v409_v15 = vpop.xlane.xlu1 %408  ;;  %v439_v16 = vpop.xlane.xlu2 %438  ;;  %v446_v18 = vmul.f32 %v4039_v14, %v4033_v63 }
 0x3c5   :  { %v417_v20 = vsub.f32 %v365_v3, %v409_v15  ;;  %4040 = vrcp.f32 %v439_v16 }
 0x3c6   :  { %3649 = vmatmul.msk.f32.vlgmr.msrb.gmra.mxu0 %vm403_vm0, %v446_v18 }
 0x3c7   :  { %v422_v21 = vmul.f32 1.442695, %v417_v20  ;;  %3682 = vmatpush.xpose.msk.msrb.mxu0 %vm332_vm15, %v583_v19 }
 0x3c9   :  { %4042 = vpow2.f32 %v422_v21 }
 0x3cb   :  { %v4041_v24 = vpop.eup %4040  ;;  %3683 = vmatpush.xpose.msk.msrb.mxu0 %vm332_vm15, %v580_v23 }
 0x3cc   :  { %v430_v27 = vpop.xlane.xlu2 %429  ;;  %v447_v28 = vmul.f32 %v4041_v24, %v4035_v5 }
 0x3cd   :  { %4044 = vrcp.f32 %v430_v27 }
 0x3ce   :  { %3650 = vmatmul.msk.f32.gmra.mxu0 %vm403_vm0, %v447_v28 }
 0x3cf   :  { %v4043_v29 = vpop.eup %4042 }
 0x3d0   :  { %v431_v32 = vsel %vm403_vm0, %v4043_v29, 0.0 }
 0x3d1   :  { %432 = vadd.xlane.f32.xlu0 %v431_v32 }
 0x3d3   :  { %v4045_v33 = vpop.eup %4044 }
 0x3d4   :  { %v444_v35 = vmul.f32 %v4045_v33, %v4037_v8 }
 0x3d6   :  { %3647 = vmatmul.msk.f32.vlgmr.msrb.gmra.mxu3 %vm403_vm0, %v444_v35  ;;  %3680 = vmatmul.msk.f32.vlgmr.msra.gmra.mxu0 %vm332_vm15, %v535_v34 }
 0x3d7   :  { %866 = vmatpush.msra.mxu0 %v506_v48  ;;  %v3699_v48 = vld [vmem:[%s5620_s4 + $0x40] sm:$0xff] }
 0x3de   :  { %3681 = vmatmul.msk.f32.gmra.mxu0 %vm332_vm15, %v538_v37  ;;  %v3702_v37 = vld [vmem:[%s5620_s4 + $0x58] sm:$0xff] }
 0x3e6   :  { %3684 = vmatmul.msk.f32.vlgmr.msrb.gmra.mxu0 %vm332_vm15, %v541_v40  ;;  %v3701_v40 = vld [vmem:[%s5620_s4 + $0x50] sm:$0xff] }
 0x3ee   :  { %3685 = vmatmul.msk.f32.gmra.mxu0 %vm332_vm15, %v544_v44  ;;  %v3700_v44 = vld [vmem:[%s5620_s4 + $0x48] sm:$0xff] }
 0x443   :  { %v500_v49 = vpop.f32.mrf.mxu0 }
 0x444   :  { %v433_v50 = vpop.xlane.xlu0 %432 }
 0x445   :  { %4046 = vrcp.f32 %v433_v50 }
 0x44b   :  { %v4047_v52 = vpop.eup %4046  ;;  %v503_v54 = vpop.f32.mrf.mxu0 }
 0x44c   :  { %v445_v55 = vmul.f32 %v4047_v52, %v4043_v29 }
 0x44e   :  { %3648 = vmatmul.msk.f32.gmra.mxu3 %vm403_vm0, %v445_v55 }
 0x453   :  { %v653_v57 = vpop.f32.mrf.mxu0 }
 0x454   :  { %v694_v58 = vsel %vm403_vm0, %v653_v57, -inf }
 0x455   :  { %695 = vmax.xlane.f32.xlu0 %v694_v58 }
 0x456   :  { %3674 = vmatmul.msk.f32.vlgmr.msra.gmra.mxu3 %vm99_vm1, %v4433_v42 }
 0x459   :  { %v471_v46 = vpop.f32.mrf.mxu3 }
 0x45a   :  { %3695 = vmatmul.msk.f32.vlgmr.msra.gmra.mxu0 %vm332_vm15, %v471_v46 }
 0x45b   :  { %v656_v59 = vpop.f32.mrf.mxu0 }
 0x45c   :  { %v697_v0 = vsel %vm403_vm0, %v656_v59, -inf }
 0x45e   :  { %3675 = vmatmul.msk.f32.gmra.mxu3 %vm99_vm1, %v4442_v53 }
 0x463   :  { %v688_v60 = vpop.f32.mrf.mxu0 }
 0x464   :  { %v700_v61 = vsel %vm403_vm0, %v688_v60, -inf }
 0x465   :  { %701 = vmax.xlane.f32.xlu1 %v700_v61 }
 0x466   :  { %3676 = vmatmul.msk.f32.gmra.mxu3 %vm99_vm1, %v4451_v62 }
 0x46b   :  { %v691_v63 = vpop.f32.mrf.mxu0 }
 0x46c   :  { %v703_v51 = vsel %vm403_vm0, %v691_v63, -inf }
 0x46d   :  { %698 = vmax.xlane.f32.xlu1 %v697_v0  ;;  %704 = vmax.xlane.f32.xlu2 %v703_v51  ;;  %v3719_v0 = vld [vmem:[%s5620_s4 + $0x150] sm:$0xff]  ;;  %v3718_v51 = vld [vmem:[%s5620_s4 + $0x148] sm:$0xff] }
 0x46e   :  { %3677 = vmatmul.msk.f32.gmra.mxu3 %vm99_vm1, %v4460_v2 }
 0x4c8   :  { %v696_v1 = vpop.xlane.xlu0 %695 }
 0x4c9   :  { %v706_v3 = vsub.f32 %v653_v57, %v696_v1  ;;  %v3717_v1 = vld [vmem:[%s5620_s4 + $0x140] sm:$0xff] }
 0x4cb   :  { %v710_v4 = vmul.f32 1.442695, %v706_v3 }
 0x4cd   :  { %4048 = vpow2.f32 %v710_v4 }
 0x4d1   :  { %v474_v5 = vpop.f32.mrf.mxu3 }
 0x4d2   :  { %3696 = vmatmul.msk.f32.gmra.mxu0 %vm332_vm15, %v474_v5 }
 0x4d3   :  { %v4049_v6 = vpop.eup %4048 }
 0x4d4   :  { %v718_v56 = vsel %vm403_vm0, %v4049_v6, 0.0 }
 0x4d5   :  { %719 = vadd.xlane.f32.xlu1 %v718_v56  ;;  %v3755_v56 = vld [vmem:[%s5620_s4 + $0xf8] sm:$0xff] }
 0x4d8   :  { %v702_v7 = vpop.xlane.xlu1 %701 }
 0x4d9   :  { %v708_v8 = vsub.f32 %v688_v60, %v702_v7  ;;  %v612_v9 = vpop.f32.mrf.mxu3  ;;  %v3690_v60 = vld [vmem:[%s5622_s6 + $0x8] sm:$0xff]  ;;  %v3754_v7 = vld [vmem:[%s5620_s4 + $0xf0] sm:$0xff] }
 0x4da   :  { %3697 = vmatmul.msk.f32.gmra.mxu0 %vm332_vm15, %v500_v49  ;;  %v613_v24 = vadd.f32 %v4001_v11, %v612_v9  ;;  %825 = vmatpush.msrb.mxu3 %v3690_v60 }
 0x4db   :  { %v714_v10 = vmul.f32 1.442695, %v708_v8  ;;  %v3753_v8 = vld [vmem:[%s5620_s4 + $0xe8] sm:$0xff] }
 0x4dd   :  { %4050 = vpow2.f32 %v714_v10  ;;  %v4003_v10 = vld [vmem:[%s5621_s5 + $0x6] ss:$0 sm:$0xff] }
 0x4e0   :  { %v699_v13 = vpop.xlane.xlu1 %698  ;;  %v705_v14 = vpop.xlane.xlu2 %704 }
 0x4e1   :  { %v707_v15 = vsub.f32 %v656_v59, %v699_v13  ;;  %v709_v16 = vsub.f32 %v691_v63, %v705_v14  ;;  %v615_v18 = vpop.f32.mrf.mxu3  ;;  %v3720_v63 = vld [vmem:[%s5620_s4 + $0x158] sm:$0xff]  ;;  %v3752_v14 = vld [vmem:[%s5620_s4 + $0xe0] sm:$0xff] }
 0x4e2   :  { %v616_v19 = vadd.f32 %v4001_v11, %v615_v18  ;;  %3698 = vmatmul.msk.f32.gmra.mxu0 %vm332_vm15, %v503_v54  ;;  %980 = vmatpush.msra.mxu3 %v3720_v63 }
 0x4e3   :  { %v4051_v20 = vpop.eup %4050  ;;  %v712_v21 = vmul.f32 1.442695, %v707_v15  ;;  %v716_v23 = vmul.f32 1.442695, %v709_v16  ;;  %v4002_v15 = vld [vmem:[%s5621_s5 + $0x2] ss:$0 sm:$0xff] }
 0x4e4   :  { %758 = vmatpush.msrb.mxu1 %v616_v19  ;;  %v724_v25 = vsel %vm403_vm0, %v4051_v20, 0.0  ;;  %981 = vmatpush.msra.mxu3 %v3719_v0  ;;  %v4005_v0 = vld [vmem:[%s5621_s5 + $0x7] ss:$0 sm:$0xff] }
 0x4e5   :  { %4052 = vpow2.f32 %v712_v21  ;;  %725 = vadd.xlane.f32.xlu2 %v724_v25 }
 0x4e6   :  { %4054 = vpow2.f32 %v716_v23  ;;  %759 = vmatpush.msrb.mxu1 %v613_v24  ;;  %982 = vmatpush.msra.mxu3 %v3718_v51 }
 0x4e8   :  { %902 = vmatpush.msra.mxu1 %v3702_v37  ;;  %983 = vmatpush.msra.mxu3 %v3717_v1 }
 0x4e9   :  { %v618_v27 = vpop.f32.mrf.mxu3 }
 0x4ea   :  { %v619_v35 = vadd.f32 %v4001_v11, %v618_v27  ;;  %903 = vmatpush.msra.mxu1 %v3701_v40 }
 0x4eb   :  { %v4053_v28 = vpop.eup %4052 }
 0x4ec   :  { %v4055_v29 = vpop.eup %4054  ;;  %v721_v31 = vsel %vm403_vm0, %v4053_v28, 0.0  ;;  %904 = vmatpush.msra.mxu1 %v3700_v44 }
 0x4ed   :  { %722 = vadd.xlane.f32.xlu2 %v721_v31  ;;  %v727_v32 = vsel %vm403_vm0, %v4055_v29, 0.0 }
 0x4ee   :  { %728 = vadd.xlane.f32.xlu0 %v727_v32  ;;  %905 = vmatpush.msra.mxu1 %v3699_v48  ;;  %v4694_v32 = vpop.f32.mrf.mxu0  ;;  %v3738_v48 = vld [vmem:[%s5622_s6 + $0x10] sm:$0xff] }
 0x4f1   :  { %v621_v33 = vpop.f32.mrf.mxu3 }
 0x4f2   :  { %v622_v34 = vadd.f32 %v4001_v11, %v621_v33 }
 0x4f4   :  { %787 = vmatpush.msrb.mxu2 %v622_v34 }
 0x4f6   :  { %788 = vmatpush.msrb.mxu2 %v619_v35 }
 0x4f8   :  { %941 = vmatpush.msra.mxu2 %v3711_v39 }
 0x4fa   :  { %942 = vmatpush.msra.mxu2 %v3710_v43 }
 0x4fc   :  { %943 = vmatpush.msra.mxu2 %v3709_v45 }
 0x4fe   :  { %944 = vmatpush.msra.mxu2 %v3708_v41 }
 0x548   :  { %v720_v36 = vpop.xlane.xlu1 %719 }
 0x549   :  { %4056 = vrcp.f32 %v720_v36 }
 0x54f   :  { %v4057_v12 = vpop.eup %4056  ;;  %v4698_v34 = vpop.f32.mrf.mxu0 }
 0x550   :  { %v734_v47 = vmul.f32 %v4057_v12, %v4049_v6  ;;  %v4004_v12 = vld [vmem:[%s5621_s5 + $0xa] ss:$0 sm:$0xff] }
 0x552   :  { %3686 = vmatmul.msk.f32.vlgmr.msrb.gmra.mxu1 %vm403_vm0, %v734_v47 }
 0x557   :  { %v4702_v36 = vpop.f32.mrf.mxu0 }
 0x558   :  { %v726_v49 = vpop.xlane.xlu2 %725 }
 0x559   :  { %4058 = vrcp.f32 %v726_v49 }
 0x55f   :  { %v4059_v50 = vpop.eup %4058  ;;  %v4708_v40 = vpop.f32.mrf.mxu0 }
 0x560   :  { %v736_v52 = vmul.f32 %v4059_v50, %v4051_v20  ;;  %v723_v54 = vpop.xlane.xlu2 %722 }
 0x561   :  { %4060 = vrcp.f32 %v723_v54  ;;  %v729_v55 = vpop.xlane.xlu0 %728 }
 0x562   :  { %4062 = vrcp.f32 %v729_v55  ;;  %3688 = vmatmul.msk.f32.vlgmr.msrb.gmra.mxu2 %vm403_vm0, %v736_v52 }
 0x567   :  { %v4061_v57 = vpop.eup %4060 }
 0x568   :  { %v4063_v58 = vpop.eup %4062  ;;  %v735_v46 = vmul.f32 %v4061_v57, %v4053_v28 }
 0x569   :  { %v737_v59 = vmul.f32 %v4063_v58, %v4055_v29 }
 0x56a   :  { %3687 = vmatmul.msk.f32.gmra.mxu1 %vm403_vm0, %v735_v46 }
 0x56b   :  { %3689 = vmatmul.msk.f32.gmra.mxu2 %vm403_vm0, %v737_v59 }
 0x572   :  { %3704 = vmatmul.msk.f32.vlgmr.msra.gmra.mxu1 %vm99_vm1, %v4433_v42 }
 0x573   :  { %3713 = vmatmul.msk.f32.vlgmr.msra.gmra.mxu2 %vm99_vm1, %v4433_v42 }
 0x57a   :  { %3705 = vmatmul.msk.f32.gmra.mxu1 %vm99_vm1, %v4442_v53 }
 0x57b   :  { %3714 = vmatmul.msk.f32.gmra.mxu2 %vm99_vm1, %v4442_v53 }
 0x582   :  { %3706 = vmatmul.msk.f32.gmra.mxu1 %vm99_vm1, %v4451_v62 }
 0x583   :  { %3715 = vmatmul.msk.f32.gmra.mxu2 %vm99_vm1, %v4451_v62 }
 0x58a   :  { %3707 = vmatmul.msk.f32.gmra.mxu1 %vm99_vm1, %v4460_v2 }
 0x58b   :  { %3716 = vmatmul.msk.f32.gmra.mxu2 %vm99_vm1, %v4460_v2 }
 0x5cf   :  { %v761_v61 = vpop.f32.mrf.mxu1 }
 0x5d0   :  { %3691 = vmatmul.msk.f32.vlgmr.msrb.gmra.mxu3 %vm332_vm15, %v761_v61 }
 0x5d1   :  { %1277 = vmatpush.msrb.mxu3 %v3755_v56 }
 0x5d3   :  { %1278 = vmatpush.msrb.mxu3 %v3754_v7 }
 0x5d5   :  { %1279 = vmatpush.msrb.mxu3 %v3753_v8 }
 0x5d7   :  { %1280 = vmatpush.msrb.mxu3 %v3752_v14 }
 0x5e5   :  { %v790_v3 = vpop.f32.mrf.mxu2 }
 0x5e7   :  { %v764_v4 = vpop.f32.mrf.mxu1 }
 0x5e8   :  { %3692 = vmatmul.msk.f32.gmra.mxu3 %vm332_vm15, %v764_v4 }
 0x5ee   :  { %v793_v5 = vpop.f32.mrf.mxu2 }
 0x5ef   :  { %v907_v9 = vpop.f32.mrf.mxu1 }
 0x5f0   :  { %3693 = vmatmul.msk.f32.gmra.mxu3 %vm332_vm15, %v790_v3  ;;  %v908_v18 = vadd.f32 %v4002_v15, %v907_v9 }
 0x5f6   :  { %v946_v6 = vpop.f32.mrf.mxu2 }
 0x5f7   :  { %v947_v16 = vadd.f32 %v4003_v10, %v946_v6  ;;  %v910_v20 = vpop.f32.mrf.mxu1 }
 0x5f8   :  { %3694 = vmatmul.msk.f32.gmra.mxu3 %vm332_vm15, %v793_v5  ;;  %v911_v21 = vadd.f32 %v4002_v15, %v910_v20 }
 0x5fe   :  { %v949_v11 = vpop.f32.mrf.mxu2 }
 0x5ff   :  { %v950_v13 = vadd.f32 %v4003_v10, %v949_v11  ;;  %v913_v25 = vpop.f32.mrf.mxu1 }
 0x600   :  { %3722 = vmatmul.msk.f32.vlgmr.msra.gmra.mxu3 %vm99_vm1, %v4433_v42  ;;  %v914_v28 = vadd.f32 %v4002_v15, %v913_v25 }
 0x601   :  { %3726 = vmatpush.xpose.msk.msrb.mxu0 %vm332_vm15, %v950_v13 }
 0x605   :  { %3727 = vmatpush.xpose.msk.msrb.mxu0 %vm332_vm15, %v947_v16 }
 0x606   :  { %v952_v19 = vpop.f32.mrf.mxu2 }
 0x607   :  { %v953_v27 = vadd.f32 %v4003_v10, %v952_v19  ;;  %v916_v29 = vpop.f32.mrf.mxu1 }
 0x608   :  { %3728 = vmatmul.msk.f32.vlgmr.msrb.gmra.mxu0 %vm332_vm15, %v908_v18  ;;  %3723 = vmatmul.msk.f32.gmra.mxu3 %vm99_vm1, %v4442_v53  ;;  %v917_v31 = vadd.f32 %v4002_v15, %v916_v29  ;;  %v3744_v29 = vld [vmem:[%s5620_s4 + $0x68] sm:$0xff] }
 0x60e   :  { %v955_v23 = vpop.f32.mrf.mxu2 }
 0x60f   :  { %v956_v24 = vadd.f32 %v4003_v10, %v955_v23 }
 0x610   :  { %3729 = vmatmul.msk.f32.gmra.mxu0 %vm332_vm15, %v911_v21  ;;  %3724 = vmatmul.msk.f32.gmra.mxu3 %vm99_vm1, %v4451_v62 }
 0x611   :  { %3730 = vmatpush.xpose.msk.msrb.mxu1 %vm332_vm15, %v956_v24 }
 0x615   :  { %3731 = vmatpush.xpose.msk.msrb.mxu1 %vm332_vm15, %v953_v27  ;;  %v3746_v27 = vld [vmem:[%s5620_s4 + $0x78] sm:$0xff] }
 0x618   :  { %3732 = vmatmul.msk.f32.vlgmr.msrb.gmra.mxu1 %vm332_vm15, %v914_v28  ;;  %3725 = vmatmul.msk.f32.gmra.mxu3 %vm99_vm1, %v4460_v2  ;;  %v3745_v28 = vld [vmem:[%s5620_s4 + $0x70] sm:$0xff] }
 0x619   :  { %1198 = vmatpush.msra.mxu1 %v3738_v48  ;;  %v3761_v48 = vld [vmem:[%s5620_s4 + $0x160] sm:$0xff] }
 0x620   :  { %3733 = vmatmul.msk.f32.gmra.mxu1 %vm332_vm15, %v917_v31  ;;  %3757 = vmatmul.msk.f32.vlgmr.msrb.gmra.mxu3 %vm99_vm1, %v4433_v42  ;;  %v3743_v31 = vld [vmem:[%s5620_s4 + $0x60] sm:$0xff] }
 0x628   :  { %3758 = vmatmul.msk.f32.gmra.mxu3 %vm99_vm1, %v4442_v53 }
 0x630   :  { %3759 = vmatmul.msk.f32.gmra.mxu3 %vm99_vm1, %v4451_v62 }
 0x638   :  { %3760 = vmatmul.msk.f32.gmra.mxu3 %vm99_vm1, %v4460_v2 }
 0x653   :  { %v4696_v33 = vpop.f32.mrf.mxu3 }
 0x66b   :  { %v4700_v35 = vpop.f32.mrf.mxu3 }
 0x673   :  { %v4704_v37 = vpop.f32.mrf.mxu3 }
 0x67b   :  { %v4706_v39 = vpop.f32.mrf.mxu3 }
 0x683   :  { %v985_v43 = vpop.f32.mrf.mxu3 }
 0x684   :  { %v986_v50 = vadd.f32 %v4004_v12, %v985_v43 }
 0x685   :  { %v1026_v44 = vpop.f32.mrf.mxu0 }
 0x686   :  { %v1067_v45 = vsel %vm403_vm0, %v1026_v44, -inf }
 0x687   :  { %1068 = vmax.xlane.f32.xlu0 %v1067_v45  ;;  %v3764_v45 = vld [vmem:[%s5620_s4 + $0x178] sm:$0xff] }
 0x68b   :  { %v988_v41 = vpop.f32.mrf.mxu3 }
 0x68c   :  { %v989_v47 = vadd.f32 %v4004_v12, %v988_v41  ;;  %v3762_v41 = vld [vmem:[%s5620_s4 + $0x168] sm:$0xff] }
 0x68d   :  { %v1029_v49 = vpop.f32.mrf.mxu0 }
 0x68e   :  { %v1070_v52 = vsel %vm403_vm0, %v1029_v49, -inf  ;;  %1131 = vmatpush.msrb.mxu2 %v989_v47 }
 0x68f   :  { %1071 = vmax.xlane.f32.xlu1 %v1070_v52 }
 0x690   :  { %1132 = vmatpush.msrb.mxu2 %v986_v50 }
 0x692   :  { %1238 = vmatpush.msra.mxu2 %v3746_v27 }
 0x693   :  { %v991_v54 = vpop.f32.mrf.mxu3 }
 0x694   :  { %v992_v60 = vadd.f32 %v4004_v12, %v991_v54  ;;  %1239 = vmatpush.msra.mxu2 %v3745_v28 }
 0x695   :  { %v1061_v55 = vpop.f32.mrf.mxu1 }
 0x696   :  { %v1073_v57 = vsel %vm403_vm0, %v1061_v55, -inf  ;;  %1240 = vmatpush.msra.mxu2 %v3744_v29 }
 0x697   :  { %1074 = vmax.xlane.f32.xlu2 %v1073_v57 }
 0x698   :  { %1241 = vmatpush.msra.mxu2 %v3743_v31 }
 0x69b   :  { %v994_v58 = vpop.f32.mrf.mxu3 }
 0x69c   :  { %v995_v46 = vadd.f32 %v4004_v12, %v994_v58  ;;  %v3763_v12 = vld [vmem:[%s5620_s4 + $0x170] sm:$0xff] }
 0x69d   :  { %v1064_v59 = vpop.f32.mrf.mxu1 }
 0x69e   :  { %v1076_v61 = vsel %vm403_vm0, %v1064_v59, -inf  ;;  %1160 = vmatpush.msra.mxu0 %v995_v46 }
 0x69f   :  { %1077 = vmax.xlane.f32.xlu0 %v1076_v61 }
 0x6a0   :  { %1161 = vmatpush.msra.mxu0 %v992_v60 }
 0x6a2   :  { %1316 = vmatpush.msrb.mxu0 %v3764_v45 }
 0x6a3   :  { %v1282_v63 = vpop.f32.mrf.mxu3 }
 0x6a4   :  { %v1283_v3 = vadd.f32 %v4005_v0, %v1282_v63  ;;  %1317 = vmatpush.msrb.mxu0 %v3763_v12 }
 0x6a6   :  { %1318 = vmatpush.msrb.mxu0 %v3762_v41 }
 0x6a8   :  { %1319 = vmatpush.msrb.mxu0 %v3761_v48 }
 0x6ab   :  { %v1285_v51 = vpop.f32.mrf.mxu3 }
 0x6ac   :  { %v1286_v1 = vadd.f32 %v4005_v0, %v1285_v51 }
 0x6ae   :  { %3770 = vmatpush.xpose.msk.msrb.mxu1 %vm332_vm15, %v1286_v1 }
 0x6b2   :  { %3771 = vmatpush.xpose.msk.msrb.mxu1 %vm332_vm15, %v1283_v3 }
 0x6b3   :  { %v1288_v43 = vpop.f32.mrf.mxu3 }
 0x6bb   :  { %v1291_v47 = vpop.f32.mrf.mxu3 }
 0x6bc   :  { %v1292_v54 = vadd.f32 %v4005_v0, %v1291_v47 }
 0x6fa   :  { %v1069_v4 = vpop.xlane.xlu0 %1068 }
 0x6fb   :  { %v1079_v5 = vsub.f32 %v1026_v44, %v1069_v4 }
 0x6fd   :  { %v1083_v6 = vmul.f32 1.442695, %v1079_v5 }
 0x6ff   :  { %4064 = vpow2.f32 %v1083_v6 }
 0x702   :  { %v1072_v56 = vpop.xlane.xlu1 %1071 }
 0x703   :  { %v1080_v7 = vsub.f32 %v1029_v49, %v1072_v56  ;;  %v4007_v56 = vld [vmem:[%s5621_s5 + $0xb] ss:$0 sm:$0xff] }
 0x705   :  { %v4065_v8 = vpop.eup %4064  ;;  %v1085_v9 = vmul.f32 1.442695, %v1080_v7 }
 0x706   :  { %v1091_v10 = vsel %vm403_vm0, %v4065_v8, 0.0 }
 0x707   :  { %4066 = vpow2.f32 %v1085_v9  ;;  %1092 = vadd.xlane.f32.xlu1 %v1091_v10 }
 0x70a   :  { %v1075_v11 = vpop.xlane.xlu2 %1074 }
 0x70b   :  { %v1081_v13 = vsub.f32 %v1061_v55, %v1075_v11  ;;  %v1289_v55 = vadd.f32 %v4005_v0, %v1288_v43 }
 0x70d   :  { %v4067_v14 = vpop.eup %4066  ;;  %v1087_v15 = vmul.f32 1.442695, %v1081_v13 }
 0x70e   :  { %v1094_v16 = vsel %vm403_vm0, %v4067_v14, 0.0 }
 0x70f   :  { %4068 = vpow2.f32 %v1087_v15  ;;  %1095 = vadd.xlane.f32.xlu2 %v1094_v16 }
 0x712   :  { %v1078_v18 = vpop.xlane.xlu0 %1077 }
 0x713   :  { %v1082_v19 = vsub.f32 %v1064_v59, %v1078_v18 }
 0x715   :  { %v4069_v20 = vpop.eup %4068  ;;  %v1089_v21 = vmul.f32 1.442695, %v1082_v19 }
 0x716   :  { %v1097_v23 = vsel %vm403_vm0, %v4069_v20, 0.0 }
 0x717   :  { %4070 = vpow2.f32 %v1089_v21  ;;  %1098 = vadd.xlane.f32.xlu0 %v1097_v23 }
 0x71d   :  { %v4071_v24 = vpop.eup %4070 }
 0x71e   :  { %v1100_v25 = vsel %vm403_vm0, %v4071_v24, 0.0 }
 0x71f   :  { %1101 = vadd.xlane.f32.xlu1 %v1100_v25 }
 0x77a   :  { %v1093_v44 = vpop.xlane.xlu1 %1092 }
 0x77b   :  { %4072 = vrcp.f32 %v1093_v44 }
 0x781   :  { %v4073_v49 = vpop.eup %4072 }
 0x782   :  { %v1107_v50 = vmul.f32 %v4073_v49, %v4065_v8  ;;  %v1096_v52 = vpop.xlane.xlu2 %1095 }
 0x783   :  { %4074 = vrcp.f32 %v1096_v52 }
 0x784   :  { %3734 = vmatmul.msk.f32.vlgmr.msrb.gmra.mxu2 %vm403_vm0, %v1107_v50 }
 0x785   :  { %3774 = vmatpush.xpose.msk.msrb.mxu2 %vm332_vm15, %v1292_v54 }
 0x789   :  { %v4075_v57 = vpop.eup %4074  ;;  %3775 = vmatpush.xpose.msk.msrb.mxu2 %vm332_vm15, %v1289_v55 }
 0x78a   :  { %v1099_v58 = vpop.xlane.xlu0 %1098  ;;  %v1108_v46 = vmul.f32 %v4075_v57, %v4067_v14 }
 0x78b   :  { %4076 = vrcp.f32 %v1099_v58 }
 0x78c   :  { %3735 = vmatmul.msk.f32.gmra.mxu2 %vm403_vm0, %v1108_v46 }
 0x791   :  { %v4077_v59 = vpop.eup %4076 }
 0x792   :  { %v1109_v60 = vmul.f32 %v4077_v59, %v4069_v20  ;;  %v1102_v61 = vpop.xlane.xlu1 %1101 }
 0x793   :  { %4078 = vrcp.f32 %v1102_v61 }
 0x794   :  { %3736 = vmatmul.msk.f32.vlgmr.msra.gmra.mxu0 %vm403_vm0, %v1109_v60  ;;  %3748 = vmatmul.msk.f32.vlgmr.msra.gmra.mxu2 %vm99_vm1, %v4433_v42 }
 0x799   :  { %v4079_v63 = vpop.eup %4078 }
 0x79a   :  { %v1110_v51 = vmul.f32 %v4079_v63, %v4071_v24 }
 0x79c   :  { %3737 = vmatmul.msk.f32.gmra.mxu0 %vm403_vm0, %v1110_v51  ;;  %3749 = vmatmul.msk.f32.gmra.mxu2 %vm99_vm1, %v4442_v53 }
 0x7a4   :  { %3750 = vmatmul.msk.f32.gmra.mxu2 %vm99_vm1, %v4451_v62  ;;  %3766 = vmatmul.msk.f32.vlgmr.msrb.gmra.mxu0 %vm99_vm1, %v4433_v42 }
 0x7ac   :  { %3751 = vmatmul.msk.f32.gmra.mxu2 %vm99_vm1, %v4460_v2  ;;  %3767 = vmatmul.msk.f32.gmra.mxu0 %vm99_vm1, %v4442_v53 }
 0x7b4   :  { %3768 = vmatmul.msk.f32.gmra.mxu0 %vm99_vm1, %v4451_v62  ;;  %v4006_v62 = vld [vmem:[%s5621_s5 + $0x3] ss:$0 sm:$0xff] }
 0x7bc   :  { %3769 = vmatmul.msk.f32.gmra.mxu0 %vm99_vm1, %v4460_v2 }
 0x807   :  { %v1134_v0 = vpop.f32.mrf.mxu2 }
 0x808   :  { %3739 = vmatmul.msk.f32.vlgmr.msra.gmra.mxu1 %vm332_vm15, %v1134_v0 }
 0x80f   :  { %v1137_v1 = vpop.f32.mrf.mxu2 }
 0x810   :  { %3740 = vmatmul.msk.f32.gmra.mxu1 %vm332_vm15, %v1137_v1 }
 0x811   :  { %v1163_v3 = vpop.f32.mrf.mxu0 }
 0x817   :  { %v1243_v42 = vpop.f32.mrf.mxu2 }
 0x818   :  { %3741 = vmatmul.msk.f32.gmra.mxu1 %vm332_vm15, %v1163_v3  ;;  %v1244_v2 = vadd.f32 %v4006_v62, %v1243_v42 }
 0x819   :  { %v1166_v4 = vpop.f32.mrf.mxu0 }
 0x81f   :  { %v1246_v5 = vpop.f32.mrf.mxu2 }
 0x820   :  { %3742 = vmatmul.msk.f32.gmra.mxu1 %vm332_vm15, %v1166_v4  ;;  %v1247_v11 = vadd.f32 %v4006_v62, %v1246_v5 }
 0x821   :  { %v1321_v53 = vpop.f32.mrf.mxu0 }
 0x822   :  { %v1322_v10 = vadd.f32 %v4007_v56, %v1321_v53 }
 0x827   :  { %v1249_v6 = vpop.f32.mrf.mxu2 }
 0x828   :  { %v1250_v7 = vadd.f32 %v4006_v62, %v1249_v6  ;;  %3772 = vmatmul.msk.f32.vlgmr.msrb.gmra.mxu1 %vm332_vm15, %v1244_v2 }
 0x829   :  { %v1324_v8 = vpop.f32.mrf.mxu0 }
 0x82a   :  { %v1325_v9 = vadd.f32 %v4007_v56, %v1324_v8  ;;  %3776 = vmatmul.msk.f32.vlgmr.msrb.gmra.mxu2 %vm332_vm15, %v1250_v7 }
 0x82c   :  { %1467 = vmatpush.msra.mxu3 %v1325_v9 }
 0x82e   :  { %1468 = vmatpush.msra.mxu3 %v1322_v10 }
 0x82f   :  { %v1252_v13 = vpop.f32.mrf.mxu2 }
 0x830   :  { %v1253_v14 = vadd.f32 %v4006_v62, %v1252_v13  ;;  %3773 = vmatmul.msk.f32.gmra.mxu1 %vm332_vm15, %v1247_v11  ;;  %v3782_v11 = vld [vmem:[%s5622_s6 + $0x18] sm:$0xff] }
 0x831   :  { %v1327_v15 = vpop.f32.mrf.mxu0  ;;  %1534 = vmatpush.msra.mxu1 %v3782_v11 }
 0x832   :  { %3777 = vmatmul.msk.f32.gmra.mxu2 %vm332_vm15, %v1253_v14  ;;  %v1328_v19 = vadd.f32 %v4007_v56, %v1327_v15 }
 0x839   :  { %v1330_v16 = vpop.f32.mrf.mxu0 }
 0x83a   :  { %v1331_v18 = vadd.f32 %v4007_v56, %v1330_v16 }
 0x83c   :  { %1496 = vmatpush.msra.mxu0 %v1331_v18  ;;  %v869_v18 = vadd.f32 %v4694_v32, %v4696_v33 }
 0x83e   :  { %1497 = vmatpush.msra.mxu0 %v1328_v19 }
 0x885   :  { %v4789_v20 = vpop.f32.mrf.mxu1 }
 0x886   :  { %v1212_v19 = vadd.f32 %v4789_v20, %v869_v18 }
 0x88d   :  { %v4791_v21 = vpop.f32.mrf.mxu1 }
 0x895   :  { %v4793_v23 = vpop.f32.mrf.mxu1 }
 0x89d   :  { %v4795_v24 = vpop.f32.mrf.mxu1 }
 0x8a5   :  { %v1362_v25 = vpop.f32.mrf.mxu1 }
 0x8a6   :  { %v1403_v27 = vsel %vm403_vm0, %v1362_v25, -inf }
 0x8a7   :  { %1404 = vmax.xlane.f32.xlu2 %v1403_v27 }
 0x8ad   :  { %v1365_v28 = vpop.f32.mrf.mxu1  ;;  %v1397_v29 = vpop.f32.mrf.mxu2 }
 0x8ae   :  { %v1409_v31 = vsel %vm403_vm0, %v1397_v29, -inf  ;;  %v1406_v43 = vsel %vm403_vm0, %v1365_v28, -inf }
 0x8af   :  { %1410 = vmax.xlane.f32.xlu1 %v1409_v31  ;;  %1407 = vmax.xlane.f32.xlu0 %v1406_v43 }
 0x8b5   :  { %v1400_v44 = vpop.f32.mrf.mxu2 }
 0x8b6   :  { %v1412_v45 = vsel %vm403_vm0, %v1400_v44, -inf }
 0x8b7   :  { %1413 = vmax.xlane.f32.xlu2 %v1412_v45 }
 0x91a   :  { %v1405_v12 = vpop.xlane.xlu2 %1404 }
 0x91b   :  { %v1415_v41 = vsub.f32 %v1362_v25, %v1405_v12 }
 0x91d   :  { %v1419_v47 = vmul.f32 1.442695, %v1415_v41  ;;  %v875_v41 = vadd.f32 %v4702_v36, %v4704_v37 }
 0x91f   :  { %4080 = vpow2.f32 %v1419_v47 }
 0x922   :  { %v1411_v48 = vpop.xlane.xlu1 %1410  ;;  %v1408_v49 = vpop.xlane.xlu0 %1407 }
 0x923   :  { %v1417_v50 = vsub.f32 %v1397_v29, %v1411_v48  ;;  %v1416_v52 = vsub.f32 %v1365_v28, %v1408_v49  ;;  %v4822_v28 = vld [vmem:[%s5619_s3] sm:$0xff]  ;;  %v878_v49 = vadd.f32 %v4708_v40, %v4706_v39 }
 0x924   :  { %v1556_v29 = vperm.slane %v4822_v28, 7 }
 0x925   :  { %v4081_v54 = vpop.eup %4080  ;;  %v1423_v55 = vmul.f32 1.442695, %v1417_v50  ;;  %v1421_v57 = vmul.f32 1.442695, %v1416_v52 }
 0x926   :  { %v1427_v58 = vsel %vm403_vm0, %v4081_v54, 0.0 }
 0x927   :  { %4082 = vpow2.f32 %v1423_v55  ;;  %1428 = vadd.xlane.f32.xlu0 %v1427_v58 }
 0x928   :  { %4084 = vpow2.f32 %v1421_v57 }
 0x92a   :  { %v1414_v46 = vpop.xlane.xlu2 %1413 }
 0x92b   :  { %v1418_v59 = vsub.f32 %v1400_v44, %v1414_v46  ;;  %v872_v44 = vadd.f32 %v4698_v34, %v4700_v35 }
 0x92d   :  { %v4083_v60 = vpop.eup %4082  ;;  %v1425_v61 = vmul.f32 1.442695, %v1418_v59  ;;  %v1213_v33 = vadd.f32 %v4791_v21, %v872_v44 }
 0x92e   :  { %v4085_v63 = vpop.eup %4084  ;;  %v1433_v51 = vsel %vm403_vm0, %v4083_v60, 0.0 }
 0x92f   :  { %4086 = vpow2.f32 %v1425_v61  ;;  %1434 = vadd.xlane.f32.xlu2 %v1433_v51  ;;  %v1430_v0 = vsel %vm403_vm0, %v4085_v63, 0.0 }
 0x930   :  { %1431 = vadd.xlane.f32.xlu1 %v1430_v0 }
 0x935   :  { %v4087_v1 = vpop.eup %4086 }
 0x936   :  { %v1436_v3 = vsel %vm403_vm0, %v4087_v1, 0.0 }
 0x937   :  { %1437 = vadd.xlane.f32.xlu0 %v1436_v3 }
 0x99a   :  { %v1429_v42 = vpop.xlane.xlu0 %1428 }
 0x99b   :  { %4088 = vrcp.f32 %v1429_v42 }
 0x9a1   :  { %v4089_v4 = vpop.eup %4088 }
 0x9a2   :  { %v1443_v5 = vmul.f32 %v4089_v4, %v4081_v54  ;;  %v1435_v53 = vpop.xlane.xlu2 %1434 }
 0x9a3   :  { %4090 = vrcp.f32 %v1435_v53  ;;  %v1432_v62 = vpop.xlane.xlu1 %1431 }
 0x9a4   :  { %4092 = vrcp.f32 %v1432_v62  ;;  %3778 = vmatmul.msk.f32.vlgmr.msra.gmra.mxu3 %vm403_vm0, %v1443_v5  ;;  %v1662_v62 = vld [vmem:[%s5623_s7 + $0x18] sm:$0xff] }
 0x9a5   :  { %1691 = vmatpush.msra.mxu2 %v1662_v62 }
 0x9a9   :  { %v4091_v2 = vpop.eup %4090 }
 0x9aa   :  { %v4093_v6 = vpop.eup %4092  ;;  %v1445_v56 = vmul.f32 %v4091_v2, %v4083_v60  ;;  %v1438_v7 = vpop.xlane.xlu0 %1437  ;;  %v1661_v2 = vld [vmem:[%s5623_s7 + $0x10] sm:$0xff] }
 0x9ab   :  { %4094 = vrcp.f32 %v1438_v7  ;;  %v1444_v8 = vmul.f32 %v4093_v6, %v4085_v63  ;;  %1692 = vmatpush.msra.mxu2 %v1661_v2  ;;  %v1660_v6 = vld [vmem:[%s5623_s7 + $0x8] sm:$0xff] }
 0x9ac   :  { %3780 = vmatmul.msk.f32.vlgmr.msra.gmra.mxu0 %vm403_vm0, %v1445_v56  ;;  %v1659_v56 = vld [vmem:[%s5623_s7] sm:$0xff] }
 0x9ad   :  { %3779 = vmatmul.msk.f32.gmra.mxu3 %vm403_vm0, %v1444_v8  ;;  %1693 = vmatpush.msra.mxu2 %v1660_v6 }
 0x9af   :  { %1694 = vmatpush.msra.mxu2 %v1659_v56 }
 0x9b1   :  { %v4095_v9 = vpop.eup %4094 }
 0x9b2   :  { %v1446_v10 = vmul.f32 %v4095_v9, %v4087_v1 }
 0x9b4   :  { %3781 = vmatmul.msk.f32.gmra.mxu0 %vm403_vm0, %v1446_v10 }
 0xa27   :  { %v1470_v13 = vpop.f32.mrf.mxu3 }
 0xa28   :  { %3783 = vmatmul.msk.f32.vlgmr.msra.gmra.mxu1 %vm332_vm15, %v1470_v13 }
 0xa29   :  { %v1499_v15 = vpop.f32.mrf.mxu0 }
 0xa30   :  { %v1473_v14 = vpop.f32.mrf.mxu3 }
 0xa31   :  { %3784 = vmatmul.msk.f32.gmra.mxu1 %vm332_vm15, %v1473_v14  ;;  %v1502_v16 = vpop.f32.mrf.mxu0 }
 0xa39   :  { %3785 = vmatmul.msk.f32.gmra.mxu1 %vm332_vm15, %v1499_v15 }
 0xa41   :  { %3786 = vmatmul.msk.f32.gmra.mxu1 %vm332_vm15, %v1502_v16 }
 0xaa5   :  { %v1536_v25 = vpop.f32.mrf.mxu1 }
 0xaa6   :  { %v1548_v27 = vadd.f32 %v1536_v25, %v1212_v19 }
 0xaa8   :  { %v1552_v31 = vadd.f32 %v1548_v27, %v4341_v17  ;;  %v1214_v17 = vadd.f32 %v4793_v23, %v875_v41  ;;  %v1654_v41 = vperm.slane %v4822_v28, 6 }
 0xaaa   :  { %v4826_v43 = vadd.f32 %v1556_v29, %v1552_v31 }
 0xaac   :  { %v1561_v32 = vsel %vm99_vm1, %v4826_v43, 0.0 }
 0xaad   :  { %1562 = vadd.xlane.f32.xlu1 %v1561_v32  ;;  %v1649_v32 = vperm.slane %v4822_v28, 5 }
 0xaae   :  { %v1539_v20 = vpop.f32.mrf.mxu1 }
 0xaaf   :  { %v1549_v45 = vadd.f32 %v1539_v20, %v1213_v33 }
 0xab1   :  { %v1553_v12 = vadd.f32 %v1549_v45, %v4348_v22  ;;  %v1215_v22 = vadd.f32 %v4795_v24, %v878_v49  ;;  %v1759_v45 = vld [vmem:[%s5625_s9 + $0x78] sm:$0xff] }
 0xab2   :  { %1760 = vmatpush.msrb.mxu3 %v1759_v45 }
 0xab3   :  { %v4836_v47 = vadd.f32 %v1556_v29, %v1553_v12  ;;  %v1758_v12 = vld [vmem:[%s5625_s9 + $0x70] sm:$0xff] }
 0xab4   :  { %1761 = vmatpush.msrb.mxu3 %v1758_v12 }
 0xab5   :  { %v1564_v34 = vsel %vm99_vm1, %v4836_v47, 0.0 }
 0xab6   :  { %1565 = vadd.xlane.f32.xlu2 %v1564_v34  ;;  %v1542_v35 = vpop.f32.mrf.mxu1 }
 0xab7   :  { %v1550_v48 = vadd.f32 %v1542_v35, %v1214_v17  ;;  %v1757_v35 = vld [vmem:[%s5625_s9 + $0x68] sm:$0xff] }
 0xab8   :  { %1762 = vmatpush.msrb.mxu3 %v1757_v35 }
 0xab9   :  { %v1554_v21 = vadd.f32 %v1550_v48, %v4352_v26 }
 0xabb   :  { %v4844_v50 = vadd.f32 %v1556_v29, %v1554_v21 }
 0xabd   :  { %v1567_v36 = vsel %vm99_vm1, %v4844_v50, 0.0 }
 0xabe   :  { %1568 = vadd.xlane.f32.xlu0 %v1567_v36  ;;  %v1545_v37 = vpop.f32.mrf.mxu1 }
 0xabf   :  { %v1551_v23 = vadd.f32 %v1545_v37, %v1215_v22 }
 0xac1   :  { %v1555_v52 = vadd.f32 %v1551_v23, %v4356_v30 }
 0xac3   :  { %v4850_v54 = vadd.f32 %v1556_v29, %v1555_v52 }
 0xac5   :  { %v1570_v26 = vsel %vm99_vm1, %v4850_v54, 0.0 }
 0xac6   :  { %1571 = vadd.xlane.f32.xlu1 %v1570_v26 }
 0xb20   :  { %v1563_v55 = vpop.xlane.xlu1 %1562 }
 0xb21   :  { %v1573_v39 = vmul.f32 %v1563_v55, %v4360_v38 }
 0xb23   :  { %v1577_v40 = vsub.f32 %v4826_v43, %v1573_v39 }
 0xb25   :  { %v1581_v24 = vmul.f32 %v1577_v40, %v1577_v40 }
 0xb27   :  { %v1585_v57 = vsel %vm99_vm1, %v1581_v24, 0.0 }
 0xb28   :  { %1586 = vadd.xlane.f32.xlu2 %v1585_v57 }
 0xb29   :  { %v1566_v58 = vpop.xlane.xlu2 %1565 }
 0xb2a   :  { %v1574_v46 = vmul.f32 %v1566_v58, %v4360_v38 }
 0xb2c   :  { %v4859_v30 = vsub.f32 %v4836_v47, %v1574_v46 }
 0xb2e   :  { %v1582_v59 = vmul.f32 %v4859_v30, %v4859_v30 }
 0xb30   :  { %v1588_v60 = vsel %vm99_vm1, %v1582_v59, 0.0 }
 0xb31   :  { %1589 = vadd.xlane.f32.xlu0 %v1588_v60  ;;  %v1569_v61 = vpop.xlane.xlu0 %1568 }
 0xb32   :  { %v1575_v63 = vmul.f32 %v1569_v61, %v4360_v38 }
 0xb34   :  { %v4866_v51 = vsub.f32 %v4844_v50, %v1575_v63 }
 0xb36   :  { %v1583_v0 = vmul.f32 %v4866_v51, %v4866_v51 }
 0xb38   :  { %v1591_v1 = vsel %vm99_vm1, %v1583_v0, 0.0 }
 0xb39   :  { %1592 = vadd.xlane.f32.xlu1 %v1591_v1  ;;  %v1572_v3 = vpop.xlane.xlu1 %1571 }
 0xb3a   :  { %v1576_v42 = vmul.f32 %v1572_v3, %v4360_v38 }
 0xb3c   :  { %v4873_v4 = vsub.f32 %v4850_v54, %v1576_v42 }
 0xb3e   :  { %v1584_v5 = vmul.f32 %v4873_v4, %v4873_v4 }
 0xb40   :  { %v1594_v53 = vsel %vm99_vm1, %v1584_v5, 0.0 }
 0xb41   :  { %1595 = vadd.xlane.f32.xlu2 %v1594_v53 }
 0xb9b   :  { %v1587_v7 = vpop.xlane.xlu2 %1586 }
 0xb9c   :  { %v1597_v8 = vmul.f32 %v1587_v7, %v4360_v38  ;;  %v1755_v7 = vld [vmem:[%s5625_s9 + $0x58] sm:$0xff] }
 0xb9e   :  { %v1601_v9 = vadd.f32 1e-05, %v1597_v8  ;;  %v1754_v8 = vld [vmem:[%s5625_s9 + $0x50] sm:$0xff] }
 0xba0   :  { %4096 = vrsqrt.f32 %v1601_v9  ;;  %vm1611_vm3 = vweird.f32 %v1601_v9 }
 0xba4   :  { %v1590_v10 = vpop.xlane.xlu0 %1589 }
 0xba5   :  { %v1598_v11 = vmul.f32 %v1590_v10, %v4360_v38  ;;  %v1751_v10 = vld [vmem:[%s5625_s9 + $0x38] sm:$0xff] }
 0xba6   :  { %v4097_v13 = vpop.eup %4096 }
 0xba7   :  { %v1606_v14 = vmul.f32 %v4097_v13, %v1601_v9  ;;  %v1602_v15 = vadd.f32 1e-05, %v1598_v11  ;;  %vm1612_vm2 = vweird.f32 %v4097_v13  ;;  %v1752_v9 = vld [vmem:[%s5625_s9 + $0x40] sm:$0xff]  ;;  %v1750_v11 = vld [vmem:[%s5625_s9 + $0x30] sm:$0xff] }
 0xba8   :  { %vm1613_vm4 = vmor %vm1611_vm3, %vm1612_vm2 }
 0xba9   :  { %v1607_v16 = vmul.f32 %v4097_v13, %v1606_v14  ;;  %4098 = vrsqrt.f32 %v1602_v15  ;;  %vm1621_vm6 = vweird.f32 %v1602_v15  ;;  %v1748_v14 = vld [vmem:[%s5625_s9 + $0x20] sm:$0xff] }
 0xbab   :  { %v1608_v18 = vmul.f32 0.5, %v1607_v16  ;;  %v1746_v16 = vld [vmem:[%s5625_s9 + $0x10] sm:$0xff] }
 0xbac   :  { %v1593_v19 = vpop.xlane.xlu1 %1592 }
 0xbad   :  { %v1609_v25 = vsub.f32 1.5, %v1608_v18  ;;  %v1599_v27 = vmul.f32 %v1593_v19, %v4360_v38  ;;  %v1745_v18 = vld [vmem:[%s5625_s9 + $0x8] sm:$0xff]  ;;  %v1744_v19 = vld [vmem:[%s5625_s9] sm:$0xff] }
 0xbaf   :  { %v4099_v29 = vpop.eup %4098  ;;  %v1610_v31 = vmul.f32 %v4097_v13, %v1609_v25  ;;  %v1603_v44 = vadd.f32 1e-05, %v1599_v27  ;;  %v4008_v25 = vld [vmem:[%s5624_s8] ss:$0 sm:$0xff] }
 0xbb0   :  { %v1616_v33 = vmul.f32 %v4099_v29, %v1602_v15  ;;  %vm1622_vm5 = vweird.f32 %v4099_v29  ;;  %v1747_v15 = vld [vmem:[%s5625_s9 + $0x18] sm:$0xff] }
 0xbb1   :  { %v1614_v20 = vsel %vm1613_vm4, %v4097_v13, %v1610_v31  ;;  %4100 = vrsqrt.f32 %v1603_v44  ;;  %vm1623_vm7 = vmor %vm1621_vm6, %vm1622_vm5  ;;  %vm1631_vm9 = vweird.f32 %v1603_v44  ;;  %v1749_v13 = vld [vmem:[%s5625_s9 + $0x28] sm:$0xff] }
 0xbb2   :  { %v1645_v17 = vmul.f32 %v1614_v20, %v1577_v40  ;;  %v1617_v34 = vmul.f32 %v4099_v29, %v1616_v33 }
 0xbb4   :  { %v1650_v48 = vmul.f32 %v1649_v32, %v1645_v17  ;;  %v1618_v21 = vmul.f32 0.5, %v1617_v34  ;;  %v1596_v49 = vpop.xlane.xlu2 %1595 }
 0xbb5   :  { %v1600_v22 = vmul.f32 %v1596_v49, %v4360_v38 }
 0xbb6   :  { %v1655_v36 = vadd.f32 %v1654_v41, %v1650_v48  ;;  %v1619_v37 = vsub.f32 1.5, %v1618_v21 }
 0xbb7   :  { %v4101_v23 = vpop.eup %4100  ;;  %v1604_v52 = vadd.f32 1e-05, %v1600_v22 }
 0xbb8   :  { %v1620_v28 = vmul.f32 %v4099_v29, %v1619_v37  ;;  %v1626_v26 = vmul.f32 %v4101_v23, %v1603_v44  ;;  %3787 = vmatmul.msk.f32.vlgmr.msra.gmra.mxu2 %vm99_vm1, %v1655_v36  ;;  %vm1632_vm8 = vweird.f32 %v4101_v23 }
 0xbb9   :  { %4102 = vrsqrt.f32 %v1604_v52  ;;  %vm1633_vm10 = vmor %vm1631_vm9, %vm1632_vm8  ;;  %vm1641_vm12 = vweird.f32 %v1604_v52 }
 0xbba   :  { %v1624_v55 = vsel %vm1623_vm7, %v4099_v29, %v1620_v28  ;;  %v1627_v39 = vmul.f32 %v4101_v23, %v1626_v26 }
 0xbbb   :  { %v1646_v40 = vmul.f32 %v1624_v55, %v4859_v30 }
 0xbbc   :  { %v1628_v24 = vmul.f32 0.5, %v1627_v39 }
 0xbbd   :  { %v1651_v57 = vmul.f32 %v1649_v32, %v1646_v40 }
 0xbbe   :  { %v1629_v58 = vsub.f32 1.5, %v1628_v24 }
 0xbbf   :  { %v4103_v46 = vpop.eup %4102  ;;  %v1656_v59 = vadd.f32 %v1654_v41, %v1651_v57 }
 0xbc0   :  { %v1630_v60 = vmul.f32 %v4101_v23, %v1629_v58  ;;  %v1636_v61 = vmul.f32 %v4103_v46, %v1604_v52  ;;  %vm1642_vm11 = vweird.f32 %v4103_v46 }
 0xbc1   :  { %3788 = vmatmul.msk.f32.gmra.mxu2 %vm99_vm1, %v1656_v59  ;;  %vm1643_vm13 = vmor %vm1641_vm12, %vm1642_vm11 }
 0xbc2   :  { %v1634_v63 = vsel %vm1633_vm10, %v4101_v23, %v1630_v60  ;;  %v1637_v0 = vmul.f32 %v4103_v46, %v1636_v61 }
 0xbc3   :  { %v1647_v1 = vmul.f32 %v1634_v63, %v4866_v51  ;;  %v1756_v51 = vld [vmem:[%s5625_s9 + $0x60] sm:$0xff] }
 0xbc4   :  { %v1638_v3 = vmul.f32 0.5, %v1637_v0  ;;  %1763 = vmatpush.msrb.mxu3 %v1756_v51 }
 0xbc5   :  { %v1652_v42 = vmul.f32 %v1649_v32, %v1647_v1 }
 0xbc6   :  { %v1639_v5 = vsub.f32 1.5, %v1638_v3  ;;  %1764 = vmatpush.msrb.mxu3 %v1755_v7 }
 0xbc7   :  { %v1657_v30 = vadd.f32 %v1654_v41, %v1652_v42 }
 0xbc8   :  { %v1640_v53 = vmul.f32 %v4103_v46, %v1639_v5  ;;  %1765 = vmatpush.msrb.mxu3 %v1754_v8 }
 0xbc9   :  { %3789 = vmatmul.msk.f32.gmra.mxu2 %vm99_vm1, %v1657_v30 }
 0xbca   :  { %v1644_v62 = vsel %vm1643_vm13, %v4103_v46, %v1640_v53 }
 0xbcb   :  { %v1648_v2 = vmul.f32 %v1644_v62, %v4873_v4  ;;  %v1753_v4 = vld [vmem:[%s5625_s9 + $0x48] sm:$0xff] }
 0xbcc   :  { %1766 = vmatpush.msrb.mxu3 %v1753_v4 }
 0xbcd   :  { %v1653_v6 = vmul.f32 %v1649_v32, %v1648_v2 }
 0xbce   :  { %1767 = vmatpush.msrb.mxu3 %v1752_v9 }
 0xbcf   :  { %v1658_v56 = vadd.f32 %v1654_v41, %v1653_v6 }
 0xbd0   :  { %1768 = vmatpush.msrb.mxu3 %v1751_v10 }
 0xbd1   :  { %3790 = vmatmul.msk.f32.gmra.mxu2 %vm99_vm1, %v1658_v56  ;;  %v4957_v56 = vld [vmem:[%s5619_s3 + $0x8] sm:$0x7f] }
 0xbd2   :  { %1769 = vmatpush.msrb.mxu3 %v1750_v11  ;;  %v1793_v51 = vperm.slane %v4957_v56, 0 }
 0xbd4   :  { %1770 = vmatpush.msrb.mxu3 %v1749_v13 }
 0xbd6   :  { %1771 = vmatpush.msrb.mxu3 %v1748_v14 }
 0xbd8   :  { %1772 = vmatpush.msrb.mxu3 %v1747_v15 }
 0xbda   :  { %1773 = vmatpush.msrb.mxu3 %v1746_v16 }
 0xbdc   :  { %1774 = vmatpush.msrb.mxu3 %v1745_v18 }
 0xbde   :  { %1775 = vmatpush.msrb.mxu3 %v1744_v19 }
 0xc3b   :  { %v1696_v27 = vpop.f32.mrf.mxu2 }
 0xc3c   :  { %v1697_v29 = vadd.f32 %v4008_v25, %v1696_v27 }
 0xc3e   :  { %v1708_v31 = vmul.f32 %v1697_v29, %v1697_v29 }
 0xc40   :  { %v1712_v44 = vmul.f32 %v1708_v31, %v1697_v29 }
 0xc42   :  { %v1716_v32 = vmul.f32 0.044715, %v1712_v44 }
 0xc44   :  { %v1720_v33 = vadd.f32 %v1716_v32, %v1697_v29  ;;  %v1699_v20 = vpop.f32.mrf.mxu2 }
 0xc45   :  { %v1700_v45 = vadd.f32 %v4008_v25, %v1699_v20 }
 0xc46   :  { %v1724_v12 = vmul.f32 0.7978846, %v1720_v33 }
 0xc47   :  { %v1709_v41 = vmul.f32 %v1700_v45, %v1700_v45 }
 0xc48   :  { %4104 = vtanh.f32 %v1724_v12 }
 0xc49   :  { %v1713_v17 = vmul.f32 %v1709_v41, %v1700_v45 }
 0xc4b   :  { %v1717_v34 = vmul.f32 0.044715, %v1713_v17 }
 0xc4c   :  { %v1702_v35 = vpop.f32.mrf.mxu2 }
 0xc4d   :  { %v1703_v48 = vadd.f32 %v4008_v25, %v1702_v35  ;;  %v1721_v21 = vadd.f32 %v1717_v34, %v1700_v45 }
 0xc4e   :  { %v4105_v49 = vpop.eup %4104 }
 0xc4f   :  { %v1732_v22 = vadd.f32 1.0, %v4105_v49  ;;  %v1710_v36 = vmul.f32 %v1703_v48, %v1703_v48  ;;  %v1725_v37 = vmul.f32 0.7978846, %v1721_v21 }
 0xc51   :  { %v1736_v23 = vmul.f32 0.5, %v1732_v22  ;;  %v1714_v52 = vmul.f32 %v1710_v36, %v1703_v48  ;;  %4106 = vtanh.f32 %v1725_v37 }
 0xc53   :  { %v1740_v28 = vmul.f32 %v1736_v23, %v1697_v29  ;;  %v1718_v26 = vmul.f32 0.044715, %v1714_v52  ;;  %v3794_v23 = vld [vmem:[%s5620_s4 + $0x198] sm:$0xff] }
 0xc54   :  { %v1705_v55 = vpop.f32.mrf.mxu2  ;;  %v3803_v52 = vld [vmem:[%s5620_s4 + $0x218] sm:$0xff]  ;;  %1930 = vmatpush.msrb.mxu0 %v3794_v23 }
 0xc55   :  { %v1706_v39 = vadd.f32 %v4008_v25, %v1705_v55  ;;  %1776 = vmatmul.f32.vlgmr.msrb.gmra.mxu3 %v1740_v28  ;;  %v1722_v40 = vadd.f32 %v1718_v26, %v1703_v48  ;;  %v3812_v28 = vld [vmem:[%s5620_s4 + $0x298] sm:$0xff]  ;;  %1969 = vmatpush.msrb.mxu1 %v3803_v52  ;;  %v3793_v26 = vld [vmem:[%s5620_s4 + $0x190] sm:$0xff] }
 0xc56   :  { %2008 = vmatpush.msrb.mxu2 %v3812_v28  ;;  %v3802_v55 = vld [vmem:[%s5620_s4 + $0x210] sm:$0xff]  ;;  %1931 = vmatpush.msrb.mxu0 %v3793_v26 }
 0xc57   :  { %v4107_v24 = vpop.eup %4106  ;;  %v1711_v57 = vmul.f32 %v1706_v39, %v1706_v39  ;;  %v1726_v58 = vmul.f32 0.7978846, %v1722_v40  ;;  %1970 = vmatpush.msrb.mxu1 %v3802_v55  ;;  %v3792_v40 = vld [vmem:[%s5620_s4 + $0x188] sm:$0xff] }
 0xc58   :  { %v1733_v46 = vadd.f32 1.0, %v4107_v24  ;;  %v3801_v24 = vld [vmem:[%s5620_s4 + $0x208] sm:$0xff]  ;;  %1932 = vmatpush.msrb.mxu0 %v3792_v40 }
 0xc59   :  { %v1715_v59 = vmul.f32 %v1711_v57, %v1706_v39  ;;  %4108 = vtanh.f32 %v1726_v58  ;;  %v3810_v57 = vld [vmem:[%s5620_s4 + $0x288] sm:$0xff]  ;;  %1971 = vmatpush.msrb.mxu1 %v3801_v24  ;;  %v3791_v58 = vld [vmem:[%s5620_s4 + $0x180] sm:$0xff] }
 0xc5a   :  { %v1737_v60 = vmul.f32 0.5, %v1733_v46  ;;  %v3800_v46 = vld [vmem:[%s5620_s4 + $0x200] sm:$0xff]  ;;  %1933 = vmatpush.msrb.mxu0 %v3791_v58 }
 0xc5b   :  { %v1719_v61 = vmul.f32 0.044715, %v1715_v59  ;;  %v3809_v59 = vld [vmem:[%s5620_s4 + $0x280] sm:$0xff]  ;;  %1972 = vmatpush.msrb.mxu1 %v3800_v46 }
 0xc5c   :  { %v1741_v63 = vmul.f32 %v1737_v60, %v1700_v45 }
 0xc5d   :  { %v1723_v0 = vadd.f32 %v1719_v61, %v1706_v39 }
 0xc5e   :  { %1779 = vmatmul.f32.gmra.mxu3 %v1741_v63 }
 0xc5f   :  { %v4109_v1 = vpop.eup %4108  ;;  %v1727_v3 = vmul.f32 0.7978846, %v1723_v0 }
 0xc60   :  { %v1734_v42 = vadd.f32 1.0, %v4109_v1 }
 0xc61   :  { %4110 = vtanh.f32 %v1727_v3 }
 0xc62   :  { %v1738_v5 = vmul.f32 0.5, %v1734_v42 }
 0xc64   :  { %v1742_v30 = vmul.f32 %v1738_v5, %v1703_v48 }
 0xc66   :  { %1782 = vmatmul.f32.gmra.mxu3 %v1742_v30 }
 0xc67   :  { %v4111_v53 = vpop.eup %4110 }
 0xc68   :  { %v1735_v62 = vadd.f32 1.0, %v4111_v53 }
 0xc6a   :  { %v1739_v2 = vmul.f32 0.5, %v1735_v62 }
 0xc6c   :  { %v1743_v6 = vmul.f32 %v1739_v2, %v1706_v39  ;;  %v3811_v39 = vld [vmem:[%s5620_s4 + $0x290] sm:$0xff] }
 0xc6d   :  { %2009 = vmatpush.msrb.mxu2 %v3811_v39 }
 0xc6e   :  { %1785 = vmatmul.f32.gmra.mxu3 %v1743_v6 }
 0xc6f   :  { %2010 = vmatpush.msrb.mxu2 %v3810_v57 }
 0xc71   :  { %2011 = vmatpush.msrb.mxu2 %v3809_v59 }
 0xcd8   :  { %v1777_v7 = vpop.f32.mrf.mxu3 }
 0xcd9   :  { %v1789_v8 = vadd.f32 %v1777_v7, %v4826_v43 }
 0xcdb   :  { %v4961_v4 = vadd.f32 %v1793_v51, %v1789_v8 }
 0xcdd   :  { %v1798_v9 = vsel %vm99_vm1, %v4961_v4, 0.0 }
 0xcde   :  { %1799 = vadd.xlane.f32.xlu0 %v1798_v9  ;;  %v5048_v9 = vperm.slane %v4957_v56, 1 }
 0xce1   :  { %v1780_v10 = vpop.f32.mrf.mxu3 }
 0xce2   :  { %v1790_v11 = vadd.f32 %v1780_v10, %v4836_v47 }
 0xce4   :  { %v4966_v13 = vadd.f32 %v1793_v51, %v1790_v11 }
 0xce6   :  { %v1801_v14 = vsel %vm99_vm1, %v4966_v13, 0.0 }
 0xce7   :  { %1802 = vadd.xlane.f32.xlu1 %v1801_v14  ;;  %v1891_v14 = vperm.slane %v4957_v56, 2  ;;  %v3832_v56 = vld [vmem:[%s5620_s4 + $0x1a8] sm:$0xff] }
 0xce9   :  { %v1783_v15 = vpop.f32.mrf.mxu3 }
 0xcea   :  { %v1791_v16 = vadd.f32 %v1783_v15, %v4844_v50 }
 0xcec   :  { %v4971_v18 = vadd.f32 %v1793_v51, %v1791_v16 }
 0xcee   :  { %v1804_v43 = vsel %vm99_vm1, %v4971_v18, 0.0 }
 0xcef   :  { %1805 = vadd.xlane.f32.xlu2 %v1804_v43  ;;  %v3834_v43 = vld [vmem:[%s5620_s4 + $0x1b8] sm:$0xff] }
 0xcf0   :  { %2221 = vmatpush.msra.mxu2 %v3834_v43 }
 0xcf1   :  { %v1786_v19 = vpop.f32.mrf.mxu3 }
 0xcf2   :  { %v1792_v25 = vadd.f32 %v1786_v19, %v4850_v54  ;;  %v3833_v19 = vld [vmem:[%s5620_s4 + $0x1b0] sm:$0xff] }
 0xcf3   :  { %2222 = vmatpush.msra.mxu2 %v3833_v19 }
 0xcf4   :  { %v4976_v27 = vadd.f32 %v1793_v51, %v1792_v25 }
 0xcf5   :  { %2223 = vmatpush.msra.mxu2 %v3832_v56  ;;  %v3840_v56 = vld [vmem:[%s5620_s4 + $0x220] sm:$0xff] }
 0xcf6   :  { %v1807_v47 = vsel %vm99_vm1, %v4976_v27, 0.0 }
 0xcf7   :  { %1808 = vadd.xlane.f32.xlu0 %v1807_v47 }
 0xd51   :  { %v1800_v29 = vpop.xlane.xlu0 %1799 }
 0xd52   :  { %v1810_v31 = vmul.f32 %v1800_v29, %v4360_v38 }
 0xd54   :  { %v4982_v50 = vsub.f32 %v4961_v4, %v1810_v31 }
 0xd56   :  { %v1818_v44 = vmul.f32 %v4982_v50, %v4982_v50 }
 0xd58   :  { %v1822_v32 = vsel %vm99_vm1, %v1818_v44, 0.0 }
 0xd59   :  { %1823 = vadd.xlane.f32.xlu1 %v1822_v32 }
 0xd5a   :  { %v1803_v33 = vpop.xlane.xlu1 %1802 }
 0xd5b   :  { %v1811_v54 = vmul.f32 %v1803_v33, %v4360_v38 }
 0xd5d   :  { %v4989_v20 = vsub.f32 %v4966_v13, %v1811_v54  ;;  %v3831_v54 = vld [vmem:[%s5620_s4 + $0x1a0] sm:$0xff] }
 0xd5e   :  { %2224 = vmatpush.msra.mxu2 %v3831_v54 }
 0xd5f   :  { %v1819_v45 = vmul.f32 %v4989_v20, %v4989_v20 }
 0xd61   :  { %v1825_v12 = vsel %vm99_vm1, %v1819_v45, 0.0 }
 0xd62   :  { %v1806_v41 = vpop.xlane.xlu2 %1805  ;;  %1826 = vadd.xlane.f32.xlu2 %v1825_v12 }
 0xd63   :  { %v1812_v17 = vmul.f32 %v1806_v41, %v4360_v38 }
 0xd65   :  { %v4996_v34 = vsub.f32 %v4971_v18, %v1812_v17 }
 0xd67   :  { %v1820_v35 = vmul.f32 %v4996_v34, %v4996_v34 }
 0xd69   :  { %v1828_v48 = vsel %vm99_vm1, %v1820_v35, 0.0 }
 0xd6a   :  { %1829 = vadd.xlane.f32.xlu0 %v1828_v48  ;;  %v1809_v21 = vpop.xlane.xlu0 %1808 }
 0xd6b   :  { %v1813_v49 = vmul.f32 %v1809_v21, %v4360_v38 }
 0xd6d   :  { %v5003_v22 = vsub.f32 %v4976_v27, %v1813_v49 }
 0xd6f   :  { %v1821_v36 = vmul.f32 %v5003_v22, %v5003_v22 }
 0xd71   :  { %v1831_v37 = vsel %vm99_vm1, %v1821_v36, 0.0 }
 0xd72   :  { %1832 = vadd.xlane.f32.xlu1 %v1831_v37 }
 0xdcc   :  { %v1824_v60 = vpop.xlane.xlu1 %1823 }
 0xdcd   :  { %v1834_v61 = vmul.f32 %v1824_v60, %v4360_v38 }
 0xdcf   :  { %v1838_v63 = vadd.f32 1e-05, %v1834_v61 }
 0xdd1   :  { %4112 = vrsqrt.f32 %v1838_v63  ;;  %vm1848_vm2 = vweird.f32 %v1838_v63 }
 0xdd5   :  { %v1827_v0 = vpop.xlane.xlu2 %1826 }
 0xdd6   :  { %v1835_v1 = vmul.f32 %v1827_v0, %v4360_v38 }
 0xdd7   :  { %v4113_v3 = vpop.eup %4112 }
 0xdd8   :  { %v1843_v42 = vmul.f32 %v4113_v3, %v1838_v63  ;;  %v1839_v5 = vadd.f32 1e-05, %v1835_v1  ;;  %vm1849_vm14 = vweird.f32 %v4113_v3  ;;  %v4010_v63 = vld [vmem:[%s5621_s5 + $0x10] ss:$0 sm:$0xff] }
 0xdd9   :  { %vm1850_vm3 = vmor %vm1848_vm2, %vm1849_vm14 }
 0xdda   :  { %v1844_v30 = vmul.f32 %v4113_v3, %v1843_v42  ;;  %4114 = vrsqrt.f32 %v1839_v5  ;;  %vm1858_vm5 = vweird.f32 %v1839_v5 }
 0xddc   :  { %v1845_v53 = vmul.f32 0.5, %v1844_v30 }
 0xddd   :  { %v1830_v62 = vpop.xlane.xlu0 %1829 }
 0xdde   :  { %v1846_v2 = vsub.f32 1.5, %v1845_v53  ;;  %v1836_v6 = vmul.f32 %v1830_v62, %v4360_v38 }
 0xde0   :  { %v4115_v51 = vpop.eup %4114  ;;  %v1847_v7 = vmul.f32 %v4113_v3, %v1846_v2  ;;  %v1840_v8 = vadd.f32 1e-05, %v1836_v6 }
 0xde1   :  { %v1853_v10 = vmul.f32 %v4115_v51, %v1839_v5  ;;  %vm1859_vm4 = vweird.f32 %v4115_v51  ;;  %v4011_v5 = vld [vmem:[%s5621_s5 + $0x14] ss:$0 sm:$0xff] }
 0xde2   :  { %v1851_v11 = vsel %vm1850_vm3, %v4113_v3, %v1847_v7  ;;  %4116 = vrsqrt.f32 %v1840_v8  ;;  %vm1860_vm6 = vmor %vm1858_vm5, %vm1859_vm4  ;;  %vm1868_vm8 = vweird.f32 %v1840_v8  ;;  %v4009_v3 = vld [vmem:[%s5621_s5 + $0xc] ss:$0 sm:$0xff] }
 0xde3   :  { %v1882_v15 = vmul.f32 %v1851_v11, %v4982_v50  ;;  %v1854_v16 = vmul.f32 %v4115_v51, %v1853_v10 }
 0xde5   :  { %v1887_v25 = vmul.f32 %v5048_v9, %v1882_v15  ;;  %v1855_v47 = vmul.f32 0.5, %v1854_v16  ;;  %v1833_v29 = vpop.xlane.xlu1 %1832  ;;  %v3843_v15 = vld [vmem:[%s5620_s4 + $0x238] sm:$0xff] }
 0xde6   :  { %v1837_v31 = vmul.f32 %v1833_v29, %v4360_v38  ;;  %v3841_v29 = vld [vmem:[%s5620_s4 + $0x228] sm:$0xff] }
 0xde7   :  { %v5063_v50 = vadd.f32 %v1891_v14, %v1887_v25  ;;  %v1856_v44 = vsub.f32 1.5, %v1855_v47  ;;  %v3842_v25 = vld [vmem:[%s5620_s4 + $0x230] sm:$0xff] }
 0xde8   :  { %v4117_v32 = vpop.eup %4116  ;;  %v1841_v33 = vadd.f32 1e-05, %v1837_v31 }
 0xde9   :  { %v1857_v45 = vmul.f32 %v4115_v51, %v1856_v44  ;;  %v1863_v12 = vmul.f32 %v4117_v32, %v1840_v8  ;;  %3796 = vmatmul.msk.f32.vlgmr.msrb.gmra.mxu0 %vm99_vm1, %v5063_v50  ;;  %3805 = vmatmul.msk.f32.vlgmr.msrb.gmra.mxu1 %vm99_vm1, %v5063_v50  ;;  %vm1869_vm7 = vweird.f32 %v4117_v32 }
 0xdea   :  { %4118 = vrsqrt.f32 %v1841_v33  ;;  %3814 = vmatmul.msk.f32.vlgmr.msrb.gmra.mxu2 %vm99_vm1, %v5063_v50  ;;  %vm1870_vm9 = vmor %vm1868_vm8, %vm1869_vm7  ;;  %vm1878_vm11 = vweird.f32 %v1841_v33 }
 0xdeb   :  { %v1861_v41 = vsel %vm1860_vm6, %v4115_v51, %v1857_v45  ;;  %v1864_v17 = vmul.f32 %v4117_v32, %v1863_v12 }
 0xdec   :  { %v1883_v35 = vmul.f32 %v1861_v41, %v4989_v20 }
 0xded   :  { %v1865_v48 = vmul.f32 0.5, %v1864_v17 }
 0xdee   :  { %v1888_v21 = vmul.f32 %v5048_v9, %v1883_v35  ;;  %v4013_v35 = vld [vmem:[%s5621_s5 + $0x11] ss:$0 sm:$0xff] }
 0xdef   :  { %v1866_v49 = vsub.f32 1.5, %v1865_v48 }
 0xdf0   :  { %v4119_v36 = vpop.eup %4118  ;;  %v5076_v37 = vadd.f32 %v1891_v14, %v1888_v21 }
 0xdf1   :  { %v1867_v23 = vmul.f32 %v4117_v32, %v1866_v49  ;;  %v1873_v52 = vmul.f32 %v4119_v36, %v1841_v33  ;;  %vm1879_vm10 = vweird.f32 %v4119_v36 }
 0xdf2   :  { %3797 = vmatmul.msk.f32.gmra.mxu0 %vm99_vm1, %v5076_v37  ;;  %3806 = vmatmul.msk.f32.gmra.mxu1 %vm99_vm1, %v5076_v37  ;;  %vm1880_vm12 = vmor %vm1878_vm11, %vm1879_vm10 }
 0xdf3   :  { %v1871_v28 = vsel %vm1870_vm9, %v4117_v32, %v1867_v23  ;;  %v1874_v20 = vmul.f32 %v4119_v36, %v1873_v52  ;;  %3815 = vmatmul.msk.f32.gmra.mxu2 %vm99_vm1, %v5076_v37 }
 0xdf4   :  { %v1884_v26 = vmul.f32 %v1871_v28, %v4996_v34 }
 0xdf5   :  { %v1875_v55 = vmul.f32 0.5, %v1874_v20 }
 0xdf6   :  { %v1889_v39 = vmul.f32 %v5048_v9, %v1884_v26 }
 0xdf7   :  { %v1876_v40 = vsub.f32 1.5, %v1875_v55 }
 0xdf8   :  { %v5086_v24 = vadd.f32 %v1891_v14, %v1889_v39 }
 0xdf9   :  { %v1877_v57 = vmul.f32 %v4119_v36, %v1876_v40 }
 0xdfa   :  { %3798 = vmatmul.msk.f32.gmra.mxu0 %vm99_vm1, %v5086_v24  ;;  %3807 = vmatmul.msk.f32.gmra.mxu1 %vm99_vm1, %v5086_v24 }
 0xdfb   :  { %v1881_v58 = vsel %vm1880_vm12, %v4119_v36, %v1877_v57  ;;  %3816 = vmatmul.msk.f32.gmra.mxu2 %vm99_vm1, %v5086_v24 }
 0xdfc   :  { %v1885_v34 = vmul.f32 %v1881_v58, %v5003_v22 }
 0xdfe   :  { %v1890_v46 = vmul.f32 %v5048_v9, %v1885_v34 }
 0xe00   :  { %v5096_v59 = vadd.f32 %v1891_v14, %v1890_v46 }
 0xe02   :  { %3799 = vmatmul.msk.f32.gmra.mxu0 %vm99_vm1, %v5096_v59  ;;  %3808 = vmatmul.msk.f32.gmra.mxu1 %vm99_vm1, %v5096_v59 }
 0xe03   :  { %3817 = vmatmul.msk.f32.gmra.mxu2 %vm99_vm1, %v5096_v59 }
 0xe0b   :  { %3836 = vmatmul.msk.f32.vlgmr.msra.gmra.mxu2 %vm99_vm1, %v5063_v50 }
 0xe13   :  { %3837 = vmatmul.msk.f32.gmra.mxu2 %vm99_vm1, %v5076_v37 }
 0xe1b   :  { %3838 = vmatmul.msk.f32.gmra.mxu2 %vm99_vm1, %v5086_v24 }
 0xe23   :  { %3839 = vmatmul.msk.f32.gmra.mxu2 %vm99_vm1, %v5096_v59 }
 0xe66   :  { %v1974_v22 = vpop.f32.mrf.mxu1  ;;  %v1935_v61 = vpop.f32.mrf.mxu0 }
 0xe67   :  { %v1975_v42 = vadd.f32 %v4010_v63, %v1974_v22  ;;  %v1936_v2 = vadd.f32 %v4009_v3, %v1935_v61 }
 0xe6d   :  { %v2013_v60 = vpop.f32.mrf.mxu2 }
 0xe6e   :  { %v2014_v51 = vadd.f32 %v4011_v5, %v2013_v60 }
 0xe6f   :  { %v1977_v0 = vpop.f32.mrf.mxu1  ;;  %v1938_v6 = vpop.f32.mrf.mxu0 }
 0xe70   :  { %v1978_v1 = vadd.f32 %v4010_v63, %v1977_v0  ;;  %v1939_v9 = vadd.f32 %v4009_v3, %v1938_v6 }
 0xe72   :  { %3818 = vmatpush.xpose.msk.msra.mxu0 %vm332_vm15, %v1978_v1 }
 0xe76   :  { %v2016_v30 = vpop.f32.mrf.mxu2  ;;  %3819 = vmatpush.xpose.msk.msra.mxu0 %vm332_vm15, %v1975_v42 }
 0xe77   :  { %v2017_v53 = vadd.f32 %v4011_v5, %v2016_v30  ;;  %v1980_v62 = vpop.f32.mrf.mxu1  ;;  %v1941_v11 = vpop.f32.mrf.mxu0 }
 0xe78   :  { %v1981_v14 = vadd.f32 %v4010_v63, %v1980_v62  ;;  %v1942_v43 = vadd.f32 %v4009_v3, %v1941_v11 }
 0xe79   :  { %3820 = vmatmul.msk.f32.vlgmr.msra.gmra.mxu0 %vm332_vm15, %v1936_v2 }
 0xe7a   :  { %2159 = vmatpush.msrb.mxu0 %v2017_v53 }
 0xe7c   :  { %2160 = vmatpush.msrb.mxu0 %v2014_v51 }
 0xe7e   :  { %v2019_v7 = vpop.f32.mrf.mxu2 }
 0xe7f   :  { %v1983_v8 = vpop.f32.mrf.mxu1  ;;  %v2020_v47 = vadd.f32 %v4011_v5, %v2019_v7  ;;  %v1944_v31 = vpop.f32.mrf.mxu0 }
 0xe80   :  { %v1984_v10 = vadd.f32 %v4010_v63, %v1983_v8  ;;  %v1945_v44 = vadd.f32 %v4009_v3, %v1944_v31 }
 0xe81   :  { %3821 = vmatmul.msk.f32.gmra.mxu0 %vm332_vm15, %v1939_v9 }
 0xe82   :  { %3822 = vmatpush.xpose.msk.msra.mxu3 %vm332_vm15, %v1984_v10 }
 0xe86   :  { %v2022_v16 = vpop.f32.mrf.mxu2  ;;  %3823 = vmatpush.xpose.msk.msra.mxu3 %vm332_vm15, %v1981_v14  ;;  %v4012_v14 = vld [vmem:[%s5621_s5 + $0xd] ss:$0 sm:$0xff] }
 0xe87   :  { %v2023_v19 = vadd.f32 %v4011_v5, %v2022_v16 }
 0xe89   :  { %2188 = vmatpush.msra.mxu1 %v2023_v19  ;;  %3824 = vmatmul.msk.f32.vlgmr.msra.gmra.mxu3 %vm332_vm15, %v1942_v43 }
 0xe8a   :  { %2260 = vmatpush.msrb.mxu3 %v3843_v15 }
 0xe8b   :  { %2189 = vmatpush.msra.mxu1 %v2020_v47 }
 0xe8c   :  { %2261 = vmatpush.msrb.mxu3 %v3842_v25 }
 0xe8e   :  { %2262 = vmatpush.msrb.mxu3 %v3841_v29  ;;  %v2226_v8 = vpop.f32.mrf.mxu2 }
 0xe8f   :  { %v2227_v43 = vadd.f32 %v4012_v14, %v2226_v8 }
 0xe90   :  { %2263 = vmatpush.msrb.mxu3 %v3840_v56 }
 0xe91   :  { %3825 = vmatmul.msk.f32.gmra.mxu3 %vm332_vm15, %v1945_v44 }
 0xe96   :  { %v2229_v25 = vpop.f32.mrf.mxu2 }
 0xe97   :  { %v2230_v47 = vadd.f32 %v4012_v14, %v2229_v25 }
 0xe99   :  { %3845 = vmatmul.msk.f32.vlgmr.msrb.gmra.mxu3 %vm99_vm1, %v5063_v50 }
 0xe9e   :  { %v2232_v29 = vpop.f32.mrf.mxu2 }
 0xe9f   :  { %v2233_v56 = vadd.f32 %v4012_v14, %v2232_v29  ;;  %v3891_v29 = vld [vmem:[%s5620_s4 + $0x258] sm:$0xff] }
 0xea1   :  { %3846 = vmatmul.msk.f32.gmra.mxu3 %vm99_vm1, %v5076_v37 }
 0xea6   :  { %v2235_v31 = vpop.f32.mrf.mxu2 }
 0xea7   :  { %v2236_v44 = vadd.f32 %v4012_v14, %v2235_v31  ;;  %v3890_v31 = vld [vmem:[%s5620_s4 + $0x250] sm:$0xff] }
 0xea9   :  { %3847 = vmatmul.msk.f32.gmra.mxu3 %vm99_vm1, %v5086_v24 }
 0xeb1   :  { %3848 = vmatmul.msk.f32.gmra.mxu3 %vm99_vm1, %v5096_v59 }
 0xef6   :  { %v2054_v12 = vpop.f32.mrf.mxu0 }
 0xef7   :  { %v2095_v17 = vsel %vm403_vm0, %v2054_v12, -inf }
 0xefe   :  { %v2057_v57 = vpop.f32.mrf.mxu0 }
 0xeff   :  { %v2098_v22 = vsel %vm403_vm0, %v2057_v57, -inf }
 0xf0c   :  { %v2089_v32 = vpop.f32.mrf.mxu3 }
 0xf0d   :  { %v2101_v33 = vsel %vm403_vm0, %v2089_v32, -inf }
 0xf0e   :  { %2102 = vmax.xlane.f32.xlu2 %v2101_v33  ;;  %v3851_v33 = vld [vmem:[%s5620_s4 + $0x2b0] sm:$0xff] }
 0xf14   :  { %v2092_v54 = vpop.f32.mrf.mxu3 }
 0xf15   :  { %v2104_v45 = vsel %vm403_vm0, %v2092_v54, -inf }
 0xf16   :  { %2105 = vmax.xlane.f32.xlu0 %v2104_v45  ;;  %v3830_v45 = vld [vmem:[%s5622_s6 + $0x20] sm:$0xff] }
 0xf1c   :  { %v2265_v41 = vpop.f32.mrf.mxu3 }
 0xf1d   :  { %v2266_v49 = vadd.f32 %v4013_v35, %v2265_v41 }
 0xf1e   :  { %2096 = vmax.xlane.f32.xlu0 %v2095_v17 }
 0xf24   :  { %v2268_v48 = vpop.f32.mrf.mxu3 }
 0xf25   :  { %v2269_v21 = vadd.f32 %v4013_v35, %v2268_v48 }
 0xf27   :  { %3858 = vmatpush.xpose.msk.msrb.mxu1 %vm332_vm15, %v2269_v21 }
 0xf2b   :  { %3859 = vmatpush.xpose.msk.msrb.mxu1 %vm332_vm15, %v2266_v49 }
 0xf2c   :  { %v2271_v0 = vpop.f32.mrf.mxu3 }
 0xf2d   :  { %v2272_v51 = vadd.f32 %v4013_v35, %v2271_v0  ;;  %v4014_v0 = vld [vmem:[%s5621_s5 + $0x15] ss:$0 sm:$0xff] }
 0xf34   :  { %v2274_v3 = vpop.f32.mrf.mxu3 }
 0xf35   :  { %v2275_v62 = vadd.f32 %v4013_v35, %v2274_v3 }
 0xf81   :  { %v2103_v36 = vpop.xlane.xlu2 %2102 }
 0xf82   :  { %v2109_v23 = vsub.f32 %v2089_v32, %v2103_v36  ;;  %v3852_v32 = vld [vmem:[%s5620_s4 + $0x2b8] sm:$0xff] }
 0xf83   :  { %2299 = vmatpush.msra.mxu0 %v3852_v32  ;;  %v3889_v32 = vld [vmem:[%s5620_s4 + $0x248] sm:$0xff] }
 0xf84   :  { %v2115_v52 = vmul.f32 1.442695, %v2109_v23 }
 0xf85   :  { %2300 = vmatpush.msra.mxu0 %v3851_v33 }
 0xf86   :  { %4120 = vpow2.f32 %v2115_v52 }
 0xf89   :  { %v2106_v28 = vpop.xlane.xlu0 %2105 }
 0xf8a   :  { %v2110_v20 = vsub.f32 %v2092_v54, %v2106_v28  ;;  %v3850_v54 = vld [vmem:[%s5620_s4 + $0x2a8] sm:$0xff] }
 0xf8b   :  { %2301 = vmatpush.msra.mxu0 %v3850_v54  ;;  %v3888_v54 = vld [vmem:[%s5620_s4 + $0x240] sm:$0xff] }
 0xf8c   :  { %v4121_v26 = vpop.eup %4120  ;;  %v2117_v55 = vmul.f32 1.442695, %v2110_v20 }
 0xf8d   :  { %v2125_v39 = vsel %vm403_vm0, %v4121_v26, 0.0 }
 0xf8e   :  { %4122 = vpow2.f32 %v2117_v55  ;;  %2126 = vadd.xlane.f32.xlu1 %v2125_v39 }
 0xf91   :  { %v2097_v40 = vpop.xlane.xlu0 %2096 }
 0xf92   :  { %v2107_v58 = vsub.f32 %v2054_v12, %v2097_v40  ;;  %v3849_v12 = vld [vmem:[%s5620_s4 + $0x2a0] sm:$0xff] }
 0xf93   :  { %2302 = vmatpush.msra.mxu0 %v3849_v12  ;;  %v3879_v12 = vld [vmem:[%s5620_s4 + $0x1c0] sm:$0xff] }
 0xf94   :  { %v4123_v34 = vpop.eup %4122  ;;  %v2111_v46 = vmul.f32 1.442695, %v2107_v58 }
 0xf95   :  { %v2128_v60 = vsel %vm403_vm0, %v4123_v34, 0.0 }
 0xf96   :  { %4124 = vpow2.f32 %v2111_v46  ;;  %2099 = vmax.xlane.f32.xlu1 %v2098_v22  ;;  %2129 = vadd.xlane.f32.xlu2 %v2128_v60 }
 0xf9c   :  { %v4125_v61 = vpop.eup %4124 }
 0xf9d   :  { %v2119_v63 = vsel %vm403_vm0, %v4125_v61, 0.0 }
 0xf9e   :  { %2120 = vadd.xlane.f32.xlu2 %v2119_v63 }
0x1001   :  { %v2127_v1 = vpop.xlane.xlu1 %2126 }
0x1002   :  { %4126 = vrcp.f32 %v2127_v1 }
0x1008   :  { %v4127_v42 = vpop.eup %4126 }
0x1009   :  { %v2137_v5 = vmul.f32 %v4127_v42, %v4121_v26  ;;  %v2100_v30 = vpop.xlane.xlu1 %2099  ;;  %v2130_v53 = vpop.xlane.xlu2 %2129 }
0x100a   :  { %v2108_v2 = vsub.f32 %v2057_v57, %v2100_v30  ;;  %4128 = vrcp.f32 %v2130_v53 }
0x100b   :  { %3828 = vmatmul.msk.f32.vlgmr.msra.gmra.mxu1 %vm403_vm0, %v2137_v5 }
0x100c   :  { %v2113_v6 = vmul.f32 1.442695, %v2108_v2  ;;  %3862 = vmatpush.xpose.msk.msra.mxu1 %vm332_vm15, %v2275_v62 }
0x100e   :  { %4130 = vpow2.f32 %v2113_v6 }
0x1010   :  { %v4129_v7 = vpop.eup %4128  ;;  %3863 = vmatpush.xpose.msk.msra.mxu1 %vm332_vm15, %v2272_v51 }
0x1011   :  { %v2121_v9 = vpop.xlane.xlu2 %2120  ;;  %v2138_v10 = vmul.f32 %v4129_v7, %v4123_v34 }
0x1012   :  { %4132 = vrcp.f32 %v2121_v9 }
0x1013   :  { %3829 = vmatmul.msk.f32.gmra.mxu1 %vm403_vm0, %v2138_v10 }
0x1014   :  { %v4131_v11 = vpop.eup %4130 }
0x1015   :  { %v2122_v15 = vsel %vm403_vm0, %v4131_v11, 0.0 }
0x1016   :  { %2123 = vadd.xlane.f32.xlu0 %v2122_v15 }
0x1018   :  { %v4133_v16 = vpop.eup %4132 }
0x1019   :  { %v2135_v19 = vmul.f32 %v4133_v16, %v4125_v61 }
0x101b   :  { %3826 = vmatmul.msk.f32.vlgmr.msrb.gmra.mxu0 %vm403_vm0, %v2135_v19  ;;  %3860 = vmatmul.msk.f32.vlgmr.msrb.gmra.mxu1 %vm332_vm15, %v2227_v43 }
0x101c   :  { %2558 = vmatpush.msrb.mxu1 %v3830_v45 }
0x1023   :  { %3861 = vmatmul.msk.f32.gmra.mxu1 %vm332_vm15, %v2230_v47  ;;  %v3882_v47 = vld [vmem:[%s5620_s4 + $0x1d8] sm:$0xff] }
0x102b   :  { %3864 = vmatmul.msk.f32.vlgmr.msra.gmra.mxu1 %vm332_vm15, %v2233_v56  ;;  %v3881_v56 = vld [vmem:[%s5620_s4 + $0x1d0] sm:$0xff] }
0x1033   :  { %3865 = vmatmul.msk.f32.gmra.mxu1 %vm332_vm15, %v2236_v44  ;;  %v3880_v44 = vld [vmem:[%s5620_s4 + $0x1c8] sm:$0xff] }
0x1088   :  { %v2191_v41 = vpop.f32.mrf.mxu1 }
0x1089   :  { %v2124_v17 = vpop.xlane.xlu0 %2123 }
0x108a   :  { %4134 = vrcp.f32 %v2124_v17 }
0x1090   :  { %v4135_v35 = vpop.eup %4134  ;;  %v2194_v48 = vpop.f32.mrf.mxu1 }
0x1091   :  { %v2136_v21 = vmul.f32 %v4135_v35, %v4131_v11 }
0x1093   :  { %3827 = vmatmul.msk.f32.gmra.mxu0 %vm403_vm0, %v2136_v21 }
0x1098   :  { %v2162_v49 = vpop.f32.mrf.mxu0  ;;  %v2345_v36 = vpop.f32.mrf.mxu1 }
0x1099   :  { %3875 = vmatmul.msk.f32.vlgmr.msrb.gmra.mxu1 %vm332_vm15, %v2162_v49  ;;  %v2386_v23 = vsel %vm403_vm0, %v2345_v36, -inf }
0x109a   :  { %2387 = vmax.xlane.f32.xlu0 %v2386_v23 }
0x109b   :  { %3854 = vmatmul.msk.f32.vlgmr.msra.gmra.mxu0 %vm99_vm1, %v5063_v50 }
0x10a0   :  { %v2348_v52 = vpop.f32.mrf.mxu1 }
0x10a1   :  { %v2389_v55 = vsel %vm403_vm0, %v2348_v52, -inf }
0x10a3   :  { %3855 = vmatmul.msk.f32.gmra.mxu0 %vm99_vm1, %v5076_v37 }
0x10a8   :  { %v2380_v28 = vpop.f32.mrf.mxu1 }
0x10a9   :  { %v2392_v20 = vsel %vm403_vm0, %v2380_v28, -inf }
0x10aa   :  { %2393 = vmax.xlane.f32.xlu1 %v2392_v20 }
0x10ab   :  { %3856 = vmatmul.msk.f32.gmra.mxu0 %vm99_vm1, %v5086_v24 }
0x10b0   :  { %v2383_v26 = vpop.f32.mrf.mxu1 }
0x10b1   :  { %v2395_v39 = vsel %vm403_vm0, %v2383_v26, -inf }
0x10b2   :  { %2390 = vmax.xlane.f32.xlu1 %v2389_v55  ;;  %2396 = vmax.xlane.f32.xlu2 %v2395_v39  ;;  %v3899_v55 = vld [vmem:[%s5620_s4 + $0x2d0] sm:$0xff]  ;;  %v3898_v39 = vld [vmem:[%s5620_s4 + $0x2c8] sm:$0xff] }
0x10b3   :  { %3857 = vmatmul.msk.f32.gmra.mxu0 %vm99_vm1, %v5096_v59 }
0x110d   :  { %v2388_v40 = vpop.xlane.xlu0 %2387 }
0x110e   :  { %v2398_v57 = vsub.f32 %v2345_v36, %v2388_v40 }
0x1110   :  { %v2402_v58 = vmul.f32 1.442695, %v2398_v57  ;;  %v2165_v34 = vpop.f32.mrf.mxu0  ;;  %v3897_v57 = vld [vmem:[%s5620_s4 + $0x2c0] sm:$0xff] }
0x1111   :  { %3876 = vmatmul.msk.f32.gmra.mxu1 %vm332_vm15, %v2165_v34 }
0x1112   :  { %4136 = vpow2.f32 %v2402_v58 }
0x1118   :  { %v4137_v46 = vpop.eup %4136  ;;  %v2304_v22 = vpop.f32.mrf.mxu0 }
0x1119   :  { %3877 = vmatmul.msk.f32.gmra.mxu1 %vm332_vm15, %v2191_v41  ;;  %v2410_v60 = vsel %vm403_vm0, %v4137_v46, 0.0  ;;  %v2305_v5 = vadd.f32 %v4014_v0, %v2304_v22 }
0x111a   :  { %2411 = vadd.xlane.f32.xlu1 %v2410_v60  ;;  %v4016_v60 = vld [vmem:[%s5621_s5 + $0x12] ss:$0 sm:$0xff] }
0x111d   :  { %v2394_v61 = vpop.xlane.xlu1 %2393 }
0x111e   :  { %v2400_v63 = vsub.f32 %v2380_v28, %v2394_v61  ;;  %v3870_v28 = vld [vmem:[%s5622_s6 + $0x28] sm:$0xff] }
0x111f   :  { %2517 = vmatpush.msrb.mxu0 %v3870_v28 }
0x1120   :  { %v2406_v1 = vmul.f32 1.442695, %v2400_v63  ;;  %v2307_v3 = vpop.f32.mrf.mxu0 }
0x1121   :  { %v2308_v42 = vadd.f32 %v4014_v0, %v2307_v3  ;;  %3878 = vmatmul.msk.f32.gmra.mxu1 %vm332_vm15, %v2194_v48  ;;  %v3933_v3 = vld [vmem:[%s5620_s4 + $0x268] sm:$0xff] }
0x1122   :  { %4138 = vpow2.f32 %v2406_v1  ;;  %v3934_v1 = vld [vmem:[%s5620_s4 + $0x270] sm:$0xff] }
0x1123   :  { %2450 = vmatpush.msrb.mxu2 %v2308_v42  ;;  %v4015_v42 = vld [vmem:[%s5621_s5 + $0xe] ss:$0 sm:$0xff] }
0x1125   :  { %v2391_v30 = vpop.xlane.xlu1 %2390  ;;  %v2397_v53 = vpop.xlane.xlu2 %2396  ;;  %2451 = vmatpush.msrb.mxu2 %v2305_v5 }
0x1126   :  { %v2399_v62 = vsub.f32 %v2348_v52, %v2391_v30  ;;  %v2401_v2 = vsub.f32 %v2383_v26, %v2397_v53  ;;  %v3900_v26 = vld [vmem:[%s5620_s4 + $0x2d8] sm:$0xff]  ;;  %v3932_v30 = vld [vmem:[%s5620_s4 + $0x260] sm:$0xff] }
0x1127   :  { %2594 = vmatpush.msra.mxu2 %v3882_v47  ;;  %2672 = vmatpush.msra.mxu0 %v3900_v26 }
0x1128   :  { %v4139_v6 = vpop.eup %4138  ;;  %v2404_v51 = vmul.f32 1.442695, %v2399_v62  ;;  %v2408_v7 = vmul.f32 1.442695, %v2401_v2  ;;  %v2310_v8 = vpop.f32.mrf.mxu0 }
0x1129   :  { %v2416_v9 = vsel %vm403_vm0, %v4139_v6, 0.0  ;;  %v2311_v19 = vadd.f32 %v4014_v0, %v2310_v8  ;;  %2595 = vmatpush.msra.mxu2 %v3881_v56  ;;  %2673 = vmatpush.msra.mxu0 %v3899_v55 }
0x112a   :  { %4140 = vpow2.f32 %v2404_v51  ;;  %2417 = vadd.xlane.f32.xlu2 %v2416_v9 }
0x112b   :  { %4142 = vpow2.f32 %v2408_v7  ;;  %2596 = vmatpush.msra.mxu2 %v3880_v44  ;;  %2674 = vmatpush.msra.mxu0 %v3898_v39  ;;  %v4018_v39 = vld [vmem:[%s5621_s5 + $0x13] ss:$0 sm:$0xff] }
0x112d   :  { %2597 = vmatpush.msra.mxu2 %v3879_v12  ;;  %2675 = vmatpush.msra.mxu0 %v3897_v57 }
0x1130   :  { %v4141_v10 = vpop.eup %4140  ;;  %v2313_v11 = vpop.f32.mrf.mxu0 }
0x1131   :  { %v4143_v14 = vpop.eup %4142  ;;  %v2314_v15 = vadd.f32 %v4014_v0, %v2313_v11  ;;  %v2413_v16 = vsel %vm403_vm0, %v4141_v10, 0.0  ;;  %v3935_v0 = vld [vmem:[%s5620_s4 + $0x278] sm:$0xff] }
0x1132   :  { %2414 = vadd.xlane.f32.xlu2 %v2413_v16  ;;  %v2419_v43 = vsel %vm403_vm0, %v4143_v14, 0.0 }
0x1133   :  { %2420 = vadd.xlane.f32.xlu0 %v2419_v43  ;;  %2479 = vmatpush.msra.mxu3 %v2314_v15  ;;  %v5318_v15 = vpop.f32.mrf.mxu1 }
0x1135   :  { %2480 = vmatpush.msra.mxu3 %v2311_v19 }
0x1137   :  { %2633 = vmatpush.msrb.mxu3 %v3891_v29 }
0x1139   :  { %2634 = vmatpush.msrb.mxu3 %v3890_v31 }
0x113b   :  { %2635 = vmatpush.msrb.mxu3 %v3889_v32 }
0x113d   :  { %2636 = vmatpush.msrb.mxu3 %v3888_v54  ;;  %v4017_v54 = vld [vmem:[%s5621_s5 + $0x16] ss:$0 sm:$0xff] }
0x118d   :  { %v2412_v25 = vpop.xlane.xlu1 %2411 }
0x118e   :  { %4144 = vrcp.f32 %v2412_v25  ;;  %v5322_v43 = vpop.f32.mrf.mxu1 }
0x1194   :  { %v4145_v33 = vpop.eup %4144 }
0x1195   :  { %v2426_v45 = vmul.f32 %v4145_v33, %v4137_v46 }
0x1196   :  { %v5326_v25 = vpop.f32.mrf.mxu1 }
0x1197   :  { %3866 = vmatmul.msk.f32.vlgmr.msrb.gmra.mxu2 %vm403_vm0, %v2426_v45 }
0x119d   :  { %v2418_v41 = vpop.xlane.xlu2 %2417 }
0x119e   :  { %4146 = vrcp.f32 %v2418_v41  ;;  %v2569_v29 = vpop.f32.mrf.mxu1  ;;  %v3918_v41 = vld [vmem:[%s5622_s6 + $0x30] sm:$0xff] }
0x11a4   :  { %v4147_v17 = vpop.eup %4146 }
0x11a5   :  { %v2428_v35 = vmul.f32 %v4147_v17, %v4139_v6  ;;  %v2415_v48 = vpop.xlane.xlu2 %2414 }
0x11a6   :  { %4148 = vrcp.f32 %v2415_v48  ;;  %v2421_v21 = vpop.xlane.xlu0 %2420 }
0x11a7   :  { %4150 = vrcp.f32 %v2421_v21  ;;  %3868 = vmatmul.msk.f32.vlgmr.msra.gmra.mxu3 %vm403_vm0, %v2428_v35 }
0x11ac   :  { %v4149_v49 = vpop.eup %4148 }
0x11ad   :  { %v4151_v36 = vpop.eup %4150  ;;  %v2427_v23 = vmul.f32 %v4149_v49, %v4141_v10 }
0x11ae   :  { %v2429_v52 = vmul.f32 %v4151_v36, %v4143_v14 }
0x11af   :  { %3867 = vmatmul.msk.f32.gmra.mxu2 %vm403_vm0, %v2427_v23 }
0x11b0   :  { %3869 = vmatmul.msk.f32.gmra.mxu3 %vm403_vm0, %v2429_v52 }
0x11b7   :  { %3884 = vmatmul.msk.f32.vlgmr.msra.gmra.mxu2 %vm99_vm1, %v5063_v50 }
0x11b8   :  { %3893 = vmatmul.msk.f32.vlgmr.msrb.gmra.mxu3 %vm99_vm1, %v5063_v50 }
0x11bf   :  { %3885 = vmatmul.msk.f32.gmra.mxu2 %vm99_vm1, %v5076_v37 }
0x11c0   :  { %3894 = vmatmul.msk.f32.gmra.mxu3 %vm99_vm1, %v5076_v37 }
0x11c7   :  { %3886 = vmatmul.msk.f32.gmra.mxu2 %vm99_vm1, %v5086_v24 }
0x11c8   :  { %3895 = vmatmul.msk.f32.gmra.mxu3 %vm99_vm1, %v5086_v24 }
0x11cf   :  { %3887 = vmatmul.msk.f32.gmra.mxu2 %vm99_vm1, %v5096_v59 }
0x11d0   :  { %3896 = vmatmul.msk.f32.gmra.mxu3 %vm99_vm1, %v5096_v59 }
0x121a   :  { %v2453_v20 = vpop.f32.mrf.mxu2 }
0x121b   :  { %3871 = vmatmul.msk.f32.vlgmr.msrb.gmra.mxu0 %vm332_vm15, %v2453_v20 }
0x121c   :  { %2969 = vmatpush.msrb.mxu0 %v3935_v0 }
0x121e   :  { %2970 = vmatpush.msrb.mxu0 %v3934_v1 }
0x1220   :  { %2971 = vmatpush.msrb.mxu0 %v3933_v3 }
0x1222   :  { %2972 = vmatpush.msrb.mxu0 %v3932_v30 }
0x122a   :  { %v2482_v40 = vpop.f32.mrf.mxu3 }
0x1232   :  { %v2456_v58 = vpop.f32.mrf.mxu2 }
0x1233   :  { %v2485_v34 = vpop.f32.mrf.mxu3  ;;  %3872 = vmatmul.msk.f32.gmra.mxu0 %vm332_vm15, %v2456_v58 }
0x123a   :  { %v2599_v22 = vpop.f32.mrf.mxu2 }
0x123b   :  { %v2638_v46 = vpop.f32.mrf.mxu3  ;;  %3873 = vmatmul.msk.f32.gmra.mxu0 %vm332_vm15, %v2482_v40  ;;  %v2600_v53 = vadd.f32 %v4015_v42, %v2599_v22 }
0x123c   :  { %v2639_v5 = vadd.f32 %v4016_v60, %v2638_v46 }
0x1242   :  { %v2602_v2 = vpop.f32.mrf.mxu2 }
0x1243   :  { %v2641_v61 = vpop.f32.mrf.mxu3  ;;  %3874 = vmatmul.msk.f32.gmra.mxu0 %vm332_vm15, %v2485_v34  ;;  %v2603_v6 = vadd.f32 %v4015_v42, %v2602_v2 }
0x1244   :  { %v2642_v63 = vadd.f32 %v4016_v60, %v2641_v61 }
0x1246   :  { %3906 = vmatpush.xpose.msk.msra.mxu1 %vm332_vm15, %v2642_v63 }
0x124a   :  { %3907 = vmatpush.xpose.msk.msra.mxu1 %vm332_vm15, %v2639_v5  ;;  %v2605_v8 = vpop.f32.mrf.mxu2 }
0x124b   :  { %v2644_v62 = vpop.f32.mrf.mxu3  ;;  %3902 = vmatmul.msk.f32.vlgmr.msra.gmra.mxu0 %vm99_vm1, %v5063_v50  ;;  %v2606_v10 = vadd.f32 %v4015_v42, %v2605_v8 }
0x124c   :  { %v2645_v9 = vadd.f32 %v4016_v60, %v2644_v62 }
0x124d   :  { %3908 = vmatmul.msk.f32.vlgmr.msra.gmra.mxu1 %vm332_vm15, %v2600_v53 }
0x1252   :  { %v2608_v11 = vpop.f32.mrf.mxu2 }
0x1253   :  { %v2647_v51 = vpop.f32.mrf.mxu3  ;;  %3903 = vmatmul.msk.f32.gmra.mxu0 %vm99_vm1, %v5076_v37  ;;  %v2609_v14 = vadd.f32 %v4015_v42, %v2608_v11  ;;  %v3925_v11 = vld [vmem:[%s5620_s4 + $0x1f0] sm:$0xff] }
0x1254   :  { %v2648_v7 = vadd.f32 %v4016_v60, %v2647_v51 }
0x1255   :  { %3909 = vmatmul.msk.f32.gmra.mxu1 %vm332_vm15, %v2603_v6 }
0x1256   :  { %3910 = vmatpush.xpose.msk.msrb.mxu2 %vm332_vm15, %v2648_v7 }
0x125a   :  { %3911 = vmatpush.xpose.msk.msrb.mxu2 %vm332_vm15, %v2645_v9 }
0x125b   :  { %3904 = vmatmul.msk.f32.gmra.mxu0 %vm99_vm1, %v5086_v24 }
0x125d   :  { %3912 = vmatmul.msk.f32.vlgmr.msrb.gmra.mxu2 %vm332_vm15, %v2606_v10  ;;  %v3926_v10 = vld [vmem:[%s5620_s4 + $0x1f8] sm:$0xff] }
0x125e   :  { %2890 = vmatpush.msra.mxu2 %v3918_v41 }
0x1263   :  { %3905 = vmatmul.msk.f32.gmra.mxu0 %vm99_vm1, %v5096_v59 }
0x1265   :  { %3913 = vmatmul.msk.f32.gmra.mxu2 %vm332_vm15, %v2609_v14  ;;  %v3924_v14 = vld [vmem:[%s5620_s4 + $0x1e8] sm:$0xff] }
0x126b   :  { %3937 = vmatmul.msk.f32.vlgmr.msrb.gmra.mxu0 %vm99_vm1, %v5063_v50 }
0x1273   :  { %3938 = vmatmul.msk.f32.gmra.mxu0 %vm99_vm1, %v5076_v37 }
0x127b   :  { %3939 = vmatmul.msk.f32.gmra.mxu0 %vm99_vm1, %v5086_v24 }
0x1283   :  { %3940 = vmatmul.msk.f32.gmra.mxu0 %vm99_vm1, %v5096_v59 }
0x1298   :  { %v5320_v16 = vpop.f32.mrf.mxu0 }
0x12b0   :  { %v5324_v19 = vpop.f32.mrf.mxu0 }
0x12b8   :  { %v5328_v47 = vpop.f32.mrf.mxu0 }
0x12c0   :  { %v2528_v56 = vpop.f32.mrf.mxu0 }
0x12c1   :  { %v5330_v31 = vadd.f32 %v2569_v29, %v2528_v56  ;;  %v3923_v29 = vld [vmem:[%s5620_s4 + $0x1e0] sm:$0xff] }
0x12c8   :  { %v2677_v44 = vpop.f32.mrf.mxu0 }
0x12c9   :  { %v2678_v35 = vadd.f32 %v4017_v54, %v2677_v44 }
0x12ca   :  { %v2718_v32 = vpop.f32.mrf.mxu1 }
0x12cb   :  { %v2759_v33 = vsel %vm403_vm0, %v2718_v32, -inf }
0x12cc   :  { %2760 = vmax.xlane.f32.xlu0 %v2759_v33 }
0x12d0   :  { %v2680_v45 = vpop.f32.mrf.mxu0 }
0x12d1   :  { %v2681_v12 = vadd.f32 %v4017_v54, %v2680_v45 }
0x12d2   :  { %v2721_v17 = vpop.f32.mrf.mxu1 }
0x12d3   :  { %v2762_v48 = vsel %vm403_vm0, %v2721_v17, -inf  ;;  %2823 = vmatpush.msra.mxu3 %v2681_v12  ;;  %v3944_v12 = vld [vmem:[%s5620_s4 + $0x2f8] sm:$0xff] }
0x12d4   :  { %2763 = vmax.xlane.f32.xlu1 %v2762_v48  ;;  %v3941_v48 = vld [vmem:[%s5620_s4 + $0x2e0] sm:$0xff] }
0x12d5   :  { %2824 = vmatpush.msra.mxu3 %v2678_v35  ;;  %v3942_v35 = vld [vmem:[%s5620_s4 + $0x2e8] sm:$0xff] }
0x12d7   :  { %2930 = vmatpush.msrb.mxu3 %v3926_v10  ;;  %v2567_v10 = vadd.f32 %v5326_v25, %v5328_v47 }
0x12d8   :  { %v2683_v21 = vpop.f32.mrf.mxu0 }
0x12d9   :  { %v2684_v28 = vadd.f32 %v4017_v54, %v2683_v21  ;;  %2931 = vmatpush.msrb.mxu3 %v3925_v11 }
0x12db   :  { %2932 = vmatpush.msrb.mxu3 %v3924_v14 }
0x12dd   :  { %2933 = vmatpush.msrb.mxu3 %v3923_v29 }
0x12e0   :  { %v2753_v49 = vpop.f32.mrf.mxu2  ;;  %v2686_v36 = vpop.f32.mrf.mxu0 }
0x12e1   :  { %v2687_v23 = vadd.f32 %v4017_v54, %v2686_v36  ;;  %v2765_v52 = vsel %vm403_vm0, %v2753_v49, -inf }
0x12e2   :  { %2766 = vmax.xlane.f32.xlu2 %v2765_v52 }
0x12e3   :  { %2852 = vmatpush.msrb.mxu1 %v2687_v23 }
0x12e5   :  { %2853 = vmatpush.msrb.mxu1 %v2684_v28 }
0x12e7   :  { %3008 = vmatpush.msra.mxu1 %v3944_v12 }
0x12e8   :  { %v2756_v20 = vpop.f32.mrf.mxu2  ;;  %v2974_v26 = vpop.f32.mrf.mxu0 }
0x12e9   :  { %v2768_v55 = vsel %vm403_vm0, %v2756_v20, -inf  ;;  %v2975_v58 = vadd.f32 %v4018_v39, %v2974_v26 }
0x12ea   :  { %2769 = vmax.xlane.f32.xlu0 %v2768_v55 }
0x12f0   :  { %v2977_v40 = vpop.f32.mrf.mxu0 }
0x12f1   :  { %v2978_v57 = vadd.f32 %v4018_v39, %v2977_v40 }
0x12f3   :  { %3950 = vmatpush.xpose.msk.msrb.mxu2 %vm332_vm15, %v2978_v57 }
0x12f7   :  { %3951 = vmatpush.xpose.msk.msrb.mxu2 %vm332_vm15, %v2975_v58 }
0x12f8   :  { %v2980_v56 = vpop.f32.mrf.mxu0 }
0x12f9   :  { %v2981_v21 = vadd.f32 %v4018_v39, %v2980_v56 }
0x133f   :  { %v2761_v34 = vpop.xlane.xlu0 %2760 }
0x1340   :  { %v2771_v46 = vsub.f32 %v2718_v32, %v2761_v34  ;;  %v2983_v32 = vpop.f32.mrf.mxu0 }
0x1341   :  { %v2984_v41 = vadd.f32 %v4018_v39, %v2983_v32 }
0x1342   :  { %v2775_v22 = vmul.f32 1.442695, %v2771_v46 }
0x1344   :  { %4152 = vpow2.f32 %v2775_v22 }
0x1347   :  { %v2764_v60 = vpop.xlane.xlu1 %2763 }
0x1348   :  { %v2772_v61 = vsub.f32 %v2721_v17, %v2764_v60  ;;  %v3943_v17 = vld [vmem:[%s5620_s4 + $0x2f0] sm:$0xff]  ;;  %s4239_s4 = smov 128  }
0x1349   :  { %3009 = vmatpush.msra.mxu1 %v3943_v17 }
0x134a   :  { %v4153_v63 = vpop.eup %4152  ;;  %v2777_v0 = vmul.f32 1.442695, %v2772_v61  ;;  %v4020_v61 = vld [vmem:[%s5621_s5 + $0x17] ss:$0 sm:$0xff] }
0x134b   :  { %v2783_v1 = vsel %vm403_vm0, %v4153_v63, 0.0  ;;  %3010 = vmatpush.msra.mxu1 %v3942_v35 }
0x134c   :  { %4154 = vpow2.f32 %v2777_v0  ;;  %2784 = vadd.xlane.f32.xlu1 %v2783_v1 }
0x134d   :  { %3011 = vmatpush.msra.mxu1 %v3941_v48 }
0x1352   :  { %v4155_v3 = vpop.eup %4154 }
0x1353   :  { %v2786_v42 = vsel %vm403_vm0, %v4155_v3, 0.0 }
0x1354   :  { %2787 = vadd.xlane.f32.xlu2 %v2786_v42 }
0x1355   :  { %v2767_v5 = vpop.xlane.xlu2 %2766 }
0x1356   :  { %v2773_v30 = vsub.f32 %v2753_v49, %v2767_v5 }
0x1358   :  { %v2779_v53 = vmul.f32 1.442695, %v2773_v30 }
0x135a   :  { %4156 = vpow2.f32 %v2779_v53 }
0x135d   :  { %v2770_v62 = vpop.xlane.xlu0 %2769 }
0x135e   :  { %v2774_v2 = vsub.f32 %v2756_v20, %v2770_v62 }
0x1360   :  { %v4157_v6 = vpop.eup %4156  ;;  %v2781_v51 = vmul.f32 1.442695, %v2774_v2  ;;  %v2561_v2 = vadd.f32 %v5318_v15, %v5320_v16 }
0x1361   :  { %v2789_v7 = vsel %vm403_vm0, %v4157_v6, 0.0 }
0x1362   :  { %4158 = vpow2.f32 %v2781_v51  ;;  %2790 = vadd.xlane.f32.xlu0 %v2789_v7  ;;  %v2564_v7 = vadd.f32 %v5322_v43, %v5324_v19 }
0x1368   :  { %v4159_v8 = vpop.eup %4158 }
0x1369   :  { %v2792_v9 = vsel %vm403_vm0, %v4159_v8, 0.0 }
0x136a   :  { %2793 = vadd.xlane.f32.xlu1 %v2792_v9 }
0x13bf   :  { %v2785_v44 = vpop.xlane.xlu1 %2784 }
0x13c0   :  { %4160 = vrcp.f32 %v2785_v44 }
0x13c6   :  { %v4161_v33 = vpop.eup %4160 }
0x13c7   :  { %v2799_v54 = vmul.f32 %v4161_v33, %v4153_v63  ;;  %v2788_v45 = vpop.xlane.xlu2 %2787 }
0x13c8   :  { %4162 = vrcp.f32 %v2788_v45 }
0x13c9   :  { %3914 = vmatmul.msk.f32.vlgmr.msra.gmra.mxu3 %vm403_vm0, %v2799_v54 }
0x13ca   :  { %3954 = vmatpush.xpose.msk.msra.mxu3 %vm332_vm15, %v2984_v41 }
0x13ce   :  { %v4163_v49 = vpop.eup %4162  ;;  %3955 = vmatpush.xpose.msk.msra.mxu3 %vm332_vm15, %v2981_v21 }
0x13cf   :  { %v2800_v36 = vmul.f32 %v4163_v49, %v4155_v3 }
0x13d1   :  { %3915 = vmatmul.msk.f32.gmra.mxu3 %vm403_vm0, %v2800_v36 }
0x13d5   :  { %v2791_v23 = vpop.xlane.xlu0 %2790 }
0x13d6   :  { %4164 = vrcp.f32 %v2791_v23 }
0x13d9   :  { %3928 = vmatmul.msk.f32.vlgmr.msrb.gmra.mxu3 %vm99_vm1, %v5063_v50 }
0x13dc   :  { %v4165_v52 = vpop.eup %4164 }
0x13dd   :  { %v2801_v28 = vmul.f32 %v4165_v52, %v4157_v6  ;;  %v2794_v20 = vpop.xlane.xlu1 %2793 }
0x13de   :  { %4166 = vrcp.f32 %v2794_v20 }
0x13df   :  { %3916 = vmatmul.msk.f32.vlgmr.msrb.gmra.mxu1 %vm403_vm0, %v2801_v28 }
0x13e1   :  { %3929 = vmatmul.msk.f32.gmra.mxu3 %vm99_vm1, %v5076_v37 }
0x13e4   :  { %v4167_v26 = vpop.eup %4166 }
0x13e5   :  { %v2802_v55 = vmul.f32 %v4167_v26, %v4159_v8 }
0x13e7   :  { %3917 = vmatmul.msk.f32.gmra.mxu1 %vm403_vm0, %v2802_v55 }
0x13e9   :  { %3930 = vmatmul.msk.f32.gmra.mxu3 %vm99_vm1, %v5086_v24 }
0x13ef   :  { %3946 = vmatmul.msk.f32.vlgmr.msra.gmra.mxu1 %vm99_vm1, %v5063_v50 }
0x13f1   :  { %3931 = vmatmul.msk.f32.gmra.mxu3 %vm99_vm1, %v5096_v59 }
0x13f7   :  { %3947 = vmatmul.msk.f32.gmra.mxu1 %vm99_vm1, %v5076_v37  ;;  %v4019_v37 = vld [vmem:[%s5621_s5 + $0xf] ss:$0 sm:$0xff] }
0x13ff   :  { %3948 = vmatmul.msk.f32.gmra.mxu1 %vm99_vm1, %v5086_v24 }
0x1407   :  { %3949 = vmatmul.msk.f32.gmra.mxu1 %vm99_vm1, %v5096_v59 }
0x144c   :  { %v2826_v39 = vpop.f32.mrf.mxu3 }
0x144d   :  { %3919 = vmatmul.msk.f32.vlgmr.msra.gmra.mxu2 %vm332_vm15, %v2826_v39 }
0x1454   :  { %v2829_v40 = vpop.f32.mrf.mxu3 }
0x1455   :  { %3920 = vmatmul.msk.f32.gmra.mxu2 %vm332_vm15, %v2829_v40 }
0x145c   :  { %v2855_v57 = vpop.f32.mrf.mxu1  ;;  %v2935_v50 = vpop.f32.mrf.mxu3 }
0x145d   :  { %3921 = vmatmul.msk.f32.gmra.mxu2 %vm332_vm15, %v2855_v57  ;;  %v2936_v24 = vadd.f32 %v4019_v37, %v2935_v50 }
0x1464   :  { %v2858_v58 = vpop.f32.mrf.mxu1  ;;  %v2938_v34 = vpop.f32.mrf.mxu3 }
0x1465   :  { %3922 = vmatmul.msk.f32.gmra.mxu2 %vm332_vm15, %v2858_v58  ;;  %v2939_v60 = vadd.f32 %v4019_v37, %v2938_v34 }
0x146c   :  { %v2941_v59 = vpop.f32.mrf.mxu3  ;;  %v3013_v46 = vpop.f32.mrf.mxu1 }
0x146d   :  { %v2942_v22 = vadd.f32 %v4019_v37, %v2941_v59  ;;  %3952 = vmatmul.msk.f32.vlgmr.msrb.gmra.mxu2 %vm332_vm15, %v2936_v24  ;;  %v3014_v42 = vadd.f32 %v4020_v61, %v3013_v46 }
0x146f   :  { %3956 = vmatmul.msk.f32.vlgmr.msra.gmra.mxu3 %vm332_vm15, %v2942_v22 }
0x1474   :  { %v2944_v63 = vpop.f32.mrf.mxu3  ;;  %v3016_v0 = vpop.f32.mrf.mxu1 }
0x1475   :  { %v2945_v1 = vadd.f32 %v4019_v37, %v2944_v63  ;;  %v3017_v3 = vadd.f32 %v4020_v61, %v3016_v0  ;;  %3953 = vmatmul.msk.f32.gmra.mxu2 %vm332_vm15, %v2939_v60  ;;  %v3962_v0 = vld [vmem:[%s5622_s6 + $0x38] sm:$0xff] }
0x1476   :  { %3226 = vmatpush.msra.mxu2 %v3962_v0 }
0x1477   :  { %3957 = vmatmul.msk.f32.gmra.mxu3 %vm332_vm15, %v2945_v1  ;;  %3159 = vmatpush.msrb.mxu1 %v3017_v3 }
0x1479   :  { %3160 = vmatpush.msrb.mxu1 %v3014_v42 }
0x147c   :  { %v3019_v5 = vpop.f32.mrf.mxu1 }
0x147d   :  { %v3020_v62 = vadd.f32 %v4020_v61, %v3019_v5 }
0x1484   :  { %v3022_v30 = vpop.f32.mrf.mxu1 }
0x1485   :  { %v3023_v53 = vadd.f32 %v4020_v61, %v3022_v30 }
0x1487   :  { %3188 = vmatpush.msra.mxu1 %v3023_v53 }
0x1489   :  { %3189 = vmatpush.msra.mxu1 %v3020_v62  ;;  %v5449_v62 = vld [vmem:[%s5619_s3 + $0x8] sm:$0x7f] }
0x14d0   :  { %v2892_v6 = vpop.f32.mrf.mxu2 }
0x14d1   :  { %v5413_v51 = vadd.f32 %v2892_v6, %v2561_v2  ;;  %v3248_v2 = vperm.slane %v5449_v62, 5 }
0x14d8   :  { %v2895_v8 = vpop.f32.mrf.mxu2 }
0x14d9   :  { %v5417_v9 = vadd.f32 %v2895_v8, %v2564_v7 }
0x14e0   :  { %v2898_v11 = vpop.f32.mrf.mxu2 }
0x14e1   :  { %v5421_v14 = vadd.f32 %v2898_v11, %v2567_v10 }
0x14e8   :  { %v2901_v29 = vpop.f32.mrf.mxu2 }
0x14e9   :  { %v5424_v56 = vadd.f32 %v2901_v29, %v5330_v31 }
0x14f0   :  { %v3054_v15 = vpop.f32.mrf.mxu2 }
0x14f1   :  { %v3095_v16 = vsel %vm403_vm0, %v3054_v15, -inf }
0x14f2   :  { %v3089_v44 = vpop.f32.mrf.mxu3  ;;  %3096 = vmax.xlane.f32.xlu2 %v3095_v16 }
0x14f3   :  { %v3101_v43 = vsel %vm403_vm0, %v3089_v44, -inf }
0x14f4   :  { %3102 = vmax.xlane.f32.xlu1 %v3101_v43 }
0x14f8   :  { %v3057_v19 = vpop.f32.mrf.mxu2 }
0x14f9   :  { %v3098_v32 = vsel %vm403_vm0, %v3057_v19, -inf }
0x14fa   :  { %v3092_v33 = vpop.f32.mrf.mxu3  ;;  %3099 = vmax.xlane.f32.xlu0 %v3098_v32 }
0x14fb   :  { %v3104_v25 = vsel %vm403_vm0, %v3092_v33, -inf }
0x14fc   :  { %3105 = vmax.xlane.f32.xlu2 %v3104_v25 }
0x1565   :  { %v3097_v47 = vpop.xlane.xlu2 %3096 }
0x1566   :  { %v3107_v54 = vsub.f32 %v3054_v15, %v3097_v47 }
0x1567   :  { %v3103_v31 = vpop.xlane.xlu1 %3102 }
0x1568   :  { %v3111_v45 = vmul.f32 1.442695, %v3107_v54  ;;  %v3109_v12 = vsub.f32 %v3089_v44, %v3103_v31 }
0x156a   :  { %4168 = vpow2.f32 %v3111_v45  ;;  %v3115_v41 = vmul.f32 1.442695, %v3109_v12 }
0x156c   :  { %4170 = vpow2.f32 %v3115_v41 }
0x156d   :  { %v3100_v17 = vpop.xlane.xlu0 %3099 }
0x156e   :  { %v3108_v35 = vsub.f32 %v3057_v19, %v3100_v17 }
0x156f   :  { %v3106_v48 = vpop.xlane.xlu2 %3105 }
0x1570   :  { %v4169_v21 = vpop.eup %4168  ;;  %v3113_v49 = vmul.f32 1.442695, %v3108_v35  ;;  %v3110_v36 = vsub.f32 %v3092_v33, %v3106_v48 }
0x1571   :  { %v3119_v23 = vsel %vm403_vm0, %v4169_v21, 0.0 }
0x1572   :  { %v4171_v52 = vpop.eup %4170  ;;  %4172 = vpow2.f32 %v3113_v49  ;;  %v3117_v28 = vmul.f32 1.442695, %v3110_v36  ;;  %3120 = vadd.xlane.f32.xlu0 %v3119_v23 }
0x1573   :  { %v3125_v20 = vsel %vm403_vm0, %v4171_v52, 0.0 }
0x1574   :  { %4174 = vpow2.f32 %v3117_v28  ;;  %3126 = vadd.xlane.f32.xlu2 %v3125_v20 }
0x1578   :  { %v4173_v26 = vpop.eup %4172 }
0x1579   :  { %v3122_v55 = vsel %vm403_vm0, %v4173_v26, 0.0 }
0x157a   :  { %v4175_v39 = vpop.eup %4174  ;;  %3123 = vadd.xlane.f32.xlu1 %v3122_v55  ;;  %v3969_v55 = vld [vmem:[%s5623_s7 + $0x30] sm:$0xff] }
0x157b   :  { %v3128_v40 = vsel %vm403_vm0, %v4175_v39, 0.0 }
0x157c   :  { %3129 = vadd.xlane.f32.xlu0 %v3128_v40  ;;  %v3967_v40 = vld [vmem:[%s5623_s7 + $0x20] sm:$0xff] }
0x15e5   :  { %v3121_v57 = vpop.xlane.xlu0 %3120 }
0x15e6   :  { %4176 = vrcp.f32 %v3121_v57 }
0x15e7   :  { %v3127_v37 = vpop.xlane.xlu2 %3126 }
0x15ec   :  { %v4177_v50 = vpop.eup %4176 }
0x15ed   :  { %v3135_v58 = vmul.f32 %v4177_v50, %v4169_v21  ;;  %v3124_v34 = vpop.xlane.xlu1 %3123 }
0x15ee   :  { %4178 = vrcp.f32 %v3124_v34 }
0x15ef   :  { %3958 = vmatmul.msk.f32.vlgmr.msrb.gmra.mxu1 %vm403_vm0, %v3135_v58  ;;  %4180 = vrcp.f32 %v3127_v37  ;;  %v3130_v46 = vpop.xlane.xlu0 %3129 }
0x15f0   :  { %4182 = vrcp.f32 %v3130_v46 }
0x15f4   :  { %v4179_v24 = vpop.eup %4178 }
0x15f5   :  { %v3136_v59 = vmul.f32 %v4179_v24, %v4173_v26  ;;  %v4181_v22 = vpop.eup %4180  ;;  %v3970_v26 = vld [vmem:[%s5623_s7 + $0x38] sm:$0xff] }
0x15f6   :  { %v3137_v60 = vmul.f32 %v4181_v22, %v4171_v52  ;;  %v4183_v61 = vpop.eup %4182  ;;  %3385 = vmatpush.msrb.mxu3 %v3970_v26 }
0x15f7   :  { %3959 = vmatmul.msk.f32.gmra.mxu1 %vm403_vm0, %v3136_v59  ;;  %v3138_v63 = vmul.f32 %v4183_v61, %v4175_v39  ;;  %v3968_v39 = vld [vmem:[%s5623_s7 + $0x28] sm:$0xff] }
0x15f8   :  { %3386 = vmatpush.msrb.mxu3 %v3969_v55 }
0x15fa   :  { %3387 = vmatpush.msrb.mxu3 %v3968_v39 }
0x15fc   :  { %3388 = vmatpush.msrb.mxu3 %v3967_v40 }
0x15ff   :  { %3960 = vmatmul.msk.f32.vlgmr.msra.gmra.mxu1 %vm403_vm0, %v3137_v60 }
0x1607   :  { %3961 = vmatmul.msk.f32.gmra.mxu1 %vm403_vm0, %v3138_v63 }
0x166c   :  { %v3162_v1 = vpop.f32.mrf.mxu1 }
0x166d   :  { %3963 = vmatmul.msk.f32.vlgmr.msra.gmra.mxu2 %vm332_vm15, %v3162_v1 }
0x1674   :  { %v3165_v3 = vpop.f32.mrf.mxu1 }
0x1675   :  { %3964 = vmatmul.msk.f32.gmra.mxu2 %vm332_vm15, %v3165_v3 }
0x167c   :  { %v3191_v42 = vpop.f32.mrf.mxu1 }
0x167d   :  { %3965 = vmatmul.msk.f32.gmra.mxu2 %vm332_vm15, %v3191_v42 }
0x1684   :  { %v3194_v5 = vpop.f32.mrf.mxu1 }
0x1685   :  { %3966 = vmatmul.msk.f32.gmra.mxu2 %vm332_vm15, %v3194_v5 }
0x16f0   :  { %v3228_v30 = vpop.f32.mrf.mxu2 }
0x16f1   :  { %v3240_v53 = vadd.f32 %v3228_v30, %v5413_v51  ;;  %v3341_v30 = vperm.slane %v5449_v62, 3 }
0x16f3   :  { %v3244_v6 = vadd.f32 %v3240_v53, %v4961_v4  ;;  %v3991_v53 = vld [vmem:[%s5625_s9 + $0xf8] sm:$0xff] }
0x16f4   :  { %3455 = vmatpush.msra.mxu0 %v3991_v53 }
0x16f5   :  { %v5453_v7 = vadd.f32 %v3248_v2, %v3244_v6 }
0x16f7   :  { %v3253_v8 = vsel %vm99_vm1, %v5453_v7, 0.0 }
0x16f8   :  { %3254 = vadd.xlane.f32.xlu1 %v3253_v8  ;;  %v3231_v10 = vpop.f32.mrf.mxu2 }
0x16f9   :  { %v3241_v11 = vadd.f32 %v3231_v10, %v5417_v9  ;;  %v3346_v10 = vperm.slane %v5449_v62, 4 }
0x16fb   :  { %v3245_v51 = vadd.f32 %v3241_v11, %v4966_v13 }
0x16fd   :  { %v5459_v29 = vadd.f32 %v3248_v2, %v3245_v51  ;;  %v3989_v51 = vld [vmem:[%s5625_s9 + $0xe8] sm:$0xff] }
0x16ff   :  { %v3256_v15 = vsel %vm99_vm1, %v5459_v29, 0.0 }
0x1700   :  { %3257 = vadd.xlane.f32.xlu2 %v3256_v15  ;;  %v3234_v16 = vpop.f32.mrf.mxu2 }
0x1701   :  { %v3242_v4 = vadd.f32 %v3234_v16, %v5421_v14 }
0x1703   :  { %v3246_v44 = vadd.f32 %v3242_v4, %v4971_v18 }
0x1705   :  { %v5465_v43 = vadd.f32 %v3248_v2, %v3246_v44 }
0x1707   :  { %v3259_v19 = vsel %vm99_vm1, %v5465_v43, 0.0 }
0x1708   :  { %3260 = vadd.xlane.f32.xlu0 %v3259_v19  ;;  %v3237_v9 = vpop.f32.mrf.mxu2 }
0x1709   :  { %v3243_v13 = vadd.f32 %v3237_v9, %v5424_v56 }
0x170b   :  { %v3247_v32 = vadd.f32 %v3243_v13, %v4976_v27 }
0x170d   :  { %v5471_v33 = vadd.f32 %v3248_v2, %v3247_v32  ;;  %v3990_v2 = vld [vmem:[%s5625_s9 + $0xf0] sm:$0xff] }
0x170e   :  { %3456 = vmatpush.msra.mxu0 %v3990_v2 }
0x170f   :  { %v3262_v25 = vsel %vm99_vm1, %v5471_v33, 0.0 }
0x1710   :  { %3263 = vadd.xlane.f32.xlu1 %v3262_v25  ;;  %3457 = vmatpush.msra.mxu0 %v3989_v51 }
0x176b   :  { %v3255_v14 = vpop.xlane.xlu1 %3254 }
0x176c   :  { %v3265_v18 = vmul.f32 %v3255_v14, %v4360_v38 }
0x176e   :  { %v3269_v47 = vsub.f32 %v5453_v7, %v3265_v18 }
0x1770   :  { %v3273_v54 = vmul.f32 %v3269_v47, %v3269_v47 }
0x1772   :  { %v3277_v31 = vsel %vm99_vm1, %v3273_v54, 0.0 }
0x1773   :  { %3278 = vadd.xlane.f32.xlu2 %v3277_v31  ;;  %v3258_v45 = vpop.xlane.xlu2 %3257 }
0x1774   :  { %v3266_v56 = vmul.f32 %v3258_v45, %v4360_v38 }
0x1776   :  { %v5480_v27 = vsub.f32 %v5459_v29, %v3266_v56 }
0x1778   :  { %v3274_v12 = vmul.f32 %v5480_v27, %v5480_v27 }
0x177a   :  { %v3280_v41 = vsel %vm99_vm1, %v3274_v12, 0.0 }
0x177b   :  { %3281 = vadd.xlane.f32.xlu0 %v3280_v41  ;;  %v3261_v17 = vpop.xlane.xlu0 %3260 }
0x177c   :  { %v3267_v35 = vmul.f32 %v3261_v17, %v4360_v38 }
0x177e   :  { %v5487_v48 = vsub.f32 %v5465_v43, %v3267_v35 }
0x1780   :  { %v3275_v21 = vmul.f32 %v5487_v48, %v5487_v48 }
0x1782   :  { %v3283_v49 = vsel %vm99_vm1, %v3275_v21, 0.0 }
0x1783   :  { %3284 = vadd.xlane.f32.xlu1 %v3283_v49  ;;  %v3264_v36 = vpop.xlane.xlu1 %3263 }
0x1784   :  { %v3268_v23 = vmul.f32 %v3264_v36, %v4360_v38 }
0x1786   :  { %v5494_v52 = vsub.f32 %v5471_v33, %v3268_v23 }
0x1788   :  { %v3276_v28 = vmul.f32 %v5494_v52, %v5494_v52 }
0x178a   :  { %v3286_v20 = vsel %vm99_vm1, %v3276_v28, 0.0 }
0x178b   :  { %3287 = vadd.xlane.f32.xlu2 %v3286_v20 }
0x17e6   :  { %v3279_v57 = vpop.xlane.xlu2 %3278 }
0x17e7   :  { %v3289_v50 = vmul.f32 %v3279_v57, %v4360_v38 }
0x17e9   :  { %v3293_v58 = vadd.f32 1e-05, %v3289_v50  ;;  %v3987_v50 = vld [vmem:[%s5625_s9 + $0xd8] sm:$0xff] }
0x17eb   :  { %4184 = vrsqrt.f32 %v3293_v58  ;;  %vm3303_vm0 = vweird.f32 %v3293_v58 }
0x17ee   :  { %v3282_v34 = vpop.xlane.xlu0 %3281 }
0x17ef   :  { %v3290_v37 = vmul.f32 %v3282_v34, %v4360_v38  ;;  %v3984_v34 = vld [vmem:[%s5625_s9 + $0xc0] sm:$0xff] }
0x17f1   :  { %v4185_v24 = vpop.eup %4184  ;;  %v3294_v59 = vadd.f32 1e-05, %v3290_v37  ;;  %v3983_v37 = vld [vmem:[%s5625_s9 + $0xb8] sm:$0xff] }
0x17f2   :  { %v3298_v46 = vmul.f32 %v4185_v24, %v3293_v58  ;;  %vm3304_vm15 = vweird.f32 %v4185_v24  ;;  %v3986_v58 = vld [vmem:[%s5625_s9 + $0xd0] sm:$0xff] }
0x17f3   :  { %4186 = vrsqrt.f32 %v3294_v59  ;;  %vm3305_vm13 = vmor %vm3303_vm0, %vm3304_vm15  ;;  %vm3313_vm2 = vweird.f32 %v3294_v59 }
0x17f4   :  { %v3299_v22 = vmul.f32 %v4185_v24, %v3298_v46  ;;  %v3980_v46 = vld [vmem:[%s5625_s9 + $0xa0] sm:$0xff] }
0x17f6   :  { %v3300_v60 = vmul.f32 0.5, %v3299_v22  ;;  %v3285_v61 = vpop.xlane.xlu1 %3284  ;;  %v3979_v22 = vld [vmem:[%s5625_s9 + $0x98] sm:$0xff] }
0x17f7   :  { %v3291_v63 = vmul.f32 %v3285_v61, %v4360_v38  ;;  %v3977_v61 = vld [vmem:[%s5625_s9 + $0x88] sm:$0xff] }
0x17f8   :  { %v3301_v0 = vsub.f32 1.5, %v3300_v60  ;;  %v3978_v60 = vld [vmem:[%s5625_s9 + $0x90] sm:$0xff] }
0x17f9   :  { %v4187_v1 = vpop.eup %4186  ;;  %v3295_v3 = vadd.f32 1e-05, %v3291_v63  ;;  %v3976_v63 = vld [vmem:[%s5625_s9 + $0x80] sm:$0xff] }
0x17fa   :  { %v3302_v42 = vmul.f32 %v4185_v24, %v3301_v0  ;;  %v3308_v5 = vmul.f32 %v4187_v1, %v3294_v59  ;;  %vm3314_vm14 = vweird.f32 %v4187_v1  ;;  %v3981_v59 = vld [vmem:[%s5625_s9 + $0xa8] sm:$0xff]  ;;  %v4021_v0 = vld [vmem:[%s5624_s8 + $0x1] ss:$0 sm:$0xff] }
0x17fb   :  { %4188 = vrsqrt.f32 %v3295_v3  ;;  %vm3315_vm3 = vmor %vm3313_vm2, %vm3314_vm14  ;;  %vm3323_vm5 = vweird.f32 %v3295_v3 }
0x17fc   :  { %v3306_v6 = vsel %vm3305_vm13, %v4185_v24, %v3302_v42  ;;  %v3309_v8 = vmul.f32 %v4187_v1, %v3308_v5  ;;  %v3982_v24 = vld [vmem:[%s5625_s9 + $0xb0] sm:$0xff] }
0x17fd   :  { %v3337_v11 = vmul.f32 %v3306_v6, %v3269_v47 }
0x17fe   :  { %v3310_v15 = vmul.f32 0.5, %v3309_v8  ;;  %v3288_v16 = vpop.xlane.xlu2 %3287 }
0x17ff   :  { %v3342_v4 = vmul.f32 %v3341_v30, %v3337_v11  ;;  %v3292_v44 = vmul.f32 %v3288_v16, %v4360_v38 }
0x1800   :  { %v3311_v19 = vsub.f32 1.5, %v3310_v15 }
0x1801   :  { %v4189_v9 = vpop.eup %4188  ;;  %v3347_v13 = vadd.f32 %v3346_v10, %v3342_v4  ;;  %v3296_v32 = vadd.f32 1e-05, %v3292_v44 }
0x1802   :  { %v3312_v25 = vmul.f32 %v4187_v1, %v3311_v19  ;;  %v3318_v14 = vmul.f32 %v4189_v9, %v3295_v3  ;;  %vm3324_vm4 = vweird.f32 %v4189_v9 }
0x1803   :  { %4190 = vrsqrt.f32 %v3296_v32  ;;  %3972 = vmatmul.msk.f32.vlgmr.msrb.gmra.mxu3 %vm99_vm1, %v3347_v13  ;;  %vm3325_vm6 = vmor %vm3323_vm5, %vm3324_vm4  ;;  %vm3333_vm8 = vweird.f32 %v3296_v32 }
0x1804   :  { %v3316_v18 = vsel %vm3315_vm3, %v4187_v1, %v3312_v25  ;;  %v3319_v47 = vmul.f32 %v4189_v9, %v3318_v14 }
0x1805   :  { %v3338_v54 = vmul.f32 %v3316_v18, %v5480_v27 }
0x1806   :  { %v3320_v31 = vmul.f32 0.5, %v3319_v47 }
0x1807   :  { %v3343_v45 = vmul.f32 %v3341_v30, %v3338_v54 }
0x1808   :  { %v3321_v56 = vsub.f32 1.5, %v3320_v31 }
0x1809   :  { %v4191_v12 = vpop.eup %4190  ;;  %v3348_v41 = vadd.f32 %v3346_v10, %v3343_v45 }
0x180a   :  { %v3322_v17 = vmul.f32 %v4189_v9, %v3321_v56  ;;  %v3328_v35 = vmul.f32 %v4191_v12, %v3296_v32  ;;  %vm3334_vm7 = vweird.f32 %v4191_v12 }
0x180b   :  { %3973 = vmatmul.msk.f32.gmra.mxu3 %vm99_vm1, %v3348_v41  ;;  %vm3335_vm9 = vmor %vm3333_vm8, %vm3334_vm7 }
0x180c   :  { %v3326_v21 = vsel %vm3325_vm6, %v4189_v9, %v3322_v17  ;;  %v3329_v49 = vmul.f32 %v4191_v12, %v3328_v35 }
0x180d   :  { %v3339_v36 = vmul.f32 %v3326_v21, %v5487_v48  ;;  %v3988_v48 = vld [vmem:[%s5625_s9 + $0xe0] sm:$0xff] }
0x180e   :  { %v3330_v23 = vmul.f32 0.5, %v3329_v49  ;;  %3458 = vmatpush.msra.mxu0 %v3988_v48  ;;  %v3488_v48 = vperm.slane %v5449_v62, 6 }
0x180f   :  { %v3344_v28 = vmul.f32 %v3341_v30, %v3339_v36 }
0x1810   :  { %v3331_v20 = vsub.f32 1.5, %v3330_v23  ;;  %3459 = vmatpush.msra.mxu0 %v3987_v50 }
0x1811   :  { %v3349_v27 = vadd.f32 %v3346_v10, %v3344_v28 }
0x1812   :  { %v3332_v26 = vmul.f32 %v4191_v12, %v3331_v20  ;;  %3460 = vmatpush.msra.mxu0 %v3986_v58 }
0x1813   :  { %3974 = vmatmul.msk.f32.gmra.mxu3 %vm99_vm1, %v3349_v27 }
0x1814   :  { %v3336_v55 = vsel %vm3335_vm9, %v4191_v12, %v3332_v26 }
0x1815   :  { %v3340_v39 = vmul.f32 %v3336_v55, %v5494_v52  ;;  %v3985_v52 = vld [vmem:[%s5625_s9 + $0xc8] sm:$0xff] }
0x1816   :  { %3461 = vmatpush.msra.mxu0 %v3985_v52 }
0x1817   :  { %v3345_v40 = vmul.f32 %v3341_v30, %v3340_v39 }
0x1818   :  { %3462 = vmatpush.msra.mxu0 %v3984_v34 }
0x1819   :  { %v3350_v57 = vadd.f32 %v3346_v10, %v3345_v40 }
0x181a   :  { %3463 = vmatpush.msra.mxu0 %v3983_v37 }
0x181b   :  { %3975 = vmatmul.msk.f32.gmra.mxu3 %vm99_vm1, %v3350_v57 }
0x181c   :  { %3464 = vmatpush.msra.mxu0 %v3982_v24 }
0x181e   :  { %3465 = vmatpush.msra.mxu0 %v3981_v59 }
0x1820   :  { %3466 = vmatpush.msra.mxu0 %v3980_v46 }
0x1822   :  { %3467 = vmatpush.msra.mxu0 %v3979_v22 }
0x1824   :  { %3468 = vmatpush.msra.mxu0 %v3978_v60 }
0x1826   :  { %3469 = vmatpush.msra.mxu0 %v3977_v61 }
0x1828   :  { %3470 = vmatpush.msra.mxu0 %v3976_v63 }
0x1886   :  { %v3390_v1 = vpop.f32.mrf.mxu3 }
0x1887   :  { %v3391_v3 = vadd.f32 %v4021_v0, %v3390_v1 }
0x1889   :  { %v3402_v42 = vmul.f32 %v3391_v3, %v3391_v3 }
0x188b   :  { %v3406_v5 = vmul.f32 %v3402_v42, %v3391_v3 }
0x188d   :  { %v3410_v30 = vmul.f32 0.044715, %v3406_v5 }
0x188e   :  { %v3393_v53 = vpop.f32.mrf.mxu3 }
0x188f   :  { %v3414_v2 = vadd.f32 %v3410_v30, %v3391_v3  ;;  %v3394_v6 = vadd.f32 %v4021_v0, %v3393_v53 }
0x1891   :  { %v3418_v8 = vmul.f32 0.7978846, %v3414_v2  ;;  %v3403_v10 = vmul.f32 %v3394_v6, %v3394_v6 }
0x1893   :  { %4192 = vtanh.f32 %v3418_v8  ;;  %v3407_v11 = vmul.f32 %v3403_v10, %v3394_v6 }
0x1895   :  { %v3411_v51 = vmul.f32 0.044715, %v3407_v11 }
0x1896   :  { %v3396_v15 = vpop.f32.mrf.mxu3 }
0x1897   :  { %v3415_v16 = vadd.f32 %v3411_v51, %v3394_v6  ;;  %v3397_v4 = vadd.f32 %v4021_v0, %v3396_v15 }
0x1899   :  { %v4193_v44 = vpop.eup %4192  ;;  %v3404_v19 = vmul.f32 %v3397_v4, %v3397_v4  ;;  %v3419_v9 = vmul.f32 0.7978846, %v3415_v16 }
0x189a   :  { %v3426_v13 = vadd.f32 1.0, %v4193_v44 }
0x189b   :  { %v3408_v32 = vmul.f32 %v3404_v19, %v3397_v4  ;;  %4194 = vtanh.f32 %v3419_v9 }
0x189c   :  { %v3430_v25 = vmul.f32 0.5, %v3426_v13 }
0x189d   :  { %v3412_v14 = vmul.f32 0.044715, %v3408_v32 }
0x189e   :  { %v3434_v18 = vmul.f32 %v3430_v25, %v3391_v3  ;;  %v3399_v47 = vpop.f32.mrf.mxu3 }
0x189f   :  { %v3416_v54 = vadd.f32 %v3412_v14, %v3397_v4  ;;  %v3400_v31 = vadd.f32 %v4021_v0, %v3399_v47 }
0x18a0   :  { %3471 = vmatmul.f32.vlgmr.msra.gmra.mxu0 %v3434_v18 }
0x18a1   :  { %v4195_v45 = vpop.eup %4194  ;;  %v3405_v56 = vmul.f32 %v3400_v31, %v3400_v31  ;;  %v3420_v12 = vmul.f32 0.7978846, %v3416_v54 }
0x18a2   :  { %v3427_v41 = vadd.f32 1.0, %v4195_v45 }
0x18a3   :  { %v3409_v17 = vmul.f32 %v3405_v56, %v3400_v31  ;;  %4196 = vtanh.f32 %v3420_v12 }
0x18a4   :  { %v3431_v35 = vmul.f32 0.5, %v3427_v41 }
0x18a5   :  { %v3413_v21 = vmul.f32 0.044715, %v3409_v17 }
0x18a6   :  { %v3435_v49 = vmul.f32 %v3431_v35, %v3394_v6 }
0x18a7   :  { %v3417_v36 = vadd.f32 %v3413_v21, %v3400_v31 }
0x18a8   :  { %3474 = vmatmul.f32.gmra.mxu0 %v3435_v49 }
0x18a9   :  { %v4197_v23 = vpop.eup %4196  ;;  %v3421_v28 = vmul.f32 0.7978846, %v3417_v36 }
0x18aa   :  { %v3428_v20 = vadd.f32 1.0, %v4197_v23  ;;  %v4210_v23 = vld [vmem:[%s5619_s3] sm:$0xff]  ;;  %s4238_s3 = smov [#allocation2]  }
0x18ab   :  { %4198 = vtanh.f32 %v3421_v28  ;;  %v3581_v28 = vperm.slane %v4210_v23, 1  ;;  %s3599_s15 = sshll.u32 %s4238_s3, 4  ;;  %s3600_s15 = int_to_ptr.vmem [resolvable:$true] %s3599_s15 }
0x18ac   :  { %v3432_v27 = vmul.f32 0.5, %v3428_v20 }
0x18ae   :  { %v3436_v26 = vmul.f32 %v3432_v27, %v3397_v4 }
0x18b0   :  { %3477 = vmatmul.f32.gmra.mxu0 %v3436_v26  ;;  %v3586_v26 = vperm.slane %v4210_v23, 2 }
0x18b1   :  { %v4199_v55 = vpop.eup %4198 }
0x18b2   :  { %v3429_v39 = vadd.f32 1.0, %v4199_v55 }
0x18b4   :  { %v3433_v40 = vmul.f32 0.5, %v3429_v39 }
0x18b6   :  { %v3437_v57 = vmul.f32 %v3433_v40, %v3400_v31 }
0x18b8   :  { %3480 = vmatmul.f32.gmra.mxu0 %v3437_v57 }
0x191d   :  { %v3472_v50 = vpop.f32.mrf.mxu0 }
0x191e   :  { %v3484_v58 = vadd.f32 %v3472_v50, %v5453_v7 }
0x1920   :  { %v3489_v52 = vadd.f32 %v3488_v48, %v3484_v58 }
0x1922   :  { %v3493_v34 = vsel %vm99_vm1, %v3489_v52, 0.0 }
0x1923   :  { %3494 = vadd.xlane.f32.xlu0 %v3493_v34 }
0x1925   :  { %v3475_v37 = vpop.f32.mrf.mxu0 }
0x1926   :  { %v3485_v24 = vadd.f32 %v3475_v37, %v5459_v29 }
0x1928   :  { %v3490_v59 = vadd.f32 %v3488_v48, %v3485_v24 }
0x192a   :  { %v3496_v46 = vsel %vm99_vm1, %v3490_v59, 0.0 }
0x192b   :  { %3497 = vadd.xlane.f32.xlu1 %v3496_v46 }
0x192d   :  { %v3478_v22 = vpop.f32.mrf.mxu0 }
0x192e   :  { %v3486_v60 = vadd.f32 %v3478_v22, %v5465_v43 }
0x1930   :  { %v3491_v61 = vadd.f32 %v3488_v48, %v3486_v60 }
0x1932   :  { %v3499_v62 = vsel %vm99_vm1, %v3491_v61, 0.0 }
0x1933   :  { %3500 = vadd.xlane.f32.xlu2 %v3499_v62 }
0x1935   :  { %v3481_v63 = vpop.f32.mrf.mxu0 }
0x1936   :  { %v3487_v7 = vadd.f32 %v3481_v63, %v5471_v33 }
0x1938   :  { %v3492_v0 = vadd.f32 %v3488_v48, %v3487_v7 }
0x193a   :  { %v3502_v1 = vsel %vm99_vm1, %v3492_v0, 0.0 }
0x193b   :  { %3503 = vadd.xlane.f32.xlu0 %v3502_v1 }
0x1996   :  { %v3495_v3 = vpop.xlane.xlu0 %3494 }
0x1997   :  { %v3505_v29 = vmul.f32 %v3495_v3, %v4360_v38 }
0x1999   :  { %v3509_v42 = vsub.f32 %v3489_v52, %v3505_v29 }
0x199b   :  { %v3513_v5 = vmul.f32 %v3509_v42, %v3509_v42 }
0x199d   :  { %v3517_v30 = vsel %vm99_vm1, %v3513_v5, 0.0 }
0x199e   :  { %3518 = vadd.xlane.f32.xlu1 %v3517_v30  ;;  %v3498_v43 = vpop.xlane.xlu1 %3497 }
0x199f   :  { %v3506_v53 = vmul.f32 %v3498_v43, %v4360_v38 }
0x19a1   :  { %v3510_v2 = vsub.f32 %v3490_v59, %v3506_v53 }
0x19a3   :  { %v3514_v6 = vmul.f32 %v3510_v2, %v3510_v2 }
0x19a5   :  { %v3520_v8 = vsel %vm99_vm1, %v3514_v6, 0.0 }
0x19a6   :  { %v3501_v33 = vpop.xlane.xlu2 %3500  ;;  %3521 = vadd.xlane.f32.xlu2 %v3520_v8 }
0x19a7   :  { %v3507_v10 = vmul.f32 %v3501_v33, %v4360_v38 }
0x19a9   :  { %v5589_v11 = vsub.f32 %v3491_v61, %v3507_v10 }
0x19ab   :  { %v3515_v51 = vmul.f32 %v5589_v11, %v5589_v11 }
0x19ad   :  { %v3523_v15 = vsel %vm99_vm1, %v3515_v51, 0.0 }
0x19ae   :  { %3524 = vadd.xlane.f32.xlu0 %v3523_v15  ;;  %v3504_v16 = vpop.xlane.xlu0 %3503 }
0x19af   :  { %v3508_v4 = vmul.f32 %v3504_v16, %v4360_v38 }
0x19b1   :  { %v5595_v44 = vsub.f32 %v3492_v0, %v3508_v4 }
0x19b3   :  { %v3516_v19 = vmul.f32 %v5595_v44, %v5595_v44 }
0x19b5   :  { %v3526_v9 = vsel %vm99_vm1, %v3516_v19, 0.0 }
0x19b6   :  { %3527 = vadd.xlane.f32.xlu1 %v3526_v9 }
0x1a11   :  { %v3519_v13 = vpop.xlane.xlu1 %3518 }
0x1a12   :  { %v3529_v32 = vmul.f32 %v3519_v13, %v4360_v38 }
0x1a14   :  { %v3533_v25 = vadd.f32 1e-05, %v3529_v32 }
0x1a16   :  { %4200 = vrsqrt.f32 %v3533_v25  ;;  %vm3543_vm11 = vweird.f32 %v3533_v25 }
0x1a19   :  { %v3522_v14 = vpop.xlane.xlu2 %3521 }
0x1a1a   :  { %v3530_v18 = vmul.f32 %v3522_v14, %v4360_v38 }
0x1a1c   :  { %v4201_v47 = vpop.eup %4200  ;;  %v3534_v54 = vadd.f32 1e-05, %v3530_v18 }
0x1a1d   :  { %v3538_v31 = vmul.f32 %v4201_v47, %v3533_v25  ;;  %vm3544_vm10 = vweird.f32 %v4201_v47 }
0x1a1e   :  { %4202 = vrsqrt.f32 %v3534_v54  ;;  %vm3545_vm12 = vmor %vm3543_vm11, %vm3544_vm10  ;;  %vm3553_vm0 = vweird.f32 %v3534_v54 }
0x1a1f   :  { %v3539_v45 = vmul.f32 %v4201_v47, %v3538_v31 }
0x1a21   :  { %v3540_v56 = vmul.f32 0.5, %v3539_v45  ;;  %v3525_v12 = vpop.xlane.xlu0 %3524 }
0x1a22   :  { %v3531_v41 = vmul.f32 %v3525_v12, %v4360_v38 }
0x1a23   :  { %v3541_v17 = vsub.f32 1.5, %v3540_v56 }
0x1a24   :  { %v4203_v35 = vpop.eup %4202  ;;  %v3535_v21 = vadd.f32 1e-05, %v3531_v41 }
0x1a25   :  { %v3542_v49 = vmul.f32 %v4201_v47, %v3541_v17  ;;  %v3548_v36 = vmul.f32 %v4203_v35, %v3534_v54  ;;  %vm3554_vm15 = vweird.f32 %v4203_v35 }
0x1a26   :  { %4204 = vrsqrt.f32 %v3535_v21  ;;  %vm3555_vm13 = vmor %vm3553_vm0, %vm3554_vm15  ;;  %vm3563_vm2 = vweird.f32 %v3535_v21 }
0x1a27   :  { %v3546_v20 = vsel %vm3545_vm12, %v4201_v47, %v3542_v49  ;;  %v3549_v27 = vmul.f32 %v4203_v35, %v3548_v36 }
0x1a28   :  { %v3577_v55 = vmul.f32 %v3546_v20, %v3509_v42 }
0x1a29   :  { %v3550_v39 = vmul.f32 0.5, %v3549_v27  ;;  %v3528_v40 = vpop.xlane.xlu1 %3527 }
0x1a2a   :  { %v3582_v57 = vmul.f32 %v3581_v28, %v3577_v55  ;;  %v3532_v48 = vmul.f32 %v3528_v40, %v4360_v38 }
0x1a2b   :  { %v3551_v50 = vsub.f32 1.5, %v3550_v39 }
0x1a2c   :  { %v4205_v58 = vpop.eup %4204  ;;  %v3587_v52 = vadd.f32 %v3586_v26, %v3582_v57  ;;  %v3536_v34 = vadd.f32 1e-05, %v3532_v48 }
0x1a2d   :  { %v3552_v37 = vmul.f32 %v4203_v35, %v3551_v50  ;;  %v3558_v24 = vmul.f32 %v4205_v58, %v3535_v21  ;;  %vm3564_vm14 = vweird.f32 %v4205_v58 }
0x1a2e   :  { %3591 = vst.msk [vmem:[#allocation2] sm:$0xff] %vm99_vm1, %v3587_v52  ;;  %4206 = vrsqrt.f32 %v3536_v34  ;;  %vm3565_vm3 = vmor %vm3563_vm2, %vm3564_vm14  ;;  %vm3573_vm5 = vweird.f32 %v3536_v34 }
0x1a2f   :  { %v3556_v59 = vsel %vm3555_vm13, %v4203_v35, %v3552_v37  ;;  %v3559_v46 = vmul.f32 %v4205_v58, %v3558_v24 }
0x1a30   :  { %v3578_v22 = vmul.f32 %v3556_v59, %v3510_v2 }
0x1a31   :  { %v3560_v60 = vmul.f32 0.5, %v3559_v46 }
0x1a32   :  { %v3583_v61 = vmul.f32 %v3581_v28, %v3578_v22 }
0x1a33   :  { %v3561_v62 = vsub.f32 1.5, %v3560_v60 }
0x1a34   :  { %v4207_v38 = vpop.eup %4206  ;;  %v3588_v63 = vadd.f32 %v3586_v26, %v3583_v61 }
0x1a35   :  { %v3562_v7 = vmul.f32 %v4205_v58, %v3561_v62  ;;  %v3568_v0 = vmul.f32 %v4207_v38, %v3536_v34  ;;  %vm3574_vm4 = vweird.f32 %v4207_v38 }
0x1a36   :  { %3592 = vst.msk [vmem:[#allocation2 + $0x8] sm:$0xff] %vm99_vm1, %v3588_v63  ;;  %vm3575_vm6 = vmor %vm3573_vm5, %vm3574_vm4 }
0x1a37   :  { %v3566_v1 = vsel %vm3565_vm3, %v4205_v58, %v3562_v7  ;;  %v3569_v3 = vmul.f32 %v4207_v38, %v3568_v0 }
0x1a38   :  { %v3579_v29 = vmul.f32 %v3566_v1, %v5589_v11 }
0x1a39   :  { %v3570_v42 = vmul.f32 0.5, %v3569_v3 }
0x1a3a   :  { %v3584_v5 = vmul.f32 %v3581_v28, %v3579_v29 }
0x1a3b   :  { %v3571_v30 = vsub.f32 1.5, %v3570_v42 }
0x1a3c   :  { %v3589_v43 = vadd.f32 %v3586_v26, %v3584_v5 }
0x1a3d   :  { %v3572_v53 = vmul.f32 %v4207_v38, %v3571_v30 }
0x1a3e   :  { %3593 = vst.msk [vmem:[#allocation2 + $0x10] sm:$0xff] %vm99_vm1, %v3589_v43 }
0x1a3f   :  { %v3576_v2 = vsel %vm3575_vm6, %v4207_v38, %v3572_v53 }
0x1a40   :  { %v3580_v6 = vmul.f32 %v3576_v2, %v5595_v44 }
0x1a42   :  { %v3585_v8 = vmul.f32 %v3581_v28, %v3580_v6 }
0x1a44   :  { %v3590_v33 = vadd.f32 %v3586_v26, %v3585_v8 }
0x1a46   :  { %3594 = vst.msk [vmem:[#allocation2 + $0x18] sm:$0xff] %vm99_vm1, %v3590_v33 }
0x1a47   :  { %3607 = dma.vmem_to_hbm [thread:$0]  %s3600_s15, 512, %s3602_s18, [#allocation3], %s4239_s4, %s4239_s4, %s4240_s19  }
0x1a48   :  { %4235 = dma.done.wait [#allocation3], 512  }
0x1a49   :  { %4236 = vsyncadd [#allocation3], 4294966784 }
0x1a4a   :  { %3612 = vsyncpa [#allocation3], 1 }

</bundles_post_ra>
